<compile_context>
chip_gen: v7x
topology: tpu7x:2x2x1
jax: 0.10.0
libtpu: 0.0.40
codegen_flags: <defaults>
</compile_context>

<pallas_src>
import functools

import jax
import jax.numpy as jnp
from jax.experimental import pallas as pl
from jax.experimental.pallas import tpu as pltpu

# ---------------------------------------------------------------------------
# Hyperparameters (PyTorch __init__ defaults)
# ---------------------------------------------------------------------------
IN_DIM = 2
OUT_DIM = 12
OUT_PAD = 128          # lane-dense padded output channels (sliced to OUT_DIM outside)
RESIDUAL_CH = 32
DILATION_CH = 32
SKIP_CH = 256
END_CH = 512
KERNEL_SIZE = 2
BLOCKS = 4
LAYERS = 2
BN_EPS = 1e-5
ALIGN_BN = 16          # sublane alignment for the tiled (bf16) B*N axis

# dilation schedule + receptive field (mirrors the PyTorch __init__ loop)
DILATIONS = []
RECEPTIVE_FIELD = 1
for _b in range(BLOCKS):
    _scope = KERNEL_SIZE - 1
    _dil = 1
    for _l in range(LAYERS):
        DILATIONS.append(_dil)
        RECEPTIVE_FIELD += _scope
        _dil *= 2
        _scope *= 2
N_LAYERS = len(DILATIONS)           # 8
T_SHRINK = sum(DILATIONS)           # 12 -> final time length = t0 - 12

_PACKED_ORDER = ("fgw_top", "fgw_bot", "fg_b", "res_w", "res_b", "bn_a",
                 "skip_w", "skip_b", "end1_w", "end1_b", "end2_w", "end2_b")


# ---------------------------------------------------------------------------
# Pallas kernel: gated dilated stack + fused skip + head, per B*N tile
# ---------------------------------------------------------------------------
def _wavenet_kernel(x_ref, fgw_top_ref, fgw_bot_ref, fg_b_ref,
                    res_w_ref, res_b_ref, bn_a_ref,
                    skip_w_ref, skip_b_ref,
                    end1_w_ref, end1_b_ref, end2_w_ref, end2_b_ref,
                    out_ref, *, t0, tile_bn, t_final):
    f32 = jnp.float32
    bf16 = jnp.bfloat16

    def mm(a, w):
        return jnp.dot(a, w, preferred_element_type=f32)

    rows_final = t_final * tile_bn
    # [t0, tile_bn, 32] -> [t0*tile_bn, 32]; tile_bn is a multiple of 16 so this
    # merge and all later d*tile_bn row slices are sublane-aligned (bf16) views.
    x = x_ref[...].reshape(t0 * tile_bn, RESIDUAL_CH)          # bf16

    skip_slabs = []
    t_cur = t0
    for i, d in enumerate(DILATIONS):
        t_new = t_cur - d
        rows_cur = t_cur * tile_bn
        rows_new = t_new * tile_bn

        residual = x                                   # bf16 [rows_cur, 32]
        xa = x[:rows_new, :]                           # tap at time t
        xb = x[d * tile_bn:rows_cur, :]                # tap at time t + d

        # fused filter|gate: two accumulated K=32 matmuls (no lane concat).
        # The gate half of the packed weights/bias is pre-scaled by 0.5 so
        # sigmoid(g) == 0.5 * (1 + tanh(g / 2)) and one tanh pass covers both
        # halves of the 64-wide pre-activation.
        z = mm(xa, fgw_top_ref[i]) + mm(xb, fgw_bot_ref[i]) + fg_b_ref[i]
        th = jnp.tanh(z)                               # f32 [rows_new, 64]
        gated = th[:, :DILATION_CH] * (0.5 * (th[:, DILATION_CH:] + 1.0))
        g16 = gated.astype(bf16)                       # bf16 [rows_new, 32]

        # deferred skip conv: only the last t_final time steps ever survive the
        # reference's per-layer crops, so just stash the cropped gated output.
        skip_slabs.append(g16[rows_new - rows_final:, :])

        # residual 1x1 conv with eval-mode BatchNorm folded in at pack time:
        #   BN(conv(g) + residual) == g @ (res_w*a) + (res_b*a + b) + residual*a
        x = (mm(g16, res_w_ref[i]) + res_b_ref[i]
             + residual[d * tile_bn:rows_cur, :].astype(f32) * bn_a_ref[i])
        x = x.astype(bf16)

        t_cur = t_new

    # ---- fused skip conv: one K = 8*32 = 256 matmul over all layers ----
    skip_in = jnp.concatenate(skip_slabs, axis=1)      # bf16 [rows_final, 256]
    skip = mm(skip_in, skip_w_ref[...]) + skip_b_ref[...]

    # ---- head ----
    skip = jnp.maximum(skip, 0.0).astype(bf16)
    h = jnp.maximum(mm(skip, end1_w_ref[...]) + end1_b_ref[...], 0.0).astype(bf16)
    out = mm(h, end2_w_ref[...]) + end2_b_ref[...]     # f32 [rows_final, OUT_PAD]
    out_ref[...] = out.reshape(t_final, tile_bn, OUT_PAD)


# ---------------------------------------------------------------------------
# Parameter init (deterministic, PyTorch-like fan-in uniform; BN at defaults)
# ---------------------------------------------------------------------------
def init_params(key):
    def uni(k, shape, fan_in):
        bound = 1.0 / (fan_in ** 0.5)
        return jax.random.uniform(k, shape, jnp.float32, -bound, bound)

    keys = iter(jax.random.split(key, 32))
    n = N_LAYERS
    return {
        "start_w": uni(next(keys), (IN_DIM, RESIDUAL_CH), IN_DIM),
        "start_b": uni(next(keys), (1, RESIDUAL_CH), IN_DIM),
        # dilated (1,2) convs: 2 taps per layer, stacked as [2*n, Cin, Cout]
        "filt_w": uni(next(keys), (2 * n, RESIDUAL_CH, DILATION_CH), 2 * RESIDUAL_CH),
        "filt_b": uni(next(keys), (n, 1, DILATION_CH), 2 * RESIDUAL_CH),
        "gate_w": uni(next(keys), (2 * n, RESIDUAL_CH, DILATION_CH), 2 * RESIDUAL_CH),
        "gate_b": uni(next(keys), (n, 1, DILATION_CH), 2 * RESIDUAL_CH),
        "res_w": uni(next(keys), (n, DILATION_CH, RESIDUAL_CH), DILATION_CH),
        "res_b": uni(next(keys), (n, 1, RESIDUAL_CH), DILATION_CH),
        "skip_w": uni(next(keys), (n, DILATION_CH, SKIP_CH), DILATION_CH),
        "skip_b": uni(next(keys), (n, 1, SKIP_CH), DILATION_CH),
        # BatchNorm2d defaults: gamma=1, beta=0, running_mean=0, running_var=1
        "bn": jnp.stack(
            [jnp.ones((n, RESIDUAL_CH)), jnp.zeros((n, RESIDUAL_CH)),
             jnp.zeros((n, RESIDUAL_CH)), jnp.ones((n, RESIDUAL_CH))],
            axis=1).astype(jnp.float32),
        "end1_w": uni(next(keys), (SKIP_CH, END_CH), SKIP_CH),
        "end1_b": uni(next(keys), (1, END_CH), SKIP_CH),
        "end2_w": uni(next(keys), (END_CH, OUT_DIM), END_CH),
        "end2_b": uni(next(keys), (1, OUT_DIM), END_CH),
    }


def _pack_params(params):
    """bf16 matmul weights; filter/gate fused per tap (gate pre-scaled by 0.5 for
    the tanh-sigmoid trick); eval-mode BN folded into the residual conv; skip
    convs stacked into one K=256 weight with summed bias; head output padded to
    128 lanes."""
    f32 = jnp.float32
    bf16 = jnp.bfloat16
    n = N_LAYERS

    fw, gw = params["filt_w"], params["gate_w"]          # [2n, 32, 32]
    fb, gb = params["filt_b"], params["gate_b"]          # [n, 1, 32]
    fw0, fw1 = fw[0::2], fw[1::2]                        # [n, 32, 32] taps 0/1
    gw0, gw1 = gw[0::2], gw[1::2]
    fgw_top = jnp.concatenate([fw0, 0.5 * gw0], axis=2).astype(bf16)   # [n,32,64]
    fgw_bot = jnp.concatenate([fw1, 0.5 * gw1], axis=2).astype(bf16)   # [n,32,64]
    fg_b = jnp.concatenate([fb, 0.5 * gb], axis=2).astype(f32)         # [n,1,64]

    # fold eval-mode BatchNorm (running stats) into the residual conv
    bn = params["bn"]                                    # [n, 4, 32]
    gamma, beta, mean, var = bn[:, 0], bn[:, 1], bn[:, 2], bn[:, 3]
    a = gamma * jax.lax.rsqrt(var + BN_EPS)              # [n, 32]
    b = beta - mean * a
    res_w = (params["res_w"] * a[:, None, :]).astype(bf16)                   # [n,32,32]
    res_b = (params["res_b"] * a[:, None, :] + b[:, None, :]).astype(f32)    # [n,1,32]
    bn_a = a[:, None, :].astype(f32)                                         # [n,1,32]

    # stack skip convs into one [n*32, 256] weight; sum the biases
    skip_w = params["skip_w"].reshape(n * DILATION_CH, SKIP_CH).astype(bf16)
    skip_b = jnp.sum(params["skip_b"], axis=0).astype(f32)                   # [1,256]

    end2_w = jnp.zeros((END_CH, OUT_PAD), f32).at[:, :OUT_DIM].set(
        params["end2_w"]).astype(bf16)
    end2_b = jnp.zeros((1, OUT_PAD), f32).at[:, :OUT_DIM].set(params["end2_b"])

    return {
        "fgw_top": fgw_top, "fgw_bot": fgw_bot, "fg_b": fg_b,
        "res_w": res_w, "res_b": res_b, "bn_a": bn_a,
        "skip_w": skip_w, "skip_b": skip_b,
        "end1_w": params["end1_w"].astype(bf16),
        "end1_b": params["end1_b"].astype(f32),
        "end2_w": end2_w, "end2_b": end2_b,
    }


def _round_up(x, m):
    return (x + m - 1) // m * m


# ---------------------------------------------------------------------------
# Wrapper (layout transpose, receptive-field pad, start conv, B*N tiling)
# ---------------------------------------------------------------------------
def wavenet_forward(history_data, params, training=False, tile_bn=512):
    """history_data: [B, L, N, C_in] float32.
    Returns [B, OUT_DIM, N, T_out] (NCHW, same as the PyTorch module)."""
    if training:
        # TODO(synk): training-mode BatchNorm needs batch statistics over the full
        # (B, N, T) set (a cross-tile reduction) plus running-stat updates; only
        # eval-mode BN (running statistics, folded into the residual conv) is
        # implemented in the tiled kernel.
        raise NotImplementedError("only eval-mode BatchNorm is supported")

    B, L, N, C = history_data.shape
    assert C == IN_DIM

    x = jnp.transpose(history_data, (1, 0, 2, 3)).astype(jnp.float32)  # [L,B,N,C]
    t0 = max(L, RECEPTIVE_FIELD)
    if L < RECEPTIVE_FIELD:
        x = jnp.pad(x, ((RECEPTIVE_FIELD - L, 0), (0, 0), (0, 0), (0, 0)))
    t_final = t0 - T_SHRINK

    # start 1x1 conv (Cin = 2) in the wrapper: kernel never sees a [*, 2] slab.
    # Cast the activation stream to bf16 for MXU throughput / halved DMA bytes.
    x = jnp.einsum("tbnc,cd->tbnd", x, params["start_w"]) + params["start_b"]
    x = x.reshape(t0, B * N, RESIDUAL_CH).astype(jnp.bfloat16)

    # pad B*N to a bf16-sublane-aligned tile multiple (padded rows never mix with
    # real rows: every op is pointwise over B*N and BN uses running stats).
    bn_total = B * N
    bn_align = _round_up(bn_total, ALIGN_BN)
    tile = min(_round_up(tile_bn, ALIGN_BN), bn_align)
    # v7x megacore: make sure the "parallel" grid axis has >= 2 steps when B*N
    # is large enough for two aligned tiles (no-op cost on v5e/v6e).
    if bn_align // tile < 2 and bn_align >= 2 * ALIGN_BN:
        tile = _round_up((bn_align + 1) // 2, ALIGN_BN)
    bn_pad = _round_up(bn_total, tile)
    if bn_pad != bn_total:
        x = jnp.pad(x, ((0, 0), (0, bn_pad - bn_total), (0, 0)))
    num_tiles = bn_pad // tile

    packed = _pack_params(params)

    def const_spec(a):
        return pl.BlockSpec(a.shape, lambda i: (0,) * a.ndim)

    in_specs = [pl.BlockSpec((t0, tile, RESIDUAL_CH), lambda i: (0, i, 0))]
    in_specs += [const_spec(packed[k]) for k in _PACKED_ORDER]
    out_spec = pl.BlockSpec((t_final, tile, OUT_PAD), lambda i: (0, i, 0))

    # advisory cost estimate for XLA scheduling
    flops, trans = 0, 0
    t_cur = t0
    for d in DILATIONS:
        t_new = t_cur - d
        flops += 2 * t_new * bn_pad * 64 * 64                       # filt|gate (2 taps)
        flops += 2 * t_new * bn_pad * DILATION_CH * RESIDUAL_CH     # residual conv
        trans += t_new * bn_pad * 64                                # tanh
        t_cur = t_new
    flops += 2 * t_final * bn_pad * (N_LAYERS * DILATION_CH) * SKIP_CH  # fused skip
    flops += 2 * t_final * bn_pad * (SKIP_CH * END_CH + END_CH * OUT_PAD)
    weight_bytes = sum(int(packed[k].size) * packed[k].dtype.itemsize
                       for k in _PACKED_ORDER)
    bytes_accessed = (2 * int(x.size) + 4 * t_final * bn_pad * OUT_PAD
                      + weight_bytes)

    # scoped VMEM: ~2x the per-step working set, capped well below v7x's 64 MiB
    # physical per-core VMEM (previously a flat 64 MiB request).
    x_block = t0 * tile * RESIDUAL_CH * 2
    out_block = t_final * tile * OUT_PAD * 4
    inter = tile * 4 * (t0 * 3 * 64
                        + t_final * (3 * SKIP_CH + 2 * END_CH + OUT_PAD))
    working_set = 2 * (x_block + out_block) + 2 * weight_bytes + inter
    vmem_limit = int(min(max(2 * working_set, 16 * 1024 * 1024),
                         48 * 1024 * 1024))

    kernel = functools.partial(_wavenet_kernel, t0=t0, tile_bn=tile,
                               t_final=t_final)
    out = pl.pallas_call(
        kernel,
        out_shape=jax.ShapeDtypeStruct((t_final, bn_pad, OUT_PAD), jnp.float32),
        grid=(num_tiles,),
        in_specs=in_specs,
        out_specs=out_spec,
        compiler_params=pltpu.CompilerParams(
            dimension_semantics=("parallel",),
            vmem_limit_bytes=vmem_limit),
        cost_estimate=pl.CostEstimate(flops=flops, transcendentals=trans,
                                      bytes_accessed=bytes_accessed),
    )(x, *[packed[k] for k in _PACKED_ORDER])

    out = out[:, :bn_total, :OUT_DIM].reshape(t_final, B, N, OUT_DIM)
    return jnp.transpose(out, (1, 3, 2, 0))            # [B, OUT_DIM, N, T_out]


if __name__ == "__main__":
    key = jax.random.PRNGKey(0)
    k_data, k_param = jax.random.split(key)

    B, L, N = 2, RECEPTIVE_FIELD, 8          # L = 13 = receptive field -> T_out = 1
    history_data = jax.random.normal(k_data, (B, L, N, IN_DIM), jnp.float32)
    params = init_params(k_param)

    out = wavenet_forward(history_data, params, training=False)
    jax.block_until_ready(out)
    assert out.shape == (B, OUT_DIM, N, 1), out.shape
    assert bool(jnp.all(jnp.isfinite(out)))
    print("KERNEL_OK")
</pallas_src>

<mosaic_0001>
module attributes {stable_mosaic.version = 11 : i64} {
  func.func @_wavenet_kernel(%arg0: i32, %arg1: memref<13x16x32xbf16, #tpu.memory_space<vmem>>, %arg2: memref<8x32x64xbf16, #tpu.memory_space<vmem>>, %arg3: memref<8x32x64xbf16, #tpu.memory_space<vmem>>, %arg4: memref<8x1x64xf32, #tpu.memory_space<vmem>>, %arg5: memref<8x32x32xbf16, #tpu.memory_space<vmem>>, %arg6: memref<8x1x32xf32, #tpu.memory_space<vmem>>, %arg7: memref<8x1x32xf32, #tpu.memory_space<vmem>>, %arg8: memref<256x256xbf16, #tpu.memory_space<vmem>>, %arg9: memref<1x256xf32, #tpu.memory_space<vmem>>, %arg10: memref<256x512xbf16, #tpu.memory_space<vmem>>, %arg11: memref<1x512xf32, #tpu.memory_space<vmem>>, %arg12: memref<512x128xbf16, #tpu.memory_space<vmem>>, %arg13: memref<1x128xf32, #tpu.memory_space<vmem>>, %arg14: memref<1x16x128xf32, #tpu.memory_space<vmem>>) attributes {dimension_semantics = [#tpu.dimension_semantics<parallel>], iteration_bounds = array<i64: 1>, scalar_prefetch = 0 : i64, scratch_operands = 0 : i64, tpu.core_type = #tpu.core_type<tc>, window_params = [{transform_indices = @transform_0, window_bounds = array<i64: 13, 16, 32>}, {pipeline_mode = #tpu.pipeline_mode<synchronous>, transform_indices = @transform_1, window_bounds = array<i64: 8, 32, 64>}, {pipeline_mode = #tpu.pipeline_mode<synchronous>, transform_indices = @transform_2, window_bounds = array<i64: 8, 32, 64>}, {pipeline_mode = #tpu.pipeline_mode<synchronous>, transform_indices = @transform_3, window_bounds = array<i64: 8, 1, 64>}, {pipeline_mode = #tpu.pipeline_mode<synchronous>, transform_indices = @transform_4, window_bounds = array<i64: 8, 32, 32>}, {pipeline_mode = #tpu.pipeline_mode<synchronous>, transform_indices = @transform_5, window_bounds = array<i64: 8, 1, 32>}, {pipeline_mode = #tpu.pipeline_mode<synchronous>, transform_indices = @transform_6, window_bounds = array<i64: 8, 1, 32>}, {pipeline_mode = #tpu.pipeline_mode<synchronous>, transform_indices = @transform_7, window_bounds = array<i64: 256, 256>}, {pipeline_mode = #tpu.pipeline_mode<synchronous>, transform_indices = @transform_8, window_bounds = array<i64: 1, 256>}, {pipeline_mode = #tpu.pipeline_mode<synchronous>, transform_indices = @transform_9, window_bounds = array<i64: 256, 512>}, {pipeline_mode = #tpu.pipeline_mode<synchronous>, transform_indices = @transform_10, window_bounds = array<i64: 1, 512>}, {pipeline_mode = #tpu.pipeline_mode<synchronous>, transform_indices = @transform_11, window_bounds = array<i64: 512, 128>}, {pipeline_mode = #tpu.pipeline_mode<synchronous>, transform_indices = @transform_12, window_bounds = array<i64: 1, 128>}, {transform_indices = @transform_13, window_bounds = array<i64: 1, 16, 128>}]} {
    %c0 = arith.constant 0 : index
    %c0_0 = arith.constant 0 : index
    %c0_1 = arith.constant 0 : index
    %0 = vector.load %arg1[%c0, %c0_0, %c0_1] : memref<13x16x32xbf16, #tpu.memory_space<vmem>>, vector<13x16x32xbf16>
    %1 = vector.shape_cast %0 : vector<13x16x32xbf16> to vector<208x32xbf16>
    %2 = vector.extract_strided_slice %1 {offsets = [0, 0], sizes = [192, 32], strides = [1, 1]} : vector<208x32xbf16> to vector<192x32xbf16>
    %3 = vector.extract_strided_slice %1 {offsets = [16, 0], sizes = [192, 32], strides = [1, 1]} : vector<208x32xbf16> to vector<192x32xbf16>
    %c0_2 = arith.constant 0 : index
    %c0_3 = arith.constant 0 : index
    %c0_4 = arith.constant 0 : index
    %4 = vector.load %arg2[%c0_2, %c0_3, %c0_4] : memref<8x32x64xbf16, #tpu.memory_space<vmem>>, vector<1x32x64xbf16>
    %5 = vector.shape_cast %4 : vector<1x32x64xbf16> to vector<32x64xbf16>
    %cst = arith.constant dense<0.000000e+00> : vector<192x64xf32>
    %6 = tpu.matmul %2, %5, %cst {dimension_numbers = #tpu.dot_dimension_numbers<[1], [0], [0], [1], [0, 0, 1, 1], [], []>} : vector<192x32xbf16>, vector<32x64xbf16>, vector<192x64xf32> -> vector<192x64xf32>
    %c0_5 = arith.constant 0 : index
    %c0_6 = arith.constant 0 : index
    %c0_7 = arith.constant 0 : index
    %7 = vector.load %arg3[%c0_5, %c0_6, %c0_7] : memref<8x32x64xbf16, #tpu.memory_space<vmem>>, vector<1x32x64xbf16>
    %8 = vector.shape_cast %7 : vector<1x32x64xbf16> to vector<32x64xbf16>
    %cst_8 = arith.constant dense<0.000000e+00> : vector<192x64xf32>
    %9 = tpu.matmul %3, %8, %cst_8 {dimension_numbers = #tpu.dot_dimension_numbers<[1], [0], [0], [1], [0, 0, 1, 1], [], []>} : vector<192x32xbf16>, vector<32x64xbf16>, vector<192x64xf32> -> vector<192x64xf32>
    %10 = arith.addf %6, %9 : vector<192x64xf32>
    %c0_9 = arith.constant 0 : index
    %c0_10 = arith.constant 0 : index
    %c0_11 = arith.constant 0 : index
    %11 = vector.load %arg4[%c0_9, %c0_10, %c0_11] : memref<8x1x64xf32, #tpu.memory_space<vmem>>, vector<1x1x64xf32>
    %12 = vector.shape_cast %11 : vector<1x1x64xf32> to vector<1x64xf32>
    %13 = vector.broadcast %12 : vector<1x64xf32> to vector<192x64xf32>
    %14 = arith.addf %10, %13 : vector<192x64xf32>
    %15 = math.tanh %14 : vector<192x64xf32>
    %16 = vector.extract_strided_slice %15 {offsets = [0, 0], sizes = [192, 32], strides = [1, 1]} : vector<192x64xf32> to vector<192x32xf32>
    %17 = vector.extract_strided_slice %15 {offsets = [0, 32], sizes = [192, 32], strides = [1, 1]} : vector<192x64xf32> to vector<192x32xf32>
    %cst_12 = arith.constant 1.000000e+00 : f32
    %18 = vector.broadcast %cst_12 : f32 to vector<192x32xf32>
    %19 = arith.addf %17, %18 : vector<192x32xf32>
    %cst_13 = arith.constant 5.000000e-01 : f32
    %20 = vector.broadcast %cst_13 : f32 to vector<192x32xf32>
    %21 = arith.mulf %20, %19 : vector<192x32xf32>
    %22 = arith.mulf %16, %21 : vector<192x32xf32>
    %23 = arith.truncf %22 : vector<192x32xf32> to vector<192x32xbf16>
    %24 = vector.extract_strided_slice %23 {offsets = [176, 0], sizes = [16, 32], strides = [1, 1]} : vector<192x32xbf16> to vector<16x32xbf16>
    %c0_14 = arith.constant 0 : index
    %c0_15 = arith.constant 0 : index
    %c0_16 = arith.constant 0 : index
    %25 = vector.load %arg5[%c0_14, %c0_15, %c0_16] : memref<8x32x32xbf16, #tpu.memory_space<vmem>>, vector<1x32x32xbf16>
    %26 = vector.shape_cast %25 : vector<1x32x32xbf16> to vector<32x32xbf16>
    %cst_17 = arith.constant dense<0.000000e+00> : vector<192x32xf32>
    %27 = tpu.matmul %23, %26, %cst_17 {dimension_numbers = #tpu.dot_dimension_numbers<[1], [0], [0], [1], [0, 0, 1, 1], [], []>} : vector<192x32xbf16>, vector<32x32xbf16>, vector<192x32xf32> -> vector<192x32xf32>
    %c0_18 = arith.constant 0 : index
    %c0_19 = arith.constant 0 : index
    %c0_20 = arith.constant 0 : index
    %28 = vector.load %arg6[%c0_18, %c0_19, %c0_20] : memref<8x1x32xf32, #tpu.memory_space<vmem>>, vector<1x1x32xf32>
    %29 = vector.shape_cast %28 : vector<1x1x32xf32> to vector<1x32xf32>
    %30 = vector.broadcast %29 : vector<1x32xf32> to vector<192x32xf32>
    %31 = arith.addf %27, %30 : vector<192x32xf32>
    %32 = vector.extract_strided_slice %1 {offsets = [16, 0], sizes = [192, 32], strides = [1, 1]} : vector<208x32xbf16> to vector<192x32xbf16>
    %33 = arith.extf %32 : vector<192x32xbf16> to vector<192x32xf32>
    %c0_21 = arith.constant 0 : index
    %c0_22 = arith.constant 0 : index
    %c0_23 = arith.constant 0 : index
    %34 = vector.load %arg7[%c0_21, %c0_22, %c0_23] : memref<8x1x32xf32, #tpu.memory_space<vmem>>, vector<1x1x32xf32>
    %35 = vector.shape_cast %34 : vector<1x1x32xf32> to vector<1x32xf32>
    %36 = vector.broadcast %35 : vector<1x32xf32> to vector<192x32xf32>
    %37 = arith.mulf %33, %36 : vector<192x32xf32>
    %38 = arith.addf %31, %37 : vector<192x32xf32>
    %39 = arith.truncf %38 : vector<192x32xf32> to vector<192x32xbf16>
    %40 = vector.extract_strided_slice %39 {offsets = [0, 0], sizes = [160, 32], strides = [1, 1]} : vector<192x32xbf16> to vector<160x32xbf16>
    %41 = vector.extract_strided_slice %39 {offsets = [32, 0], sizes = [160, 32], strides = [1, 1]} : vector<192x32xbf16> to vector<160x32xbf16>
    %c1 = arith.constant 1 : index
    %c0_24 = arith.constant 0 : index
    %c0_25 = arith.constant 0 : index
    %42 = vector.load %arg2[%c1, %c0_24, %c0_25] : memref<8x32x64xbf16, #tpu.memory_space<vmem>>, vector<1x32x64xbf16>
    %43 = vector.shape_cast %42 : vector<1x32x64xbf16> to vector<32x64xbf16>
    %cst_26 = arith.constant dense<0.000000e+00> : vector<160x64xf32>
    %44 = tpu.matmul %40, %43, %cst_26 {dimension_numbers = #tpu.dot_dimension_numbers<[1], [0], [0], [1], [0, 0, 1, 1], [], []>} : vector<160x32xbf16>, vector<32x64xbf16>, vector<160x64xf32> -> vector<160x64xf32>
    %c1_27 = arith.constant 1 : index
    %c0_28 = arith.constant 0 : index
    %c0_29 = arith.constant 0 : index
    %45 = vector.load %arg3[%c1_27, %c0_28, %c0_29] : memref<8x32x64xbf16, #tpu.memory_space<vmem>>, vector<1x32x64xbf16>
    %46 = vector.shape_cast %45 : vector<1x32x64xbf16> to vector<32x64xbf16>
    %cst_30 = arith.constant dense<0.000000e+00> : vector<160x64xf32>
    %47 = tpu.matmul %41, %46, %cst_30 {dimension_numbers = #tpu.dot_dimension_numbers<[1], [0], [0], [1], [0, 0, 1, 1], [], []>} : vector<160x32xbf16>, vector<32x64xbf16>, vector<160x64xf32> -> vector<160x64xf32>
    %48 = arith.addf %44, %47 : vector<160x64xf32>
    %c1_31 = arith.constant 1 : index
    %c0_32 = arith.constant 0 : index
    %c0_33 = arith.constant 0 : index
    %49 = vector.load %arg4[%c1_31, %c0_32, %c0_33] : memref<8x1x64xf32, #tpu.memory_space<vmem>>, vector<1x1x64xf32>
    %50 = vector.shape_cast %49 : vector<1x1x64xf32> to vector<1x64xf32>
    %51 = vector.broadcast %50 : vector<1x64xf32> to vector<160x64xf32>
    %52 = arith.addf %48, %51 : vector<160x64xf32>
    %53 = math.tanh %52 : vector<160x64xf32>
    %54 = vector.extract_strided_slice %53 {offsets = [0, 0], sizes = [160, 32], strides = [1, 1]} : vector<160x64xf32> to vector<160x32xf32>
    %55 = vector.extract_strided_slice %53 {offsets = [0, 32], sizes = [160, 32], strides = [1, 1]} : vector<160x64xf32> to vector<160x32xf32>
    %cst_34 = arith.constant 1.000000e+00 : f32
    %56 = vector.broadcast %cst_34 : f32 to vector<160x32xf32>
    %57 = arith.addf %55, %56 : vector<160x32xf32>
    %cst_35 = arith.constant 5.000000e-01 : f32
    %58 = vector.broadcast %cst_35 : f32 to vector<160x32xf32>
    %59 = arith.mulf %58, %57 : vector<160x32xf32>
    %60 = arith.mulf %54, %59 : vector<160x32xf32>
    %61 = arith.truncf %60 : vector<160x32xf32> to vector<160x32xbf16>
    %62 = vector.extract_strided_slice %61 {offsets = [144, 0], sizes = [16, 32], strides = [1, 1]} : vector<160x32xbf16> to vector<16x32xbf16>
    %c1_36 = arith.constant 1 : index
    %c0_37 = arith.constant 0 : index
    %c0_38 = arith.constant 0 : index
    %63 = vector.load %arg5[%c1_36, %c0_37, %c0_38] : memref<8x32x32xbf16, #tpu.memory_space<vmem>>, vector<1x32x32xbf16>
    %64 = vector.shape_cast %63 : vector<1x32x32xbf16> to vector<32x32xbf16>
    %cst_39 = arith.constant dense<0.000000e+00> : vector<160x32xf32>
    %65 = tpu.matmul %61, %64, %cst_39 {dimension_numbers = #tpu.dot_dimension_numbers<[1], [0], [0], [1], [0, 0, 1, 1], [], []>} : vector<160x32xbf16>, vector<32x32xbf16>, vector<160x32xf32> -> vector<160x32xf32>
    %c1_40 = arith.constant 1 : index
    %c0_41 = arith.constant 0 : index
    %c0_42 = arith.constant 0 : index
    %66 = vector.load %arg6[%c1_40, %c0_41, %c0_42] : memref<8x1x32xf32, #tpu.memory_space<vmem>>, vector<1x1x32xf32>
    %67 = vector.shape_cast %66 : vector<1x1x32xf32> to vector<1x32xf32>
    %68 = vector.broadcast %67 : vector<1x32xf32> to vector<160x32xf32>
    %69 = arith.addf %65, %68 : vector<160x32xf32>
    %70 = vector.extract_strided_slice %39 {offsets = [32, 0], sizes = [160, 32], strides = [1, 1]} : vector<192x32xbf16> to vector<160x32xbf16>
    %71 = arith.extf %70 : vector<160x32xbf16> to vector<160x32xf32>
    %c1_43 = arith.constant 1 : index
    %c0_44 = arith.constant 0 : index
    %c0_45 = arith.constant 0 : index
    %72 = vector.load %arg7[%c1_43, %c0_44, %c0_45] : memref<8x1x32xf32, #tpu.memory_space<vmem>>, vector<1x1x32xf32>
    %73 = vector.shape_cast %72 : vector<1x1x32xf32> to vector<1x32xf32>
    %74 = vector.broadcast %73 : vector<1x32xf32> to vector<160x32xf32>
    %75 = arith.mulf %71, %74 : vector<160x32xf32>
    %76 = arith.addf %69, %75 : vector<160x32xf32>
    %77 = arith.truncf %76 : vector<160x32xf32> to vector<160x32xbf16>
    %78 = vector.extract_strided_slice %77 {offsets = [0, 0], sizes = [144, 32], strides = [1, 1]} : vector<160x32xbf16> to vector<144x32xbf16>
    %79 = vector.extract_strided_slice %77 {offsets = [16, 0], sizes = [144, 32], strides = [1, 1]} : vector<160x32xbf16> to vector<144x32xbf16>
    %c2 = arith.constant 2 : index
    %c0_46 = arith.constant 0 : index
    %c0_47 = arith.constant 0 : index
    %80 = vector.load %arg2[%c2, %c0_46, %c0_47] : memref<8x32x64xbf16, #tpu.memory_space<vmem>>, vector<1x32x64xbf16>
    %81 = vector.shape_cast %80 : vector<1x32x64xbf16> to vector<32x64xbf16>
    %cst_48 = arith.constant dense<0.000000e+00> : vector<144x64xf32>
    %82 = tpu.matmul %78, %81, %cst_48 {dimension_numbers = #tpu.dot_dimension_numbers<[1], [0], [0], [1], [0, 0, 1, 1], [], []>} : vector<144x32xbf16>, vector<32x64xbf16>, vector<144x64xf32> -> vector<144x64xf32>
    %c2_49 = arith.constant 2 : index
    %c0_50 = arith.constant 0 : index
    %c0_51 = arith.constant 0 : index
    %83 = vector.load %arg3[%c2_49, %c0_50, %c0_51] : memref<8x32x64xbf16, #tpu.memory_space<vmem>>, vector<1x32x64xbf16>
    %84 = vector.shape_cast %83 : vector<1x32x64xbf16> to vector<32x64xbf16>
    %cst_52 = arith.constant dense<0.000000e+00> : vector<144x64xf32>
    %85 = tpu.matmul %79, %84, %cst_52 {dimension_numbers = #tpu.dot_dimension_numbers<[1], [0], [0], [1], [0, 0, 1, 1], [], []>} : vector<144x32xbf16>, vector<32x64xbf16>, vector<144x64xf32> -> vector<144x64xf32>
    %86 = arith.addf %82, %85 : vector<144x64xf32>
    %c2_53 = arith.constant 2 : index
    %c0_54 = arith.constant 0 : index
    %c0_55 = arith.constant 0 : index
    %87 = vector.load %arg4[%c2_53, %c0_54, %c0_55] : memref<8x1x64xf32, #tpu.memory_space<vmem>>, vector<1x1x64xf32>
    %88 = vector.shape_cast %87 : vector<1x1x64xf32> to vector<1x64xf32>
    %89 = vector.broadcast %88 : vector<1x64xf32> to vector<144x64xf32>
    %90 = arith.addf %86, %89 : vector<144x64xf32>
    %91 = math.tanh %90 : vector<144x64xf32>
    %92 = vector.extract_strided_slice %91 {offsets = [0, 0], sizes = [144, 32], strides = [1, 1]} : vector<144x64xf32> to vector<144x32xf32>
    %93 = vector.extract_strided_slice %91 {offsets = [0, 32], sizes = [144, 32], strides = [1, 1]} : vector<144x64xf32> to vector<144x32xf32>
    %cst_56 = arith.constant 1.000000e+00 : f32
    %94 = vector.broadcast %cst_56 : f32 to vector<144x32xf32>
    %95 = arith.addf %93, %94 : vector<144x32xf32>
    %cst_57 = arith.constant 5.000000e-01 : f32
    %96 = vector.broadcast %cst_57 : f32 to vector<144x32xf32>
    %97 = arith.mulf %96, %95 : vector<144x32xf32>
    %98 = arith.mulf %92, %97 : vector<144x32xf32>
    %99 = arith.truncf %98 : vector<144x32xf32> to vector<144x32xbf16>
    %100 = vector.extract_strided_slice %99 {offsets = [128, 0], sizes = [16, 32], strides = [1, 1]} : vector<144x32xbf16> to vector<16x32xbf16>
    %c2_58 = arith.constant 2 : index
    %c0_59 = arith.constant 0 : index
    %c0_60 = arith.constant 0 : index
    %101 = vector.load %arg5[%c2_58, %c0_59, %c0_60] : memref<8x32x32xbf16, #tpu.memory_space<vmem>>, vector<1x32x32xbf16>
    %102 = vector.shape_cast %101 : vector<1x32x32xbf16> to vector<32x32xbf16>
    %cst_61 = arith.constant dense<0.000000e+00> : vector<144x32xf32>
    %103 = tpu.matmul %99, %102, %cst_61 {dimension_numbers = #tpu.dot_dimension_numbers<[1], [0], [0], [1], [0, 0, 1, 1], [], []>} : vector<144x32xbf16>, vector<32x32xbf16>, vector<144x32xf32> -> vector<144x32xf32>
    %c2_62 = arith.constant 2 : index
    %c0_63 = arith.constant 0 : index
    %c0_64 = arith.constant 0 : index
    %104 = vector.load %arg6[%c2_62, %c0_63, %c0_64] : memref<8x1x32xf32, #tpu.memory_space<vmem>>, vector<1x1x32xf32>
    %105 = vector.shape_cast %104 : vector<1x1x32xf32> to vector<1x32xf32>
    %106 = vector.broadcast %105 : vector<1x32xf32> to vector<144x32xf32>
    %107 = arith.addf %103, %106 : vector<144x32xf32>
    %108 = vector.extract_strided_slice %77 {offsets = [16, 0], sizes = [144, 32], strides = [1, 1]} : vector<160x32xbf16> to vector<144x32xbf16>
    %109 = arith.extf %108 : vector<144x32xbf16> to vector<144x32xf32>
    %c2_65 = arith.constant 2 : index
    %c0_66 = arith.constant 0 : index
    %c0_67 = arith.constant 0 : index
    %110 = vector.load %arg7[%c2_65, %c0_66, %c0_67] : memref<8x1x32xf32, #tpu.memory_space<vmem>>, vector<1x1x32xf32>
    %111 = vector.shape_cast %110 : vector<1x1x32xf32> to vector<1x32xf32>
    %112 = vector.broadcast %111 : vector<1x32xf32> to vector<144x32xf32>
    %113 = arith.mulf %109, %112 : vector<144x32xf32>
    %114 = arith.addf %107, %113 : vector<144x32xf32>
    %115 = arith.truncf %114 : vector<144x32xf32> to vector<144x32xbf16>
    %116 = vector.extract_strided_slice %115 {offsets = [0, 0], sizes = [112, 32], strides = [1, 1]} : vector<144x32xbf16> to vector<112x32xbf16>
    %117 = vector.extract_strided_slice %115 {offsets = [32, 0], sizes = [112, 32], strides = [1, 1]} : vector<144x32xbf16> to vector<112x32xbf16>
    %c3 = arith.constant 3 : index
    %c0_68 = arith.constant 0 : index
    %c0_69 = arith.constant 0 : index
    %118 = vector.load %arg2[%c3, %c0_68, %c0_69] : memref<8x32x64xbf16, #tpu.memory_space<vmem>>, vector<1x32x64xbf16>
    %119 = vector.shape_cast %118 : vector<1x32x64xbf16> to vector<32x64xbf16>
    %cst_70 = arith.constant dense<0.000000e+00> : vector<112x64xf32>
    %120 = tpu.matmul %116, %119, %cst_70 {dimension_numbers = #tpu.dot_dimension_numbers<[1], [0], [0], [1], [0, 0, 1, 1], [], []>} : vector<112x32xbf16>, vector<32x64xbf16>, vector<112x64xf32> -> vector<112x64xf32>
    %c3_71 = arith.constant 3 : index
    %c0_72 = arith.constant 0 : index
    %c0_73 = arith.constant 0 : index
    %121 = vector.load %arg3[%c3_71, %c0_72, %c0_73] : memref<8x32x64xbf16, #tpu.memory_space<vmem>>, vector<1x32x64xbf16>
    %122 = vector.shape_cast %121 : vector<1x32x64xbf16> to vector<32x64xbf16>
    %cst_74 = arith.constant dense<0.000000e+00> : vector<112x64xf32>
    %123 = tpu.matmul %117, %122, %cst_74 {dimension_numbers = #tpu.dot_dimension_numbers<[1], [0], [0], [1], [0, 0, 1, 1], [], []>} : vector<112x32xbf16>, vector<32x64xbf16>, vector<112x64xf32> -> vector<112x64xf32>
    %124 = arith.addf %120, %123 : vector<112x64xf32>
    %c3_75 = arith.constant 3 : index
    %c0_76 = arith.constant 0 : index
    %c0_77 = arith.constant 0 : index
    %125 = vector.load %arg4[%c3_75, %c0_76, %c0_77] : memref<8x1x64xf32, #tpu.memory_space<vmem>>, vector<1x1x64xf32>
    %126 = vector.shape_cast %125 : vector<1x1x64xf32> to vector<1x64xf32>
    %127 = vector.broadcast %126 : vector<1x64xf32> to vector<112x64xf32>
    %128 = arith.addf %124, %127 : vector<112x64xf32>
    %129 = math.tanh %128 : vector<112x64xf32>
    %130 = vector.extract_strided_slice %129 {offsets = [0, 0], sizes = [112, 32], strides = [1, 1]} : vector<112x64xf32> to vector<112x32xf32>
    %131 = vector.extract_strided_slice %129 {offsets = [0, 32], sizes = [112, 32], strides = [1, 1]} : vector<112x64xf32> to vector<112x32xf32>
    %cst_78 = arith.constant 1.000000e+00 : f32
    %132 = vector.broadcast %cst_78 : f32 to vector<112x32xf32>
    %133 = arith.addf %131, %132 : vector<112x32xf32>
    %cst_79 = arith.constant 5.000000e-01 : f32
    %134 = vector.broadcast %cst_79 : f32 to vector<112x32xf32>
    %135 = arith.mulf %134, %133 : vector<112x32xf32>
    %136 = arith.mulf %130, %135 : vector<112x32xf32>
    %137 = arith.truncf %136 : vector<112x32xf32> to vector<112x32xbf16>
    %138 = vector.extract_strided_slice %137 {offsets = [96, 0], sizes = [16, 32], strides = [1, 1]} : vector<112x32xbf16> to vector<16x32xbf16>
    %c3_80 = arith.constant 3 : index
    %c0_81 = arith.constant 0 : index
    %c0_82 = arith.constant 0 : index
    %139 = vector.load %arg5[%c3_80, %c0_81, %c0_82] : memref<8x32x32xbf16, #tpu.memory_space<vmem>>, vector<1x32x32xbf16>
    %140 = vector.shape_cast %139 : vector<1x32x32xbf16> to vector<32x32xbf16>
    %cst_83 = arith.constant dense<0.000000e+00> : vector<112x32xf32>
    %141 = tpu.matmul %137, %140, %cst_83 {dimension_numbers = #tpu.dot_dimension_numbers<[1], [0], [0], [1], [0, 0, 1, 1], [], []>} : vector<112x32xbf16>, vector<32x32xbf16>, vector<112x32xf32> -> vector<112x32xf32>
    %c3_84 = arith.constant 3 : index
    %c0_85 = arith.constant 0 : index
    %c0_86 = arith.constant 0 : index
    %142 = vector.load %arg6[%c3_84, %c0_85, %c0_86] : memref<8x1x32xf32, #tpu.memory_space<vmem>>, vector<1x1x32xf32>
    %143 = vector.shape_cast %142 : vector<1x1x32xf32> to vector<1x32xf32>
    %144 = vector.broadcast %143 : vector<1x32xf32> to vector<112x32xf32>
    %145 = arith.addf %141, %144 : vector<112x32xf32>
    %146 = vector.extract_strided_slice %115 {offsets = [32, 0], sizes = [112, 32], strides = [1, 1]} : vector<144x32xbf16> to vector<112x32xbf16>
    %147 = arith.extf %146 : vector<112x32xbf16> to vector<112x32xf32>
    %c3_87 = arith.constant 3 : index
    %c0_88 = arith.constant 0 : index
    %c0_89 = arith.constant 0 : index
    %148 = vector.load %arg7[%c3_87, %c0_88, %c0_89] : memref<8x1x32xf32, #tpu.memory_space<vmem>>, vector<1x1x32xf32>
    %149 = vector.shape_cast %148 : vector<1x1x32xf32> to vector<1x32xf32>
    %150 = vector.broadcast %149 : vector<1x32xf32> to vector<112x32xf32>
    %151 = arith.mulf %147, %150 : vector<112x32xf32>
    %152 = arith.addf %145, %151 : vector<112x32xf32>
    %153 = arith.truncf %152 : vector<112x32xf32> to vector<112x32xbf16>
    %154 = vector.extract_strided_slice %153 {offsets = [0, 0], sizes = [96, 32], strides = [1, 1]} : vector<112x32xbf16> to vector<96x32xbf16>
    %155 = vector.extract_strided_slice %153 {offsets = [16, 0], sizes = [96, 32], strides = [1, 1]} : vector<112x32xbf16> to vector<96x32xbf16>
    %c4 = arith.constant 4 : index
    %c0_90 = arith.constant 0 : index
    %c0_91 = arith.constant 0 : index
    %156 = vector.load %arg2[%c4, %c0_90, %c0_91] : memref<8x32x64xbf16, #tpu.memory_space<vmem>>, vector<1x32x64xbf16>
    %157 = vector.shape_cast %156 : vector<1x32x64xbf16> to vector<32x64xbf16>
    %cst_92 = arith.constant dense<0.000000e+00> : vector<96x64xf32>
    %158 = tpu.matmul %154, %157, %cst_92 {dimension_numbers = #tpu.dot_dimension_numbers<[1], [0], [0], [1], [0, 0, 1, 1], [], []>} : vector<96x32xbf16>, vector<32x64xbf16>, vector<96x64xf32> -> vector<96x64xf32>
    %c4_93 = arith.constant 4 : index
    %c0_94 = arith.constant 0 : index
    %c0_95 = arith.constant 0 : index
    %159 = vector.load %arg3[%c4_93, %c0_94, %c0_95] : memref<8x32x64xbf16, #tpu.memory_space<vmem>>, vector<1x32x64xbf16>
    %160 = vector.shape_cast %159 : vector<1x32x64xbf16> to vector<32x64xbf16>
    %cst_96 = arith.constant dense<0.000000e+00> : vector<96x64xf32>
    %161 = tpu.matmul %155, %160, %cst_96 {dimension_numbers = #tpu.dot_dimension_numbers<[1], [0], [0], [1], [0, 0, 1, 1], [], []>} : vector<96x32xbf16>, vector<32x64xbf16>, vector<96x64xf32> -> vector<96x64xf32>
    %162 = arith.addf %158, %161 : vector<96x64xf32>
    %c4_97 = arith.constant 4 : index
    %c0_98 = arith.constant 0 : index
    %c0_99 = arith.constant 0 : index
    %163 = vector.load %arg4[%c4_97, %c0_98, %c0_99] : memref<8x1x64xf32, #tpu.memory_space<vmem>>, vector<1x1x64xf32>
    %164 = vector.shape_cast %163 : vector<1x1x64xf32> to vector<1x64xf32>
    %165 = vector.broadcast %164 : vector<1x64xf32> to vector<96x64xf32>
    %166 = arith.addf %162, %165 : vector<96x64xf32>
    %167 = math.tanh %166 : vector<96x64xf32>
    %168 = vector.extract_strided_slice %167 {offsets = [0, 0], sizes = [96, 32], strides = [1, 1]} : vector<96x64xf32> to vector<96x32xf32>
    %169 = vector.extract_strided_slice %167 {offsets = [0, 32], sizes = [96, 32], strides = [1, 1]} : vector<96x64xf32> to vector<96x32xf32>
    %cst_100 = arith.constant 1.000000e+00 : f32
    %170 = vector.broadcast %cst_100 : f32 to vector<96x32xf32>
    %171 = arith.addf %169, %170 : vector<96x32xf32>
    %cst_101 = arith.constant 5.000000e-01 : f32
    %172 = vector.broadcast %cst_101 : f32 to vector<96x32xf32>
    %173 = arith.mulf %172, %171 : vector<96x32xf32>
    %174 = arith.mulf %168, %173 : vector<96x32xf32>
    %175 = arith.truncf %174 : vector<96x32xf32> to vector<96x32xbf16>
    %176 = vector.extract_strided_slice %175 {offsets = [80, 0], sizes = [16, 32], strides = [1, 1]} : vector<96x32xbf16> to vector<16x32xbf16>
    %c4_102 = arith.constant 4 : index
    %c0_103 = arith.constant 0 : index
    %c0_104 = arith.constant 0 : index
    %177 = vector.load %arg5[%c4_102, %c0_103, %c0_104] : memref<8x32x32xbf16, #tpu.memory_space<vmem>>, vector<1x32x32xbf16>
    %178 = vector.shape_cast %177 : vector<1x32x32xbf16> to vector<32x32xbf16>
    %cst_105 = arith.constant dense<0.000000e+00> : vector<96x32xf32>
    %179 = tpu.matmul %175, %178, %cst_105 {dimension_numbers = #tpu.dot_dimension_numbers<[1], [0], [0], [1], [0, 0, 1, 1], [], []>} : vector<96x32xbf16>, vector<32x32xbf16>, vector<96x32xf32> -> vector<96x32xf32>
    %c4_106 = arith.constant 4 : index
    %c0_107 = arith.constant 0 : index
    %c0_108 = arith.constant 0 : index
    %180 = vector.load %arg6[%c4_106, %c0_107, %c0_108] : memref<8x1x32xf32, #tpu.memory_space<vmem>>, vector<1x1x32xf32>
    %181 = vector.shape_cast %180 : vector<1x1x32xf32> to vector<1x32xf32>
    %182 = vector.broadcast %181 : vector<1x32xf32> to vector<96x32xf32>
    %183 = arith.addf %179, %182 : vector<96x32xf32>
    %184 = vector.extract_strided_slice %153 {offsets = [16, 0], sizes = [96, 32], strides = [1, 1]} : vector<112x32xbf16> to vector<96x32xbf16>
    %185 = arith.extf %184 : vector<96x32xbf16> to vector<96x32xf32>
    %c4_109 = arith.constant 4 : index
    %c0_110 = arith.constant 0 : index
    %c0_111 = arith.constant 0 : index
    %186 = vector.load %arg7[%c4_109, %c0_110, %c0_111] : memref<8x1x32xf32, #tpu.memory_space<vmem>>, vector<1x1x32xf32>
    %187 = vector.shape_cast %186 : vector<1x1x32xf32> to vector<1x32xf32>
    %188 = vector.broadcast %187 : vector<1x32xf32> to vector<96x32xf32>
    %189 = arith.mulf %185, %188 : vector<96x32xf32>
    %190 = arith.addf %183, %189 : vector<96x32xf32>
    %191 = arith.truncf %190 : vector<96x32xf32> to vector<96x32xbf16>
    %192 = vector.extract_strided_slice %191 {offsets = [0, 0], sizes = [64, 32], strides = [1, 1]} : vector<96x32xbf16> to vector<64x32xbf16>
    %193 = vector.extract_strided_slice %191 {offsets = [32, 0], sizes = [64, 32], strides = [1, 1]} : vector<96x32xbf16> to vector<64x32xbf16>
    %c5 = arith.constant 5 : index
    %c0_112 = arith.constant 0 : index
    %c0_113 = arith.constant 0 : index
    %194 = vector.load %arg2[%c5, %c0_112, %c0_113] : memref<8x32x64xbf16, #tpu.memory_space<vmem>>, vector<1x32x64xbf16>
    %195 = vector.shape_cast %194 : vector<1x32x64xbf16> to vector<32x64xbf16>
    %cst_114 = arith.constant dense<0.000000e+00> : vector<64x64xf32>
    %196 = tpu.matmul %192, %195, %cst_114 {dimension_numbers = #tpu.dot_dimension_numbers<[1], [0], [0], [1], [0, 0, 1, 1], [], []>} : vector<64x32xbf16>, vector<32x64xbf16>, vector<64x64xf32> -> vector<64x64xf32>
    %c5_115 = arith.constant 5 : index
    %c0_116 = arith.constant 0 : index
    %c0_117 = arith.constant 0 : index
    %197 = vector.load %arg3[%c5_115, %c0_116, %c0_117] : memref<8x32x64xbf16, #tpu.memory_space<vmem>>, vector<1x32x64xbf16>
    %198 = vector.shape_cast %197 : vector<1x32x64xbf16> to vector<32x64xbf16>
    %cst_118 = arith.constant dense<0.000000e+00> : vector<64x64xf32>
    %199 = tpu.matmul %193, %198, %cst_118 {dimension_numbers = #tpu.dot_dimension_numbers<[1], [0], [0], [1], [0, 0, 1, 1], [], []>} : vector<64x32xbf16>, vector<32x64xbf16>, vector<64x64xf32> -> vector<64x64xf32>
    %200 = arith.addf %196, %199 : vector<64x64xf32>
    %c5_119 = arith.constant 5 : index
    %c0_120 = arith.constant 0 : index
    %c0_121 = arith.constant 0 : index
    %201 = vector.load %arg4[%c5_119, %c0_120, %c0_121] : memref<8x1x64xf32, #tpu.memory_space<vmem>>, vector<1x1x64xf32>
    %202 = vector.shape_cast %201 : vector<1x1x64xf32> to vector<1x64xf32>
    %203 = vector.broadcast %202 : vector<1x64xf32> to vector<64x64xf32>
    %204 = arith.addf %200, %203 : vector<64x64xf32>
    %205 = math.tanh %204 : vector<64x64xf32>
    %206 = vector.extract_strided_slice %205 {offsets = [0, 0], sizes = [64, 32], strides = [1, 1]} : vector<64x64xf32> to vector<64x32xf32>
    %207 = vector.extract_strided_slice %205 {offsets = [0, 32], sizes = [64, 32], strides = [1, 1]} : vector<64x64xf32> to vector<64x32xf32>
    %cst_122 = arith.constant 1.000000e+00 : f32
    %208 = vector.broadcast %cst_122 : f32 to vector<64x32xf32>
    %209 = arith.addf %207, %208 : vector<64x32xf32>
    %cst_123 = arith.constant 5.000000e-01 : f32
    %210 = vector.broadcast %cst_123 : f32 to vector<64x32xf32>
    %211 = arith.mulf %210, %209 : vector<64x32xf32>
    %212 = arith.mulf %206, %211 : vector<64x32xf32>
    %213 = arith.truncf %212 : vector<64x32xf32> to vector<64x32xbf16>
    %214 = vector.extract_strided_slice %213 {offsets = [48, 0], sizes = [16, 32], strides = [1, 1]} : vector<64x32xbf16> to vector<16x32xbf16>
    %c5_124 = arith.constant 5 : index
    %c0_125 = arith.constant 0 : index
    %c0_126 = arith.constant 0 : index
    %215 = vector.load %arg5[%c5_124, %c0_125, %c0_126] : memref<8x32x32xbf16, #tpu.memory_space<vmem>>, vector<1x32x32xbf16>
    %216 = vector.shape_cast %215 : vector<1x32x32xbf16> to vector<32x32xbf16>
    %cst_127 = arith.constant dense<0.000000e+00> : vector<64x32xf32>
    %217 = tpu.matmul %213, %216, %cst_127 {dimension_numbers = #tpu.dot_dimension_numbers<[1], [0], [0], [1], [0, 0, 1, 1], [], []>} : vector<64x32xbf16>, vector<32x32xbf16>, vector<64x32xf32> -> vector<64x32xf32>
    %c5_128 = arith.constant 5 : index
    %c0_129 = arith.constant 0 : index
    %c0_130 = arith.constant 0 : index
    %218 = vector.load %arg6[%c5_128, %c0_129, %c0_130] : memref<8x1x32xf32, #tpu.memory_space<vmem>>, vector<1x1x32xf32>
    %219 = vector.shape_cast %218 : vector<1x1x32xf32> to vector<1x32xf32>
    %220 = vector.broadcast %219 : vector<1x32xf32> to vector<64x32xf32>
    %221 = arith.addf %217, %220 : vector<64x32xf32>
    %222 = vector.extract_strided_slice %191 {offsets = [32, 0], sizes = [64, 32], strides = [1, 1]} : vector<96x32xbf16> to vector<64x32xbf16>
    %223 = arith.extf %222 : vector<64x32xbf16> to vector<64x32xf32>
    %c5_131 = arith.constant 5 : index
    %c0_132 = arith.constant 0 : index
    %c0_133 = arith.constant 0 : index
    %224 = vector.load %arg7[%c5_131, %c0_132, %c0_133] : memref<8x1x32xf32, #tpu.memory_space<vmem>>, vector<1x1x32xf32>
    %225 = vector.shape_cast %224 : vector<1x1x32xf32> to vector<1x32xf32>
    %226 = vector.broadcast %225 : vector<1x32xf32> to vector<64x32xf32>
    %227 = arith.mulf %223, %226 : vector<64x32xf32>
    %228 = arith.addf %221, %227 : vector<64x32xf32>
    %229 = arith.truncf %228 : vector<64x32xf32> to vector<64x32xbf16>
    %230 = vector.extract_strided_slice %229 {offsets = [0, 0], sizes = [48, 32], strides = [1, 1]} : vector<64x32xbf16> to vector<48x32xbf16>
    %231 = vector.extract_strided_slice %229 {offsets = [16, 0], sizes = [48, 32], strides = [1, 1]} : vector<64x32xbf16> to vector<48x32xbf16>
    %c6 = arith.constant 6 : index
    %c0_134 = arith.constant 0 : index
    %c0_135 = arith.constant 0 : index
    %232 = vector.load %arg2[%c6, %c0_134, %c0_135] : memref<8x32x64xbf16, #tpu.memory_space<vmem>>, vector<1x32x64xbf16>
    %233 = vector.shape_cast %232 : vector<1x32x64xbf16> to vector<32x64xbf16>
    %cst_136 = arith.constant dense<0.000000e+00> : vector<48x64xf32>
    %234 = tpu.matmul %230, %233, %cst_136 {dimension_numbers = #tpu.dot_dimension_numbers<[1], [0], [0], [1], [0, 0, 1, 1], [], []>} : vector<48x32xbf16>, vector<32x64xbf16>, vector<48x64xf32> -> vector<48x64xf32>
    %c6_137 = arith.constant 6 : index
    %c0_138 = arith.constant 0 : index
    %c0_139 = arith.constant 0 : index
    %235 = vector.load %arg3[%c6_137, %c0_138, %c0_139] : memref<8x32x64xbf16, #tpu.memory_space<vmem>>, vector<1x32x64xbf16>
    %236 = vector.shape_cast %235 : vector<1x32x64xbf16> to vector<32x64xbf16>
    %cst_140 = arith.constant dense<0.000000e+00> : vector<48x64xf32>
    %237 = tpu.matmul %231, %236, %cst_140 {dimension_numbers = #tpu.dot_dimension_numbers<[1], [0], [0], [1], [0, 0, 1, 1], [], []>} : vector<48x32xbf16>, vector<32x64xbf16>, vector<48x64xf32> -> vector<48x64xf32>
    %238 = arith.addf %234, %237 : vector<48x64xf32>
    %c6_141 = arith.constant 6 : index
    %c0_142 = arith.constant 0 : index
    %c0_143 = arith.constant 0 : index
    %239 = vector.load %arg4[%c6_141, %c0_142, %c0_143] : memref<8x1x64xf32, #tpu.memory_space<vmem>>, vector<1x1x64xf32>
    %240 = vector.shape_cast %239 : vector<1x1x64xf32> to vector<1x64xf32>
    %241 = vector.broadcast %240 : vector<1x64xf32> to vector<48x64xf32>
    %242 = arith.addf %238, %241 : vector<48x64xf32>
    %243 = math.tanh %242 : vector<48x64xf32>
    %244 = vector.extract_strided_slice %243 {offsets = [0, 0], sizes = [48, 32], strides = [1, 1]} : vector<48x64xf32> to vector<48x32xf32>
    %245 = vector.extract_strided_slice %243 {offsets = [0, 32], sizes = [48, 32], strides = [1, 1]} : vector<48x64xf32> to vector<48x32xf32>
    %cst_144 = arith.constant 1.000000e+00 : f32
    %246 = vector.broadcast %cst_144 : f32 to vector<48x32xf32>
    %247 = arith.addf %245, %246 : vector<48x32xf32>
    %cst_145 = arith.constant 5.000000e-01 : f32
    %248 = vector.broadcast %cst_145 : f32 to vector<48x32xf32>
    %249 = arith.mulf %248, %247 : vector<48x32xf32>
    %250 = arith.mulf %244, %249 : vector<48x32xf32>
    %251 = arith.truncf %250 : vector<48x32xf32> to vector<48x32xbf16>
    %252 = vector.extract_strided_slice %251 {offsets = [32, 0], sizes = [16, 32], strides = [1, 1]} : vector<48x32xbf16> to vector<16x32xbf16>
    %c6_146 = arith.constant 6 : index
    %c0_147 = arith.constant 0 : index
    %c0_148 = arith.constant 0 : index
    %253 = vector.load %arg5[%c6_146, %c0_147, %c0_148] : memref<8x32x32xbf16, #tpu.memory_space<vmem>>, vector<1x32x32xbf16>
    %254 = vector.shape_cast %253 : vector<1x32x32xbf16> to vector<32x32xbf16>
    %cst_149 = arith.constant dense<0.000000e+00> : vector<48x32xf32>
    %255 = tpu.matmul %251, %254, %cst_149 {dimension_numbers = #tpu.dot_dimension_numbers<[1], [0], [0], [1], [0, 0, 1, 1], [], []>} : vector<48x32xbf16>, vector<32x32xbf16>, vector<48x32xf32> -> vector<48x32xf32>
    %c6_150 = arith.constant 6 : index
    %c0_151 = arith.constant 0 : index
    %c0_152 = arith.constant 0 : index
    %256 = vector.load %arg6[%c6_150, %c0_151, %c0_152] : memref<8x1x32xf32, #tpu.memory_space<vmem>>, vector<1x1x32xf32>
    %257 = vector.shape_cast %256 : vector<1x1x32xf32> to vector<1x32xf32>
    %258 = vector.broadcast %257 : vector<1x32xf32> to vector<48x32xf32>
    %259 = arith.addf %255, %258 : vector<48x32xf32>
    %260 = vector.extract_strided_slice %229 {offsets = [16, 0], sizes = [48, 32], strides = [1, 1]} : vector<64x32xbf16> to vector<48x32xbf16>
    %261 = arith.extf %260 : vector<48x32xbf16> to vector<48x32xf32>
    %c6_153 = arith.constant 6 : index
    %c0_154 = arith.constant 0 : index
    %c0_155 = arith.constant 0 : index
    %262 = vector.load %arg7[%c6_153, %c0_154, %c0_155] : memref<8x1x32xf32, #tpu.memory_space<vmem>>, vector<1x1x32xf32>
    %263 = vector.shape_cast %262 : vector<1x1x32xf32> to vector<1x32xf32>
    %264 = vector.broadcast %263 : vector<1x32xf32> to vector<48x32xf32>
    %265 = arith.mulf %261, %264 : vector<48x32xf32>
    %266 = arith.addf %259, %265 : vector<48x32xf32>
    %267 = arith.truncf %266 : vector<48x32xf32> to vector<48x32xbf16>
    %268 = vector.extract_strided_slice %267 {offsets = [0, 0], sizes = [16, 32], strides = [1, 1]} : vector<48x32xbf16> to vector<16x32xbf16>
    %269 = vector.extract_strided_slice %267 {offsets = [32, 0], sizes = [16, 32], strides = [1, 1]} : vector<48x32xbf16> to vector<16x32xbf16>
    %c7 = arith.constant 7 : index
    %c0_156 = arith.constant 0 : index
    %c0_157 = arith.constant 0 : index
    %270 = vector.load %arg2[%c7, %c0_156, %c0_157] : memref<8x32x64xbf16, #tpu.memory_space<vmem>>, vector<1x32x64xbf16>
    %271 = vector.shape_cast %270 : vector<1x32x64xbf16> to vector<32x64xbf16>
    %cst_158 = arith.constant dense<0.000000e+00> : vector<16x64xf32>
    %272 = tpu.matmul %268, %271, %cst_158 {dimension_numbers = #tpu.dot_dimension_numbers<[1], [0], [0], [1], [0, 0, 1, 1], [], []>} : vector<16x32xbf16>, vector<32x64xbf16>, vector<16x64xf32> -> vector<16x64xf32>
    %c7_159 = arith.constant 7 : index
    %c0_160 = arith.constant 0 : index
    %c0_161 = arith.constant 0 : index
    %273 = vector.load %arg3[%c7_159, %c0_160, %c0_161] : memref<8x32x64xbf16, #tpu.memory_space<vmem>>, vector<1x32x64xbf16>
    %274 = vector.shape_cast %273 : vector<1x32x64xbf16> to vector<32x64xbf16>
    %cst_162 = arith.constant dense<0.000000e+00> : vector<16x64xf32>
    %275 = tpu.matmul %269, %274, %cst_162 {dimension_numbers = #tpu.dot_dimension_numbers<[1], [0], [0], [1], [0, 0, 1, 1], [], []>} : vector<16x32xbf16>, vector<32x64xbf16>, vector<16x64xf32> -> vector<16x64xf32>
    %276 = arith.addf %272, %275 : vector<16x64xf32>
    %c7_163 = arith.constant 7 : index
    %c0_164 = arith.constant 0 : index
    %c0_165 = arith.constant 0 : index
    %277 = vector.load %arg4[%c7_163, %c0_164, %c0_165] : memref<8x1x64xf32, #tpu.memory_space<vmem>>, vector<1x1x64xf32>
    %278 = vector.shape_cast %277 : vector<1x1x64xf32> to vector<1x64xf32>
    %279 = vector.broadcast %278 : vector<1x64xf32> to vector<16x64xf32>
    %280 = arith.addf %276, %279 : vector<16x64xf32>
    %281 = math.tanh %280 : vector<16x64xf32>
    %282 = vector.extract_strided_slice %281 {offsets = [0, 0], sizes = [16, 32], strides = [1, 1]} : vector<16x64xf32> to vector<16x32xf32>
    %283 = vector.extract_strided_slice %281 {offsets = [0, 32], sizes = [16, 32], strides = [1, 1]} : vector<16x64xf32> to vector<16x32xf32>
    %cst_166 = arith.constant 1.000000e+00 : f32
    %284 = vector.broadcast %cst_166 : f32 to vector<16x32xf32>
    %285 = arith.addf %283, %284 : vector<16x32xf32>
    %cst_167 = arith.constant 5.000000e-01 : f32
    %286 = vector.broadcast %cst_167 : f32 to vector<16x32xf32>
    %287 = arith.mulf %286, %285 : vector<16x32xf32>
    %288 = arith.mulf %282, %287 : vector<16x32xf32>
    %289 = arith.truncf %288 : vector<16x32xf32> to vector<16x32xbf16>
    %290 = tpu.concatenate %24, %62, %100, %138, %176, %214, %252, %289 in 1 : vector<16x32xbf16>, vector<16x32xbf16>, vector<16x32xbf16>, vector<16x32xbf16>, vector<16x32xbf16>, vector<16x32xbf16>, vector<16x32xbf16>, vector<16x32xbf16> -> vector<16x256xbf16>
    %c0_168 = arith.constant 0 : index
    %c0_169 = arith.constant 0 : index
    %291 = vector.load %arg8[%c0_168, %c0_169] : memref<256x256xbf16, #tpu.memory_space<vmem>>, vector<256x256xbf16>
    %cst_170 = arith.constant dense<0.000000e+00> : vector<16x256xf32>
    %292 = tpu.matmul %290, %291, %cst_170 {dimension_numbers = #tpu.dot_dimension_numbers<[1], [0], [0], [1], [0, 0, 1, 1], [], []>} : vector<16x256xbf16>, vector<256x256xbf16>, vector<16x256xf32> -> vector<16x256xf32>
    %c0_171 = arith.constant 0 : index
    %c0_172 = arith.constant 0 : index
    %293 = vector.load %arg9[%c0_171, %c0_172] : memref<1x256xf32, #tpu.memory_space<vmem>>, vector<1x256xf32>
    %294 = vector.broadcast %293 : vector<1x256xf32> to vector<16x256xf32>
    %295 = arith.addf %292, %294 : vector<16x256xf32>
    %cst_173 = arith.constant 0.000000e+00 : f32
    %296 = vector.broadcast %cst_173 : f32 to vector<16x256xf32>
    %297 = arith.maximumf %295, %296 : vector<16x256xf32>
    %298 = arith.truncf %297 : vector<16x256xf32> to vector<16x256xbf16>
    %c0_174 = arith.constant 0 : index
    %c0_175 = arith.constant 0 : index
    %299 = vector.load %arg10[%c0_174, %c0_175] : memref<256x512xbf16, #tpu.memory_space<vmem>>, vector<256x512xbf16>
    %cst_176 = arith.constant dense<0.000000e+00> : vector<16x512xf32>
    %300 = tpu.matmul %298, %299, %cst_176 {dimension_numbers = #tpu.dot_dimension_numbers<[1], [0], [0], [1], [0, 0, 1, 1], [], []>} : vector<16x256xbf16>, vector<256x512xbf16>, vector<16x512xf32> -> vector<16x512xf32>
    %c0_177 = arith.constant 0 : index
    %c0_178 = arith.constant 0 : index
    %301 = vector.load %arg11[%c0_177, %c0_178] : memref<1x512xf32, #tpu.memory_space<vmem>>, vector<1x512xf32>
    %302 = vector.broadcast %301 : vector<1x512xf32> to vector<16x512xf32>
    %303 = arith.addf %300, %302 : vector<16x512xf32>
    %cst_179 = arith.constant 0.000000e+00 : f32
    %304 = vector.broadcast %cst_179 : f32 to vector<16x512xf32>
    %305 = arith.maximumf %303, %304 : vector<16x512xf32>
    %306 = arith.truncf %305 : vector<16x512xf32> to vector<16x512xbf16>
    %c0_180 = arith.constant 0 : index
    %c0_181 = arith.constant 0 : index
    %307 = vector.load %arg12[%c0_180, %c0_181] : memref<512x128xbf16, #tpu.memory_space<vmem>>, vector<512x128xbf16>
    %cst_182 = arith.constant dense<0.000000e+00> : vector<16x128xf32>
    %308 = tpu.matmul %306, %307, %cst_182 {dimension_numbers = #tpu.dot_dimension_numbers<[1], [0], [0], [1], [0, 0, 1, 1], [], []>} : vector<16x512xbf16>, vector<512x128xbf16>, vector<16x128xf32> -> vector<16x128xf32>
    %c0_183 = arith.constant 0 : index
    %c0_184 = arith.constant 0 : index
    %309 = vector.load %arg13[%c0_183, %c0_184] : memref<1x128xf32, #tpu.memory_space<vmem>>, vector<1x128xf32>
    %310 = vector.broadcast %309 : vector<1x128xf32> to vector<16x128xf32>
    %311 = arith.addf %308, %310 : vector<16x128xf32>
    %312 = vector.shape_cast %311 : vector<16x128xf32> to vector<1x16x128xf32>
    %c0_185 = arith.constant 0 : index
    %c0_186 = arith.constant 0 : index
    %c0_187 = arith.constant 0 : index
    %313 = vector.load %arg14[%c0_185, %c0_186, %c0_187] : memref<1x16x128xf32, #tpu.memory_space<vmem>>, vector<1x16x128xf32>
    tpu.vector_store %arg14[%c0_185, %c0_186, %c0_187], %312 {strides = array<i32>} : memref<1x16x128xf32, #tpu.memory_space<vmem>>, vector<1x16x128xf32>,
    return
  }
  func.func @transform_0(%arg0: i32) -> (i32, i32, i32) {
    %c0_i32 = arith.constant 0 : i32
    %c0_i32_0 = arith.constant 0 : i32
    %c0_i32_1 = arith.constant 0 : i32
    return %c0_i32, %arg0, %c0_i32_0 : i32, i32, i32
  }
  func.func @transform_1(%arg0: i32) -> (i32, i32, i32) {
    %c0_i32 = arith.constant 0 : i32
    %c0_i32_0 = arith.constant 0 : i32
    %c0_i32_1 = arith.constant 0 : i32
    %c0_i32_2 = arith.constant 0 : i32
    return %c0_i32, %c0_i32_0, %c0_i32_1 : i32, i32, i32
  }
  func.func @transform_2(%arg0: i32) -> (i32, i32, i32) {
    %c0_i32 = arith.constant 0 : i32
    %c0_i32_0 = arith.constant 0 : i32
    %c0_i32_1 = arith.constant 0 : i32
    %c0_i32_2 = arith.constant 0 : i32
    return %c0_i32, %c0_i32_0, %c0_i32_1 : i32, i32, i32
  }
  func.func @transform_3(%arg0: i32) -> (i32, i32, i32) {
    %c0_i32 = arith.constant 0 : i32
    %c0_i32_0 = arith.constant 0 : i32
    %c0_i32_1 = arith.constant 0 : i32
    %c0_i32_2 = arith.constant 0 : i32
    return %c0_i32, %c0_i32_0, %c0_i32_1 : i32, i32, i32
  }
  func.func @transform_4(%arg0: i32) -> (i32, i32, i32) {
    %c0_i32 = arith.constant 0 : i32
    %c0_i32_0 = arith.constant 0 : i32
    %c0_i32_1 = arith.constant 0 : i32
    %c0_i32_2 = arith.constant 0 : i32
    return %c0_i32, %c0_i32_0, %c0_i32_1 : i32, i32, i32
  }
  func.func @transform_5(%arg0: i32) -> (i32, i32, i32) {
    %c0_i32 = arith.constant 0 : i32
    %c0_i32_0 = arith.constant 0 : i32
    %c0_i32_1 = arith.constant 0 : i32
    %c0_i32_2 = arith.constant 0 : i32
    return %c0_i32, %c0_i32_0, %c0_i32_1 : i32, i32, i32
  }
  func.func @transform_6(%arg0: i32) -> (i32, i32, i32) {
    %c0_i32 = arith.constant 0 : i32
    %c0_i32_0 = arith.constant 0 : i32
    %c0_i32_1 = arith.constant 0 : i32
    %c0_i32_2 = arith.constant 0 : i32
    return %c0_i32, %c0_i32_0, %c0_i32_1 : i32, i32, i32
  }
  func.func @transform_7(%arg0: i32) -> (i32, i32) {
    %c0_i32 = arith.constant 0 : i32
    %c0_i32_0 = arith.constant 0 : i32
    %c0_i32_1 = arith.constant 0 : i32
    return %c0_i32, %c0_i32_0 : i32, i32
  }
  func.func @transform_8(%arg0: i32) -> (i32, i32) {
    %c0_i32 = arith.constant 0 : i32
    %c0_i32_0 = arith.constant 0 : i32
    %c0_i32_1 = arith.constant 0 : i32
    return %c0_i32, %c0_i32_0 : i32, i32
  }
  func.func @transform_9(%arg0: i32) -> (i32, i32) {
    %c0_i32 = arith.constant 0 : i32
    %c0_i32_0 = arith.constant 0 : i32
    %c0_i32_1 = arith.constant 0 : i32
    return %c0_i32, %c0_i32_0 : i32, i32
  }
  func.func @transform_10(%arg0: i32) -> (i32, i32) {
    %c0_i32 = arith.constant 0 : i32
    %c0_i32_0 = arith.constant 0 : i32
    %c0_i32_1 = arith.constant 0 : i32
    return %c0_i32, %c0_i32_0 : i32, i32
  }
  func.func @transform_11(%arg0: i32) -> (i32, i32) {
    %c0_i32 = arith.constant 0 : i32
    %c0_i32_0 = arith.constant 0 : i32
    %c0_i32_1 = arith.constant 0 : i32
    return %c0_i32, %c0_i32_0 : i32, i32
  }
  func.func @transform_12(%arg0: i32) -> (i32, i32) {
    %c0_i32 = arith.constant 0 : i32
    %c0_i32_0 = arith.constant 0 : i32
    %c0_i32_1 = arith.constant 0 : i32
    return %c0_i32, %c0_i32_0 : i32, i32
  }
  func.func @transform_13(%arg0: i32) -> (i32, i32, i32) {
    %c0_i32 = arith.constant 0 : i32
    %c0_i32_0 = arith.constant 0 : i32
    %c0_i32_1 = arith.constant 0 : i32
    return %c0_i32, %arg0, %c0_i32_0 : i32, i32, i32
  }
}

</mosaic_0001>

<bundles_post_ra>
// kernel: tpu_custom_call.1
= control target key start
LH: loop header
LB: loop body
LE: loop exit
PB: predicated region body
PF: predicated region fallthrough
CT: control target
= control target key end

     0   :  { %18 = vsyncpa [#allocation3], 0  ;;  %s9152_s0 = inlined_call_operand.hbm [shape: bf16[13,16,32], index: 0, kind: input, shape index: {}]   ;;  %s9153_s1 = inlined_call_operand.hbm [shape: bf16[8,32,64], index: 1, kind: input, shape index: {}]   ;;  %s9154_s2 = inlined_call_operand.hbm [shape: bf16[8,32,64], index: 2, kind: input, shape index: {}]   ;;  %s9155_s3 = inlined_call_operand.vmem [shape: f32[8,1,64], index: 3, kind: input, shape index: {}]   ;;  %s9156_s4 = inlined_call_operand.hbm [shape: bf16[8,32,32], index: 4, kind: input, shape index: {}]   ;;  %s9157_s5 = inlined_call_operand.vmem [shape: f32[8,1,32], index: 5, kind: input, shape index: {}]   ;;  %s9158_s6 = inlined_call_operand.hbm [shape: f32[8,1,32], index: 6, kind: input, shape index: {}]   ;;  %s9159_s7 = inlined_call_operand.hbm [shape: bf16[256,256], index: 7, kind: input, shape index: {}]   ;;  %s9160_s8 = inlined_call_operand.vmem [shape: f32[1,256], index: 8, kind: input, shape index: {}]   ;;  %s9161_s9 = inlined_call_operand.hbm [shape: bf16[256,512], index: 9, kind: input, shape index: {}]   ;;  %s9162_s10 = inlined_call_operand.vmem [shape: f32[1,512], index: 10, kind: input, shape index: {}]   ;;  %s9163_s11 = inlined_call_operand.hbm [shape: bf16[512,128], index: 11, kind: input, shape index: {}]   ;;  %s9164_s12 = inlined_call_operand.vmem [shape: f32[1,128], index: 12, kind: input, shape index: {}]   ;;  %s9165_s13 = inlined_call_operand.hbm [shape: f32[1,16,128], index: 13, kind: output, shape index: {}]  }
   0x1   :  { %19 = vsyncpa [#allocation6], 0 }
   0x2   :  { %20 = vsyncpa [#allocation9], 0 }
   0x3   :  { %21 = vsyncpa [#allocation12], 0 }
   0x4   :  { %22 = vsyncpa [#allocation15], 0 }
   0x5   :  { %23 = vsyncpa [#allocation4], 0  ;;  %s7548_s25 = smov [#allocation5]   ;;  %s7549_s27 = smov [#allocation8]  }
   0x6   :  { %s41_s26 = sshll.u32 %s7548_s25, 4  ;;  %s67_s28 = sshll.u32 %s7549_s27, 4  ;;  %s42_s26 = int_to_ptr.vmem [resolvable:$true] %s41_s26  ;;  %s7638_s28 = int_to_ptr.vmem [resolvable:$true] %s67_s28 }
   0x7   :  { %s7338_s14 = scalar_lea.hbm %s9153_s1, 2048 }
   0x8   :  { %p7339_p0 = scmp.ne.s32.totalorder %s9153_s1, %s7338_s14  ;;  %p7342_p1 = scmp.lt.u32.totalorder %s7338_s14, %s9153_s1 }
   0xa   :  { %p7344_p2 = pnand %p7342_p1, %p7339_p0 }
   0xc   :  { %7347 = shalt.err (!%p7344_p2)
}
   0xd   :  { %s7348_s19 = scalar_lea.vmem %s42_s26, 2048  ;;  %p7353_p4 = scmp.lt.s32.totalorder %s42_s26, %s42_s26 }
   0xe   :  { %p7349_p3 = scmp.ne.s32.totalorder %s42_s26, %s7348_s19  ;;  %p7354_p5 = scmp.lt.s32.totalorder %s7348_s19, %s7348_s19 }
  0x10   :  { %p7355_p6 = por %p7354_p5, %p7353_p4 }
  0x12   :  { %p7356_p7 = pnand %p7355_p6, %p7349_p3 }
  0x14   :  { %7359 = shalt.err (!%p7356_p7)
}
  0x15   :  { %s7550_s20 = smov 64   ;;  %s7551_s21 = smov 4  }
  0x16   :  { %47 = dma.hbm_to_vmem [thread:$0]  %s9153_s1, 2048, %s42_s26, [#allocation6], %s7550_s20, %s7550_s20, %s7551_s21  }
  0x17   :  { %s7360_s27 = scalar_lea.hbm %s9156_s4, 2048 }
  0x18   :  { %p7361_p8 = scmp.ne.s32.totalorder %s9156_s4, %s7360_s27  ;;  %p7364_p9 = scmp.lt.u32.totalorder %s7360_s27, %s9156_s4 }
  0x1a   :  { %p7366_p10 = pnand %p7364_p9, %p7361_p8 }
  0x1c   :  { %7369 = shalt.err (!%p7366_p10)
}
  0x1d   :  { %s7370_s16 = scalar_lea.vmem %s7638_s28, 2048  ;;  %p7375_p12 = scmp.lt.s32.totalorder %s7638_s28, %s7638_s28 }
  0x1e   :  { %p7371_p11 = scmp.ne.s32.totalorder %s7638_s28, %s7370_s16  ;;  %p7376_p13 = scmp.lt.s32.totalorder %s7370_s16, %s7370_s16 }
  0x20   :  { %p7377_p0 = por %p7376_p13, %p7375_p12 }
  0x22   :  { %p7378_p1 = pnand %p7377_p0, %p7371_p11 }
  0x24   :  { %7381 = shalt.err (!%p7378_p1)
}
  0x25   :  { %73 = dma.hbm_to_vmem [thread:$0]  %s9156_s4, 2048, %s7638_s28, [#allocation9], %s7550_s20, %s7550_s20, %s7551_s21  }
  0x26   :  { %s7552_s17 = smov [#allocation11]   ;;  %s7382_s23 = scalar_lea.hbm %s9159_s7, 4096 }
  0x27   :  { %s93_s18 = sshll.u32 %s7552_s17, 4  ;;  %p7383_p2 = scmp.ne.s32.totalorder %s9159_s7, %s7382_s23  ;;  %s94_s18 = int_to_ptr.vmem [resolvable:$true] %s93_s18 }
  0x28   :  { %p7386_p3 = scmp.lt.u32.totalorder %s7382_s23, %s9159_s7 }
  0x2a   :  { %p7388_p4 = pnand %p7386_p3, %p7383_p2 }
  0x2c   :  { %7391 = shalt.err (!%p7388_p4)
}
  0x2d   :  { %s7392_s30 = scalar_lea.vmem %s94_s18, 4096  ;;  %p7397_p6 = scmp.lt.s32.totalorder %s94_s18, %s94_s18 }
  0x2e   :  { %p7393_p5 = scmp.ne.s32.totalorder %s94_s18, %s7392_s30  ;;  %p7398_p7 = scmp.lt.s32.totalorder %s7392_s30, %s7392_s30 }
  0x30   :  { %p7399_p8 = por %p7398_p7, %p7397_p6 }
  0x32   :  { %p7400_p9 = pnand %p7399_p8, %p7393_p5 }
  0x34   :  { %7403 = shalt.err (!%p7400_p9)
}
  0x35   :  { %s7553_s4 = smov 128   ;;  %s7554_s28 = smov 8  }
  0x36   :  { %99 = dma.hbm_to_vmem [thread:$0]  %s9159_s7, 4096, %s94_s18, [#allocation12], %s7553_s4, %s7553_s4, %s7554_s28  }
  0x37   :  { %s7555_s16 = smov [#allocation2]   ;;  %s7556_s26 = smov [#allocation7]  }
  0x38   :  { %s29_s1 = sshll.u32 %s7555_s16, 4  ;;  %s53_s17 = sshll.u32 %s7556_s26, 4  ;;  %s30_s1 = int_to_ptr.vmem [resolvable:$true] %s29_s1  ;;  %s54_s17 = int_to_ptr.vmem [resolvable:$true] %s53_s17 }
  0x39   :  { %s7404_s23 = scalar_lea.hbm %s9152_s0, 1664 }
  0x3a   :  { %p7405_p10 = scmp.ne.s32.totalorder %s9152_s0, %s7404_s23  ;;  %p7408_p11 = scmp.lt.u32.totalorder %s7404_s23, %s9152_s0 }
  0x3c   :  { %p7410_p12 = pnand %p7408_p11, %p7405_p10 }
  0x3e   :  { %7413 = shalt.err (!%p7410_p12)
}
  0x3f   :  { %s7414_s7 = scalar_lea.vmem %s30_s1, 1664  ;;  %p7419_p0 = scmp.lt.s32.totalorder %s30_s1, %s30_s1 }
  0x40   :  { %p7415_p13 = scmp.ne.s32.totalorder %s30_s1, %s7414_s7  ;;  %p7420_p1 = scmp.lt.s32.totalorder %s7414_s7, %s7414_s7 }
  0x42   :  { %p7421_p2 = por %p7420_p1, %p7419_p0 }
  0x44   :  { %p7422_p3 = pnand %p7421_p2, %p7415_p13 }
  0x46   :  { %7425 = shalt.err (!%p7422_p3)
}
  0x47   :  { %35 = dma.hbm_to_vmem [thread:$0]  %s9152_s0, 1664, %s30_s1, [#allocation3], %s7550_s20, %s7550_s20, %s7551_s21  }
  0x48   :  { %s7426_s16 = scalar_lea.hbm %s9154_s2, 2048 }
  0x49   :  { %p7427_p4 = scmp.ne.s32.totalorder %s9154_s2, %s7426_s16  ;;  %p7430_p5 = scmp.lt.u32.totalorder %s7426_s16, %s9154_s2 }
  0x4b   :  { %p7432_p6 = pnand %p7430_p5, %p7427_p4 }
  0x4d   :  { %7435 = shalt.err (!%p7432_p6)
}
  0x4e   :  { %s7436_s24 = scalar_lea.vmem %s54_s17, 2048  ;;  %p7441_p8 = scmp.lt.s32.totalorder %s54_s17, %s54_s17 }
  0x4f   :  { %p7437_p7 = scmp.ne.s32.totalorder %s54_s17, %s7436_s24  ;;  %p7442_p9 = scmp.lt.s32.totalorder %s7436_s24, %s7436_s24 }
  0x51   :  { %p7443_p10 = por %p7442_p9, %p7441_p8 }
  0x53   :  { %p7444_p11 = pnand %p7443_p10, %p7437_p7 }
  0x55   :  { %7447 = shalt.err (!%p7444_p11)
}
  0x56   :  { %59 = dma.hbm_to_vmem [thread:$0]  %s9154_s2, 2048, %s54_s17, [#allocation6], %s7550_s20, %s7550_s20, %s7551_s21  }
  0x57   :  { %s7557_s25 = smov [#allocation10]   ;;  %s7448_s18 = scalar_lea.hbm %s9158_s6, 128 }
  0x58   :  { %s81_s27 = sshll.u32 %s7557_s25, 4  ;;  %p7449_p12 = scmp.ne.s32.totalorder %s9158_s6, %s7448_s18  ;;  %s82_s27 = int_to_ptr.vmem [resolvable:$true] %s81_s27 }
  0x59   :  { %p7452_p13 = scmp.lt.u32.totalorder %s7448_s18, %s9158_s6 }
  0x5b   :  { %p7454_p0 = pnand %p7452_p13, %p7449_p12 }
  0x5d   :  { %7457 = shalt.err (!%p7454_p0)
}
  0x5e   :  { %s7458_s26 = scalar_lea.vmem %s82_s27, 128  ;;  %p7463_p2 = scmp.lt.s32.totalorder %s82_s27, %s82_s27 }
  0x5f   :  { %p7459_p1 = scmp.ne.s32.totalorder %s82_s27, %s7458_s26  ;;  %p7464_p3 = scmp.lt.s32.totalorder %s7458_s26, %s7458_s26 }
  0x61   :  { %p7465_p4 = por %p7464_p3, %p7463_p2 }
  0x63   :  { %p7466_p5 = pnand %p7465_p4, %p7459_p1 }
  0x65   :  { %7469 = shalt.err (!%p7466_p5)
}
  0x66   :  { %s7558_s2 = smov 16   ;;  %s7559_s17 = smov 1  }
  0x67   :  { %87 = dma.hbm_to_vmem [thread:$0]  %s9158_s6, 128, %s82_s27, [#allocation9], %s7558_s2, %s7558_s2, %s7559_s17  }
  0x68   :  { %s7560_s23 = smov [#allocation13]   ;;  %s7561_s0 = smov [#allocation14]  }
  0x69   :  { %s107_s24 = sshll.u32 %s7560_s23, 4  ;;  %s121_s1 = sshll.u32 %s7561_s0, 4  ;;  %s108_s24 = int_to_ptr.vmem [resolvable:$true] %s107_s24  ;;  %s122_s1 = int_to_ptr.vmem [resolvable:$true] %s121_s1 }
  0x6a   :  { %s7470_s7 = scalar_lea.hbm %s9161_s9, 8192 }
  0x6b   :  { %p7471_p6 = scmp.ne.s32.totalorder %s9161_s9, %s7470_s7  ;;  %p7474_p7 = scmp.lt.u32.totalorder %s7470_s7, %s9161_s9 }
  0x6d   :  { %p7476_p8 = pnand %p7474_p7, %p7471_p6 }
  0x6f   :  { %7479 = shalt.err (!%p7476_p8)
}
  0x70   :  { %s7480_s6 = scalar_lea.vmem %s108_s24, 8192  ;;  %p7485_p10 = scmp.lt.s32.totalorder %s108_s24, %s108_s24 }
  0x71   :  { %p7481_p9 = scmp.ne.s32.totalorder %s108_s24, %s7480_s6  ;;  %p7486_p11 = scmp.lt.s32.totalorder %s7480_s6, %s7480_s6 }
  0x73   :  { %p7487_p12 = por %p7486_p11, %p7485_p10 }
  0x75   :  { %p7488_p13 = pnand %p7487_p12, %p7481_p9 }
  0x77   :  { %7491 = shalt.err (!%p7488_p13)
}
  0x78   :  { %s7562_s27 = smov 256   ;;  %s7492_s22 = scalar_lea.hbm %s9163_s11, 4096 }
  0x79   :  { %113 = dma.hbm_to_vmem [thread:$0]  %s9161_s9, 8192, %s108_s24, [#allocation12], %s7562_s27, %s7562_s27, %s7558_s2  }
  0x7a   :  { %p7493_p0 = scmp.ne.s32.totalorder %s9163_s11, %s7492_s22  ;;  %p7496_p1 = scmp.lt.u32.totalorder %s7492_s22, %s9163_s11 }
  0x7c   :  { %p7498_p2 = pnand %p7496_p1, %p7493_p0 }
  0x7e   :  { %7501 = shalt.err (!%p7498_p2)
}
  0x7f   :  { %s7502_s7 = scalar_lea.vmem %s122_s1, 4096  ;;  %p7507_p4 = scmp.lt.s32.totalorder %s122_s1, %s122_s1 }
  0x80   :  { %p7503_p3 = scmp.ne.s32.totalorder %s122_s1, %s7502_s7  ;;  %p7508_p5 = scmp.lt.s32.totalorder %s7502_s7, %s7502_s7 }
  0x82   :  { %p7509_p6 = por %p7508_p5, %p7507_p4 }
  0x84   :  { %p7510_p7 = pnand %p7509_p6, %p7503_p3 }
  0x86   :  { %7513 = shalt.err (!%p7510_p7)
}
  0x87   :  { %127 = dma.hbm_to_vmem [thread:$0]  %s9163_s11, 4096, %s122_s1, [#allocation15], %s7550_s20, %s7550_s20, %s7551_s21  }
  0x88   :  { %7536 = dma.done.wait [#allocation3], 1664  }
  0x89   :  { %7537 = vsyncadd [#allocation3], 4294965632 }
  0x8a   :  { %7538 = dma.done.wait [#allocation6], 4096  }
  0x8b   :  { %7539 = vsyncadd [#allocation6], 4294963200 }
  0x8c   :  { %7540 = dma.done.wait [#allocation9], 2176  }
  0x8d   :  { %7541 = vsyncadd [#allocation9], 4294965120 }
  0x8e   :  { %7542 = dma.done.wait [#allocation12], 12288  }
  0x8f   :  { %7543 = vsyncadd [#allocation12], 4294955008 }
  0x90   :  { %7544 = dma.done.wait [#allocation15], 4096  }
  0x91   :  { %7545 = vsyncadd [#allocation15], 4294963200  ;;  %v6871_v0 = vld [vmem:[#allocation7] sm:$0xff]   ;;  %v6872_v1 = vld [vmem:[#allocation7 + $0x8] sm:$0xff]   ;;  %vm261_vm0 = vcmask 261120   ;;  %s7563_s24 = smov 96  }
  0x92   :  { %6267 = vmatprep.subr.bf16.mxu0 %v6871_v0  ;;  %v157_v2 = vld [vmem:[#allocation2 + $0x8] sm:$0xff]   ;;  %v159_v3 = vld [vmem:[#allocation2 + $0x10] sm:$0xff]   ;;  %v161_v5 = vld [vmem:[#allocation2 + $0x18] sm:$0xff]   ;;  %vm7565_vm1 = vmmov 0   ;;  %vm4505_vm2 = vcmask 523264   ;;  %vm4508_vm3 = vcmask 785408  }
  0x93   :  { %6268 = vmatpush3.bf16.msra.mxu0 %v6871_v0  ;;  %v6875_v4 = vld [vmem:[#allocation5] sm:$0xff]   ;;  %6271 = vmatprep.mubr.msk.bf16.mxu0 %vm261_vm0, %v157_v2  ;;  %v6882_v6 = vld [vmem:[#allocation5 + $0x8] sm:$0xff]   ;;  %v163_v7 = vld [vmem:[#allocation2 + $0x20] sm:$0xff]   ;;  %s7567_s26 = smov [#allocation16]  }
  0x94   :  { %6269 = vmatprep.subr.bf16.mxu0 %v6872_v1  ;;  %v165_v8 = vld [vmem:[#allocation2 + $0x28] sm:$0xff]   ;;  %v167_v9 = vld [vmem:[#allocation2 + $0x30] sm:$0xff]   ;;  %v169_v10 = vld [vmem:[#allocation2 + $0x38] sm:$0xff]   ;;  %s5628_s17 = sshll.u32 %s7567_s26, 4  ;;  %s5629_s17 = int_to_ptr.vmem [resolvable:$true] %s5628_s17 }
  0x95   :  { %v171_v11 = vld [vmem:[#allocation2 + $0x40] sm:$0xff]   ;;  %v173_v12 = vld [vmem:[#allocation2 + $0x48] sm:$0xff]   ;;  %v175_v13 = vld [vmem:[#allocation2 + $0x50] sm:$0xff]   ;;  %s7514_s19 = scalar_lea.vmem %s5629_s17, 256  ;;  %p7519_p9 = scmp.lt.s32.totalorder %s5629_s17, %s5629_s17 }
  0x96   :  { %v177_v14 = vld [vmem:[#allocation2 + $0x58] sm:$0xff]   ;;  %v179_v15 = vld [vmem:[#allocation2 + $0x60] sm:$0xff]   ;;  %v6888_v26 = vld [vmem:[#allocation8] sm:$0xff]   ;;  %p7515_p8 = scmp.ne.s32.totalorder %s5629_s17, %s7514_s19  ;;  %p7520_p10 = scmp.lt.s32.totalorder %s7514_s19, %s7514_s19 }
  0x97   :  { %6270 = vmatpush3.bf16.msra.mxu0 %v6872_v1  ;;  %v6887_v16 = vld [vmem:[#allocation2] sm:$0xff]   ;;  %6323 = vmatprep.subr.bf16.mxu1 %v6888_v26  ;;  %v6889_v30 = vld [vmem:[#allocation8 + $0x8] sm:$0xff]  }
  0x98   :  { %6295 = vmatprep.subr.bf16.mxu0 %v6875_v4  ;;  %v7786_v17 = vld [vmem:[%s9155_s3] ss:$0 sm:$0xff]  ;;  %6324 = vmatpush3.bf16.msra.mxu1 %v6888_v26  ;;  %p7521_p11 = por %p7520_p10, %p7519_p9 }
  0x99   :  { %6325 = vmatprep.subr.bf16.mxu1 %v6889_v30 }
  0x9a   :  { %6272 = vmatmul.mubr.msk.bf16.vlgmr.msra.gmra.mrb[0].mxu0 %vm261_vm0, %v159_v3  ;;  %p7522_p12 = pnand %p7521_p11, %p7515_p8 }
  0x9b   :  { %6296 = vmatpush3.bf16.msra.mxu0 %v6875_v4  ;;  %6275 = vmatprep.mubr.msk.bf16.mxu0 %vm261_vm0, %v161_v5 }
  0x9c   :  { %6297 = vmatprep.subr.bf16.mxu0 %v6882_v6  ;;  %6326 = vmatpush3.bf16.msra.mxu1 %v6889_v30 }
  0x9f   :  { %6298 = vmatpush3.bf16.msra.mxu0 %v6882_v6 }
  0xa2   :  { %6276 = vmatmul.mubr.msk.bf16.gmra.mrb[4].mxu0 %vm261_vm0, %v163_v7 }
  0xa3   :  { %6279 = vmatprep.mubr.msk.bf16.mxu0 %vm261_vm0, %v165_v8 }
  0xaa   :  { %6280 = vmatmul.mubr.msk.bf16.gmra.mrb[8].mxu0 %vm261_vm0, %v167_v9 }
  0xab   :  { %6283 = vmatprep.mubr.msk.bf16.mxu0 %vm261_vm0, %v169_v10 }
  0xb2   :  { %6284 = vmatmul.mubr.msk.bf16.gmra.mrb[12].mxu0 %vm261_vm0, %v171_v11 }
  0xb3   :  { %6287 = vmatprep.mubr.msk.bf16.mxu0 %vm261_vm0, %v173_v12 }
  0xba   :  { %6288 = vmatmul.mubr.msk.bf16.gmra.mrb[16].mxu0 %vm261_vm0, %v175_v13 }
  0xbb   :  { %6291 = vmatprep.mubr.msk.bf16.mxu0 %vm261_vm0, %v177_v14 }
  0xc2   :  { %6292 = vmatmul.mubr.msk.bf16.gmra.mrb[20].mxu0 %vm261_vm0, %v179_v15 }
  0xc3   :  { %6299 = vmatprep.mubr.msk.bf16.mxu0 %vm261_vm0, %v6887_v16 }
  0xca   :  { %6300 = vmatmul.mubr.msk.bf16.vlgmr.msra.gmra.mrb[0].mxu0 %vm261_vm0, %v157_v2 }
  0xcb   :  { %6303 = vmatprep.mubr.msk.bf16.mxu0 %vm261_vm0, %v159_v3 }
  0xd2   :  { %6304 = vmatmul.mubr.msk.bf16.gmra.mrb[4].mxu0 %vm261_vm0, %v161_v5 }
  0xd3   :  { %6307 = vmatprep.mubr.msk.bf16.mxu0 %vm261_vm0, %v163_v7 }
  0xda   :  { %6308 = vmatmul.mubr.msk.bf16.gmra.mrb[8].mxu0 %vm261_vm0, %v165_v8 }
  0xdb   :  { %6311 = vmatprep.mubr.msk.bf16.mxu0 %vm261_vm0, %v167_v9 }
  0xe2   :  { %6312 = vmatmul.mubr.msk.bf16.gmra.mrb[12].mxu0 %vm261_vm0, %v169_v10 }
  0xe3   :  { %6315 = vmatprep.mubr.msk.bf16.mxu0 %vm261_vm0, %v171_v11 }
  0xea   :  { %6316 = vmatmul.mubr.msk.bf16.gmra.mrb[16].mxu0 %vm261_vm0, %v173_v12 }
  0xeb   :  { %6319 = vmatprep.mubr.msk.bf16.mxu0 %vm261_vm0, %v175_v13 }
  0xf2   :  { %6320 = vmatmul.mubr.msk.bf16.gmra.mrb[20].mxu0 %vm261_vm0, %v177_v14 }
 0x19d   :  { %v6301_v18 = vpop.f32.mrb[0].mxu0 }
 0x19e   :  { %v585_v19 = vadd.f32 %v6301_v18, %v7786_v17  ;;  %v481_v20 = vpop.f32.mrb[1].mxu0 }
 0x19f   :  { %v583_v21 = vadd.f32 %v7786_v17, %v481_v20  ;;  %v6302_v22 = vpop.f32.mrb[2].mxu0 }
 0x1a0   :  { %7118 = vtanh.f32 %v585_v19  ;;  %v586_v23 = vadd.f32 %v6302_v22, %v7786_v17  ;;  %v484_v24 = vpop.f32.mrb[3].mxu0 }
 0x1a1   :  { %7120 = vtanh.f32 %v583_v21  ;;  %v584_v25 = vadd.f32 %v7786_v17, %v484_v24 }
 0x1a2   :  { %7122 = vtanh.f32 %v586_v23 }
 0x1a3   :  { %7124 = vtanh.f32 %v584_v25 }
 0x1a5   :  { %v6305_v27 = vpop.f32.mrb[4].mxu0 }
 0x1a6   :  { %v589_v28 = vadd.f32 %v6305_v27, %v7786_v17  ;;  %v497_v29 = vpop.f32.mrb[5].mxu0 }
 0x1a7   :  { %v587_v31 = vadd.f32 %v7786_v17, %v497_v29  ;;  %v6306_v32 = vpop.f32.mrb[6].mxu0 }
 0x1a8   :  { %7126 = vtanh.f32 %v589_v28  ;;  %v590_v33 = vadd.f32 %v6306_v32, %v7786_v17  ;;  %v500_v34 = vpop.f32.mrb[7].mxu0 }
 0x1a9   :  { %7128 = vtanh.f32 %v587_v31  ;;  %v588_v35 = vadd.f32 %v7786_v17, %v500_v34 }
 0x1aa   :  { %v7796_v36 = vpop.eup %7118  ;;  %7130 = vtanh.f32 %v590_v33 }
 0x1ab   :  { %v7798_v37 = vpop.eup %7120  ;;  %7132 = vtanh.f32 %v588_v35  ;;  %v633_v38 = vadd.f32 1.0, %v7796_v36 }
 0x1ac   :  { %v7801_v39 = vpop.eup %7122  ;;  %v631_v40 = vadd.f32 1.0, %v7798_v37 }
 0x1ad   :  { %v7804_v41 = vpop.eup %7124  ;;  %v6309_v42 = vpop.f32.mrb[8].mxu0  ;;  %v657_v43 = vmul.f32 0.5, %v633_v38  ;;  %v634_v44 = vadd.f32 1.0, %v7801_v39 }
 0x1ae   :  { %v593_v45 = vadd.f32 %v6309_v42, %v7786_v17  ;;  %v513_v46 = vpop.f32.mrb[9].mxu0  ;;  %v655_v47 = vmul.f32 0.5, %v631_v40  ;;  %v632_v48 = vadd.f32 1.0, %v7804_v41 }
 0x1af   :  { %v591_v49 = vadd.f32 %v7786_v17, %v513_v46  ;;  %707 = vrot.lane.b32.xlu1 %v657_v43, %s7563_s24  ;;  %v6310_v50 = vpop.f32.mrb[10].mxu0  ;;  %v658_v54 = vmul.f32 0.5, %v634_v44 }
 0x1b0   :  { %7134 = vtanh.f32 %v593_v45  ;;  %v594_v51 = vadd.f32 %v6310_v50, %v7786_v17  ;;  %703 = vrot.lane.b32.xlu0 %v655_v47, %s7563_s24  ;;  %v516_v52 = vpop.f32.mrb[11].mxu0  ;;  %v656_v56 = vmul.f32 0.5, %v632_v48 }
 0x1b1   :  { %7136 = vtanh.f32 %v591_v49  ;;  %v592_v53 = vadd.f32 %v7786_v17, %v516_v52 }
 0x1b2   :  { %v7814_v55 = vpop.eup %7126  ;;  %7138 = vtanh.f32 %v594_v51 }
 0x1b3   :  { %v7816_v57 = vpop.eup %7128  ;;  %7140 = vtanh.f32 %v592_v53  ;;  %709 = vrot.lane.b32.xlu1 %v658_v54, %s7563_s24  ;;  %v637_v2 = vadd.f32 1.0, %v7814_v55 }
 0x1b4   :  { %v7819_v58 = vpop.eup %7130  ;;  %705 = vrot.lane.b32.xlu0 %v656_v56, %s7563_s24  ;;  %v635_v59 = vadd.f32 1.0, %v7816_v57 }
 0x1b5   :  { %v7823_v60 = vpop.eup %7132  ;;  %v6313_v61 = vpop.f32.mrb[12].mxu0  ;;  %v638_v8 = vadd.f32 1.0, %v7819_v58  ;;  %v661_v11 = vmul.f32 0.5, %v637_v2 }
 0x1b6   :  { %v597_v62 = vadd.f32 %v6313_v61, %v7786_v17  ;;  %v529_v63 = vpop.f32.mrb[13].mxu0  ;;  %v659_v0 = vmul.f32 0.5, %v635_v59  ;;  %v636_v1 = vadd.f32 1.0, %v7823_v60 }
 0x1b7   :  { %v595_v3 = vadd.f32 %v7786_v17, %v529_v63  ;;  %v6314_v4 = vpop.f32.mrb[14].mxu0  ;;  %v662_v14 = vmul.f32 0.5, %v638_v8 }
 0x1b8   :  { %7142 = vtanh.f32 %v597_v62  ;;  %v598_v5 = vadd.f32 %v6314_v4, %v7786_v17  ;;  %711 = vrot.lane.b32.xlu0 %v659_v0, %s7563_s24  ;;  %v532_v6 = vpop.f32.mrb[15].mxu0  ;;  %v660_v7 = vmul.f32 0.5, %v636_v1 }
 0x1b9   :  { %7144 = vtanh.f32 %v595_v3  ;;  %v596_v9 = vadd.f32 %v7786_v17, %v532_v6 }
 0x1ba   :  { %v7833_v10 = vpop.eup %7134  ;;  %7146 = vtanh.f32 %v598_v5  ;;  %713 = vrot.lane.b32.xlu1 %v660_v7, %s7563_s24 }
 0x1bb   :  { %v7836_v12 = vpop.eup %7136  ;;  %7148 = vtanh.f32 %v596_v9  ;;  %v641_v23 = vadd.f32 1.0, %v7833_v10 }
 0x1bc   :  { %v7838_v13 = vpop.eup %7138  ;;  %715 = vrot.lane.b32.xlu0 %v661_v11, %s7563_s24  ;;  %v639_v15 = vadd.f32 1.0, %v7836_v12 }
 0x1bd   :  { %v7842_v16 = vpop.eup %7140  ;;  %v6317_v18 = vpop.f32.mrb[16].mxu0  ;;  %v642_v29 = vadd.f32 1.0, %v7838_v13  ;;  %v665_v32 = vmul.f32 0.5, %v641_v23 }
 0x1be   :  { %v601_v19 = vadd.f32 %v6317_v18, %v7786_v17  ;;  %717 = vrot.lane.b32.xlu1 %v662_v14, %s7563_s24  ;;  %v545_v20 = vpop.f32.mrb[17].mxu0  ;;  %v663_v21 = vmul.f32 0.5, %v639_v15  ;;  %v640_v22 = vadd.f32 1.0, %v7842_v16  ;;  %v6890_v18 = vld [vmem:[#allocation7 + $0x10] sm:$0xff]  }
 0x1bf   :  { %v599_v24 = vadd.f32 %v7786_v17, %v545_v20  ;;  %v6318_v25 = vpop.f32.mrb[18].mxu0  ;;  %v666_v35 = vmul.f32 0.5, %v642_v29  ;;  %6351 = vmatprep.subr.bf16.mxu1 %v6890_v18 }
 0x1c0   :  { %7150 = vtanh.f32 %v601_v19  ;;  %v602_v26 = vadd.f32 %v6318_v25, %v7786_v17  ;;  %719 = vrot.lane.b32.xlu0 %v663_v21, %s7563_s24  ;;  %v548_v27 = vpop.f32.mrb[19].mxu0  ;;  %v664_v28 = vmul.f32 0.5, %v640_v22 }
 0x1c1   :  { %7152 = vtanh.f32 %v599_v24  ;;  %v600_v30 = vadd.f32 %v7786_v17, %v548_v27 }
 0x1c2   :  { %v7853_v31 = vpop.eup %7142  ;;  %7154 = vtanh.f32 %v602_v26  ;;  %721 = vrot.lane.b32.xlu1 %v664_v28, %s7563_s24 }
 0x1c3   :  { %v7856_v33 = vpop.eup %7144  ;;  %7156 = vtanh.f32 %v600_v30  ;;  %v645_v47 = vadd.f32 1.0, %v7853_v31 }
 0x1c4   :  { %v7858_v34 = vpop.eup %7146  ;;  %723 = vrot.lane.b32.xlu0 %v665_v32, %s7563_s24  ;;  %v643_v38 = vadd.f32 1.0, %v7856_v33 }
 0x1c5   :  { %v7862_v40 = vpop.eup %7148  ;;  %v6321_v42 = vpop.f32.mrb[20].mxu0  ;;  %v646_v53 = vadd.f32 1.0, %v7858_v34  ;;  %v669_v59 = vmul.f32 0.5, %v645_v47 }
 0x1c6   :  { %v605_v43 = vadd.f32 %v6321_v42, %v7786_v17  ;;  %725 = vrot.lane.b32.xlu1 %v666_v35, %s7563_s24  ;;  %v561_v44 = vpop.f32.mrb[21].mxu0  ;;  %v667_v45 = vmul.f32 0.5, %v643_v38  ;;  %v644_v46 = vadd.f32 1.0, %v7862_v40 }
 0x1c7   :  { %v603_v48 = vadd.f32 %v7786_v17, %v561_v44  ;;  %v6322_v49 = vpop.f32.mrb[22].mxu0  ;;  %v670_v63 = vmul.f32 0.5, %v646_v53 }
 0x1c8   :  { %7158 = vtanh.f32 %v605_v43  ;;  %v606_v50 = vadd.f32 %v6322_v49, %v7786_v17  ;;  %727 = vrot.lane.b32.xlu0 %v667_v45, %s7563_s24  ;;  %v564_v51 = vpop.f32.mrb[23].mxu0  ;;  %v668_v52 = vmul.f32 0.5, %v644_v46  ;;  %v6891_v45 = vld [vmem:[#allocation7 + $0x18] sm:$0xff]  }
 0x1c9   :  { %7160 = vtanh.f32 %v603_v48  ;;  %v604_v54 = vadd.f32 %v7786_v17, %v564_v51 }
 0x1ca   :  { %v7873_v56 = vpop.eup %7150  ;;  %7162 = vtanh.f32 %v606_v50  ;;  %729 = vrot.lane.b32.xlu1 %v668_v52, %s7563_s24 }
 0x1cb   :  { %v7876_v61 = vpop.eup %7152  ;;  %7164 = vtanh.f32 %v604_v54  ;;  %v649_v3 = vadd.f32 1.0, %v7873_v56 }
 0x1cc   :  { %v7878_v62 = vpop.eup %7154  ;;  %731 = vrot.lane.b32.xlu0 %v669_v59, %s7563_s24  ;;  %v647_v0 = vadd.f32 1.0, %v7876_v61 }
 0x1cd   :  { %v7882_v1 = vpop.eup %7156  ;;  %v650_v5 = vadd.f32 1.0, %v7878_v62  ;;  %v673_v7 = vmul.f32 0.5, %v649_v3 }
 0x1ce   :  { %733 = vrot.lane.b32.xlu1 %v670_v63, %s7563_s24  ;;  %v671_v17 = vmul.f32 0.5, %v647_v0  ;;  %v648_v2 = vadd.f32 1.0, %v7882_v1 }
 0x1cf   :  { %v674_v11 = vmul.f32 0.5, %v650_v5 }
 0x1d0   :  { %735 = vrot.lane.b32.xlu0 %v671_v17, %s7563_s24  ;;  %v672_v4 = vmul.f32 0.5, %v648_v2 }
 0x1d2   :  { %v7889_v6 = vpop.eup %7158  ;;  %737 = vrot.lane.b32.xlu1 %v672_v4, %s7563_s24 }
 0x1d3   :  { %v7892_v8 = vpop.eup %7160  ;;  %v653_v21 = vadd.f32 1.0, %v7889_v6 }
 0x1d4   :  { %v7894_v9 = vpop.eup %7162  ;;  %739 = vrot.lane.b32.xlu0 %v673_v7, %s7563_s24  ;;  %v651_v14 = vadd.f32 1.0, %v7892_v8 }
 0x1d5   :  { %v7898_v15 = vpop.eup %7164  ;;  %v654_v23 = vadd.f32 1.0, %v7894_v9  ;;  %v677_v24 = vmul.f32 0.5, %v653_v21 }
 0x1d6   :  { %741 = vrot.lane.b32.xlu1 %v674_v11, %s7563_s24  ;;  %v675_v19 = vmul.f32 0.5, %v651_v14  ;;  %v652_v20 = vadd.f32 1.0, %v7898_v15 }
 0x1d7   :  { %v678_v25 = vmul.f32 0.5, %v654_v23 }
 0x1d8   :  { %743 = vrot.lane.b32.xlu0 %v675_v19, %s7563_s24  ;;  %v676_v22 = vmul.f32 0.5, %v652_v20 }
 0x1da   :  { %745 = vrot.lane.b32.xlu1 %v676_v22, %s7563_s24 }
 0x1dc   :  { %747 = vrot.lane.b32.xlu0 %v677_v24, %s7563_s24 }
 0x1de   :  { %749 = vrot.lane.b32.xlu1 %v678_v25, %s7563_s24 }
 0x221   :  { %v708_v26 = vpop.permute.xlu1 %707 }
 0x222   :  { %v704_v27 = vpop.permute.xlu0 %703  ;;  %v777_v38 = vmul.f32 %v7796_v36, %v708_v26 }
 0x223   :  { %v775_v32 = vmul.f32 %v7798_v37, %v704_v27  ;;  %v7947_v27 = vld [vmem:[#allocation5 + $0x10] sm:$0xff]  }
 0x225   :  { %v710_v28 = vpop.permute.xlu1 %709 }
 0x226   :  { %v778_v29 = vmul.f32 %v7801_v39, %v710_v28  ;;  %v706_v30 = vpop.permute.xlu0 %705  ;;  %v7327_v28 = vld [vmem:[#allocation2 + $0x10] sm:$0xff]  }
 0x227   :  { %v776_v35 = vmul.f32 %v7804_v41, %v706_v30  ;;  %v7950_v30 = vld [vmem:[#allocation10] ss:$0 sm:$0xff] }
 0x228   :  { %v800_v43 = vpack.c.bf16 %v778_v29, %v777_v38  ;;  %v1001_v29 = vunpack.c.l.bf16 %v7327_v28 }
 0x229   :  { %v799_v42 = vpack.c.bf16 %v776_v35, %v775_v32 }
 0x22a   :  { %v712_v44 = vpop.permute.xlu0 %711 }
 0x22b   :  { %6327 = vmatprep.mubr.msk.bf16.mxu1 %vm261_vm0, %v799_v42  ;;  %v779_v47 = vmul.f32 %v7816_v57, %v712_v44 }
 0x22c   :  { %6328 = vmatmul.mubr.msk.bf16.vlgmr.msra.gmra.mrb[0].mxu1 %vm261_vm0, %v800_v43  ;;  %v714_v46 = vpop.permute.xlu1 %713  ;;  %v1032_v43 = vmul.f32 %v7950_v30, %v1001_v29 }
 0x22d   :  { %v780_v39 = vmul.f32 %v7823_v60, %v714_v46  ;;  %6352 = vmatpush3.bf16.msra.mxu1 %v6890_v18 }
 0x22e   :  { %v716_v48 = vpop.permute.xlu0 %715  ;;  %6353 = vmatprep.subr.bf16.mxu1 %v6891_v45 }
 0x22f   :  { %v801_v37 = vpack.c.bf16 %v780_v39, %v779_v47  ;;  %v781_v36 = vmul.f32 %v7814_v55, %v716_v48 }
 0x230   :  { %v718_v41 = vpop.permute.xlu1 %717 }
 0x231   :  { %v782_v49 = vmul.f32 %v7819_v58, %v718_v41  ;;  %6331 = vmatprep.mubr.msk.bf16.mxu1 %vm261_vm0, %v801_v37  ;;  %6354 = vmatpush3.bf16.msra.mxu1 %v6891_v45 }
 0x232   :  { %v720_v50 = vpop.permute.xlu0 %719  ;;  %6375 = vmatprep.subr.bf16.mxu1 %v7947_v27 }
 0x233   :  { %v802_v51 = vpack.c.bf16 %v782_v49, %v781_v36  ;;  %v783_v53 = vmul.f32 %v7836_v12, %v720_v50 }
 0x234   :  { %v722_v52 = vpop.permute.xlu1 %721 }
 0x235   :  { %v784_v57 = vmul.f32 %v7842_v16, %v722_v52  ;;  %6332 = vmatmul.mubr.msk.bf16.gmra.mrb[4].mxu1 %vm261_vm0, %v802_v51  ;;  %v7328_v52 = vld [vmem:[#allocation2 + $0x20] sm:$0xff]  }
 0x236   :  { %v724_v60 = vpop.permute.xlu0 %723 }
 0x237   :  { %v803_v54 = vpack.c.bf16 %v784_v57, %v783_v53  ;;  %v785_v63 = vmul.f32 %v7833_v10, %v724_v60  ;;  %v1005_v53 = vunpack.c.l.bf16 %v7328_v52  ;;  %v1006_v57 = vunpack.c.h.bf16 %v7328_v52 }
 0x238   :  { %v726_v59 = vpop.permute.xlu1 %725 }
 0x239   :  { %v786_v55 = vmul.f32 %v7838_v13, %v726_v59  ;;  %6335 = vmatprep.mubr.msk.bf16.mxu1 %vm261_vm0, %v803_v54  ;;  %v7329_v54 = vld [vmem:[#allocation2 + $0x18] sm:$0xff]  }
 0x23a   :  { %v728_v58 = vpop.permute.xlu0 %727  ;;  %v1003_v59 = vunpack.c.l.bf16 %v7329_v54 }
 0x23b   :  { %v804_v0 = vpack.c.bf16 %v786_v55, %v785_v63  ;;  %v787_v2 = vmul.f32 %v7856_v33, %v728_v58  ;;  %v1004_v63 = vunpack.c.h.bf16 %v7329_v54 }
 0x23c   :  { %v730_v17 = vpop.permute.xlu1 %729 }
 0x23d   :  { %v788_v12 = vmul.f32 %v7862_v40, %v730_v17  ;;  %6336 = vmatmul.mubr.msk.bf16.gmra.mrb[8].mxu1 %vm261_vm0, %v804_v0  ;;  %v1036_v17 = vmul.f32 %v7950_v30, %v1005_v53 }
 0x23e   :  { %v732_v16 = vpop.permute.xlu0 %731 }
 0x23f   :  { %v805_v3 = vpack.c.bf16 %v788_v12, %v787_v2  ;;  %v789_v5 = vmul.f32 %v7853_v31, %v732_v16  ;;  %v1037_v12 = vmul.f32 %v7950_v30, %v1006_v57 }
 0x240   :  { %v734_v4 = vpop.permute.xlu1 %733 }
 0x241   :  { %v790_v10 = vmul.f32 %v7858_v34, %v734_v4  ;;  %6339 = vmatprep.mubr.msk.bf16.mxu1 %vm261_vm0, %v805_v3  ;;  %v1034_v3 = vmul.f32 %v7950_v30, %v1003_v59 }
 0x242   :  { %v736_v13 = vpop.permute.xlu0 %735 }
 0x243   :  { %v806_v7 = vpack.c.bf16 %v790_v10, %v789_v5  ;;  %v791_v14 = vmul.f32 %v7876_v61, %v736_v13  ;;  %v1035_v5 = vmul.f32 %v7950_v30, %v1004_v63 }
 0x244   :  { %v738_v11 = vpop.permute.xlu1 %737 }
 0x245   :  { %v792_v33 = vmul.f32 %v7882_v1, %v738_v11  ;;  %6340 = vmatmul.mubr.msk.bf16.gmra.mrb[12].mxu1 %vm261_vm0, %v806_v7 }
 0x246   :  { %v740_v40 = vpop.permute.xlu0 %739 }
 0x247   :  { %v807_v18 = vpack.c.bf16 %v792_v33, %v791_v14  ;;  %v793_v20 = vmul.f32 %v7873_v56, %v740_v40  ;;  %v7330_v33 = vld [vmem:[#allocation2 + $0x30] sm:$0xff]  }
 0x248   :  { %v742_v19 = vpop.permute.xlu1 %741  ;;  %v1009_v40 = vunpack.c.l.bf16 %v7330_v33 }
 0x249   :  { %v794_v31 = vmul.f32 %v7878_v62, %v742_v19  ;;  %6343 = vmatprep.mubr.msk.bf16.mxu1 %vm261_vm0, %v807_v18  ;;  %v1010_v18 = vunpack.c.h.bf16 %v7330_v33 }
 0x24a   :  { %v744_v34 = vpop.permute.xlu0 %743 }
 0x24b   :  { %v808_v21 = vpack.c.bf16 %v794_v31, %v793_v20  ;;  %v795_v23 = vmul.f32 %v7892_v8, %v744_v34  ;;  %v7326_v8 = vld [vmem:[#allocation2 + $0x8] sm:$0xff]  }
 0x24c   :  { %v746_v22 = vpop.permute.xlu1 %745  ;;  %v1000_v32 = vunpack.c.h.bf16 %v7326_v8  ;;  %v7331_v31 = vld [vmem:[#allocation2 + $0x28] sm:$0xff]  }
 0x24d   :  { %v796_v61 = vmul.f32 %v7898_v15, %v746_v22  ;;  %6344 = vmatmul.mubr.msk.bf16.gmra.mrb[16].mxu1 %vm261_vm0, %v808_v21  ;;  %v999_v15 = vunpack.c.l.bf16 %v7326_v8  ;;  %v1007_v34 = vunpack.c.l.bf16 %v7331_v31  ;;  %v1008_v21 = vunpack.c.h.bf16 %v7331_v31 }
 0x24e   :  { %v748_v1 = vpop.permute.xlu0 %747  ;;  %v1031_v39 = vmul.f32 %v7950_v30, %v1000_v32 }
 0x24f   :  { %v809_v24 = vpack.c.bf16 %v796_v61, %v795_v23  ;;  %v797_v26 = vmul.f32 %v7889_v6, %v748_v1  ;;  %v1002_v6 = vunpack.c.h.bf16 %v7327_v28  ;;  %v1030_v38 = vmul.f32 %v7950_v30, %v999_v15 }
 0x250   :  { %v750_v25 = vpop.permute.xlu1 %749  ;;  %v1038_v15 = vmul.f32 %v7950_v30, %v1007_v34  ;;  %v1039_v29 = vmul.f32 %v7950_v30, %v1008_v21 }
 0x251   :  { %v798_v56 = vmul.f32 %v7894_v9, %v750_v25  ;;  %6347 = vmatprep.mubr.msk.bf16.mxu1 %vm261_vm0, %v809_v24  ;;  %v7955_v9 = vld [vmem:[%s9157_s5] ss:$0 sm:$0xff]  ;;  %v1033_v45 = vmul.f32 %v7950_v30, %v1002_v6  ;;  %v1040_v24 = vmul.f32 %v7950_v30, %v1009_v40 }
 0x253   :  { %v7943_v62 = vpack.c.bf16 %v798_v56, %v797_v26  ;;  %v1041_v26 = vmul.f32 %v7950_v30, %v1010_v18  ;;  %v6893_v56 = vld [vmem:[#allocation5 + $0x18] sm:$0xff]  }
 0x255   :  { %6348 = vmatmul.mubr.msk.bf16.gmra.mrb[20].mxu1 %vm261_vm0, %v7943_v62 }
 0x2ff   :  { %v6329_v35 = vpop.f32.mrb[0].mxu1 }
 0x300   :  { %v913_v42 = vadd.f32 %v6329_v35, %v7955_v9  ;;  %v904_v44 = vpop.f32.mrb[1].mxu1 }
 0x301   :  { %v905_v46 = vadd.f32 %v7955_v9, %v904_v44  ;;  %v6330_v47 = vpop.f32.mrb[2].mxu1 }
 0x302   :  { %v916_v48 = vadd.f32 %v6330_v47, %v7955_v9  ;;  %v907_v37 = vpop.f32.mrb[3].mxu1  ;;  %v7967_v49 = vadd.f32 %v1032_v43, %v913_v42  ;;  %v7332_v43 = vld [vmem:[#allocation2 + $0x40] sm:$0xff]  }
 0x303   :  { %v7964_v41 = vadd.f32 %v1030_v38, %v905_v46  ;;  %v908_v36 = vadd.f32 %v7955_v9, %v907_v37  ;;  %v1013_v44 = vunpack.c.l.bf16 %v7332_v43 }
 0x304   :  { %v7969_v50 = vadd.f32 %v1033_v45, %v916_v48  ;;  %v1014_v45 = vunpack.c.h.bf16 %v7332_v43  ;;  %v7337_v43 = vld [vmem:[#allocation2 + $0x58] sm:$0xff]  }
 0x305   :  { %v7971_v51 = vadd.f32 %v1031_v39, %v908_v36  ;;  %v7333_v39 = vld [vmem:[#allocation2 + $0x38] sm:$0xff]  }
 0x306   :  { %v1079_v60 = vpack.c.bf16 %v7969_v50, %v7967_v49  ;;  %v1011_v48 = vunpack.c.l.bf16 %v7333_v39  ;;  %v1012_v37 = vunpack.c.h.bf16 %v7333_v39  ;;  %v1045_v59 = vmul.f32 %v7950_v30, %v1014_v45  ;;  %v6895_v49 = vld [vmem:[#allocation8 + $0x18] sm:$0xff]  }
 0x307   :  { %v1078_v55 = vpack.c.bf16 %v7971_v51, %v7964_v41  ;;  %v1020_v45 = vunpack.c.h.bf16 %v7337_v43  ;;  %v6894_v41 = vld [vmem:[#allocation8 + $0x10] sm:$0xff]   ;;  %v8090_v50 = vld [vmem:[%s9155_s3 + $0x1] ss:$0 sm:$0xff] }
 0x308   :  { %v6333_v58 = vpop.f32.mrb[4].mxu1  ;;  %6399 = vmatprep.subr.bf16.mxu0 %v6894_v41 }
 0x309   :  { %v929_v0 = vadd.f32 %v6333_v58, %v7955_v9  ;;  %v920_v2 = vpop.f32.mrb[5].mxu1  ;;  %v1042_v58 = vmul.f32 %v7950_v30, %v1011_v48  ;;  %6400 = vmatpush3.bf16.msra.mxu0 %v6894_v41 }
 0x30a   :  { %v921_v16 = vadd.f32 %v7955_v9, %v920_v2  ;;  %v6334_v4 = vpop.f32.mrb[6].mxu1  ;;  %6401 = vmatprep.subr.bf16.mxu0 %v6895_v49 }
 0x30b   :  { %v932_v10 = vadd.f32 %v6334_v4, %v7955_v9  ;;  %v923_v13 = vpop.f32.mrb[7].mxu1  ;;  %v1060_v11 = vadd.f32 %v1036_v17, %v929_v0  ;;  %v1043_v17 = vmul.f32 %v7950_v30, %v1012_v37 }
 0x30c   :  { %v924_v7 = vadd.f32 %v7955_v9, %v923_v13  ;;  %v1058_v19 = vadd.f32 %v1034_v3, %v921_v16 }
 0x30d   :  { %v1061_v14 = vadd.f32 %v1037_v12, %v932_v10  ;;  %6402 = vmatpush3.bf16.msra.mxu0 %v6895_v49 }
 0x30e   :  { %v1059_v20 = vadd.f32 %v1035_v5, %v924_v7  ;;  %v7334_v5 = vld [vmem:[#allocation2 + $0x50] sm:$0xff]  }
 0x30f   :  { %v7985_v22 = vpack.c.bf16 %v1061_v14, %v1060_v11  ;;  %v1017_v10 = vunpack.c.l.bf16 %v7334_v5  ;;  %v1018_v13 = vunpack.c.h.bf16 %v7334_v5  ;;  %v7335_v14 = vld [vmem:[#allocation2 + $0x48] sm:$0xff]  }
 0x310   :  { %v7987_v23 = vpack.c.bf16 %v1059_v20, %v1058_v19  ;;  %v6337_v61 = vpop.f32.mrb[8].mxu1  ;;  %v1015_v33 = vunpack.c.l.bf16 %v7335_v14  ;;  %v1016_v40 = vunpack.c.h.bf16 %v7335_v14 }
 0x311   :  { %v945_v1 = vadd.f32 %v6337_v61, %v7955_v9  ;;  %v936_v25 = vpop.f32.mrb[9].mxu1  ;;  %v1048_v34 = vmul.f32 %v7950_v30, %v1017_v10  ;;  %v1049_v61 = vmul.f32 %v7950_v30, %v1018_v13 }
 0x312   :  { %v937_v8 = vadd.f32 %v7955_v9, %v936_v25  ;;  %v6338_v28 = vpop.f32.mrb[10].mxu1  ;;  %6355 = vmatprep.mubr.msk.bf16.mxu1 %vm261_vm0, %v7987_v23 }
 0x313   :  { %v948_v6 = vadd.f32 %v6338_v28, %v7955_v9  ;;  %v939_v32 = vpop.f32.mrb[11].mxu1  ;;  %6356 = vmatmul.mubr.msk.bf16.vlgmr.msra.gmra.mrb[24].mxu1 %vm261_vm0, %v7985_v22  ;;  %v1064_v38 = vadd.f32 %v1040_v24, %v945_v1  ;;  %v1046_v24 = vmul.f32 %v7950_v30, %v1015_v33 }
 0x314   :  { %v940_v35 = vadd.f32 %v7955_v9, %v939_v32  ;;  %6376 = vmatpush3.bf16.msra.mxu1 %v7947_v27  ;;  %v1062_v46 = vadd.f32 %v1038_v15, %v937_v8  ;;  %v1044_v27 = vmul.f32 %v7950_v30, %v1013_v44  ;;  %v1019_v44 = vunpack.c.l.bf16 %v7337_v43 }
 0x315   :  { %v1065_v42 = vadd.f32 %v1041_v26, %v948_v6  ;;  %6377 = vmatprep.subr.bf16.mxu1 %v6893_v56  ;;  %v1047_v26 = vmul.f32 %v7950_v30, %v1016_v40  ;;  %v7336_v6 = vld [vmem:[#allocation2 + $0x60] sm:$0xff]  }
 0x316   :  { %v1063_v47 = vadd.f32 %v1039_v29, %v940_v35  ;;  %v1021_v32 = vunpack.c.l.bf16 %v7336_v6  ;;  %v1022_v35 = vunpack.c.h.bf16 %v7336_v6 }
 0x317   :  { %v8002_v36 = vpack.c.bf16 %v1065_v42, %v1064_v38 }
 0x318   :  { %v8004_v52 = vpack.c.bf16 %v1063_v47, %v1062_v46  ;;  %v6341_v53 = vpop.f32.mrb[12].mxu1  ;;  %6378 = vmatpush3.bf16.msra.mxu1 %v6893_v56  ;;  %v1052_v37 = vmul.f32 %v7950_v30, %v1021_v32 }
 0x319   :  { %v961_v57 = vadd.f32 %v6341_v53, %v7955_v9  ;;  %v952_v54 = vpop.f32.mrb[13].mxu1 }
 0x31a   :  { %v953_v63 = vadd.f32 %v7955_v9, %v952_v54  ;;  %v6342_v0 = vpop.f32.mrb[14].mxu1  ;;  %6359 = vmatprep.mubr.msk.bf16.mxu1 %vm261_vm0, %v8004_v52  ;;  %v1050_v54 = vmul.f32 %v7950_v30, %v1019_v44 }
 0x31b   :  { %v964_v2 = vadd.f32 %v6342_v0, %v7955_v9  ;;  %v955_v12 = vpop.f32.mrb[15].mxu1  ;;  %6360 = vmatmul.mubr.msk.bf16.gmra.mrb[28].mxu1 %vm261_vm0, %v8002_v36  ;;  %v1068_v3 = vadd.f32 %v1044_v27, %v961_v57  ;;  %v1053_v57 = vmul.f32 %v7950_v30, %v1022_v35 }
 0x31c   :  { %v956_v16 = vadd.f32 %v7955_v9, %v955_v12  ;;  %v1066_v7 = vadd.f32 %v1042_v58, %v953_v63  ;;  %v1051_v63 = vmul.f32 %v7950_v30, %v1020_v45  ;;  %v8054_v30 = vld [vmem:[#allocation10 + $0x1] ss:$0 sm:$0xff] }
 0x31d   :  { %v1069_v4 = vadd.f32 %v1045_v59, %v964_v2 }
 0x31e   :  { %v1067_v11 = vadd.f32 %v1043_v17, %v956_v16 }
 0x31f   :  { %v8018_v18 = vpack.c.bf16 %v1069_v4, %v1068_v3 }
 0x320   :  { %v8020_v19 = vpack.c.bf16 %v1067_v11, %v1066_v7  ;;  %v6345_v20 = vpop.f32.mrb[16].mxu1 }
 0x321   :  { %v977_v31 = vadd.f32 %v6345_v20, %v7955_v9  ;;  %v968_v21 = vpop.f32.mrb[17].mxu1 }
 0x322   :  { %v969_v1 = vadd.f32 %v7955_v9, %v968_v21  ;;  %v6346_v25 = vpop.f32.mrb[18].mxu1  ;;  %6363 = vmatprep.mubr.msk.bf16.mxu1 %vm261_vm0, %v8020_v19 }
 0x323   :  { %v980_v56 = vadd.f32 %v6346_v25, %v7955_v9  ;;  %v971_v8 = vpop.f32.mrb[19].mxu1  ;;  %6364 = vmatmul.mubr.msk.bf16.gmra.mrb[32].mxu1 %vm261_vm0, %v8018_v18  ;;  %v1072_v28 = vadd.f32 %v1048_v34, %v977_v31 }
 0x324   :  { %v972_v15 = vadd.f32 %v7955_v9, %v971_v8  ;;  %v1070_v38 = vadd.f32 %v1046_v24, %v969_v1 }
 0x325   :  { %v1073_v29 = vadd.f32 %v1049_v61, %v980_v56 }
 0x326   :  { %v1071_v42 = vadd.f32 %v1047_v26, %v972_v15 }
 0x327   :  { %v8034_v46 = vpack.c.bf16 %v1073_v29, %v1072_v28 }
 0x328   :  { %v8036_v47 = vpack.c.bf16 %v1071_v42, %v1070_v38  ;;  %v6349_v39 = vpop.f32.mrb[20].mxu1 }
 0x329   :  { %v993_v48 = vadd.f32 %v6349_v39, %v7955_v9  ;;  %v984_v53 = vpop.f32.mrb[21].mxu1 }
 0x32a   :  { %v985_v27 = vadd.f32 %v7955_v9, %v984_v53  ;;  %v6350_v59 = vpop.f32.mrb[22].mxu1  ;;  %6367 = vmatprep.mubr.msk.bf16.mxu1 %vm261_vm0, %v8036_v47 }
 0x32b   :  { %v996_v58 = vadd.f32 %v6350_v59, %v7955_v9  ;;  %v987_v0 = vpop.f32.mrb[23].mxu1  ;;  %6368 = vmatmul.mubr.msk.bf16.gmra.mrb[36].mxu1 %vm261_vm0, %v8034_v46  ;;  %v1076_v2 = vadd.f32 %v1052_v37, %v993_v48 }
 0x32c   :  { %v988_v17 = vadd.f32 %v7955_v9, %v987_v0  ;;  %v1074_v16 = vadd.f32 %v1050_v54, %v985_v27 }
 0x32d   :  { %v1077_v12 = vadd.f32 %v1053_v57, %v996_v58 }
 0x32e   :  { %v1075_v3 = vadd.f32 %v1051_v63, %v988_v17 }
 0x32f   :  { %v1089_v4 = vpack.c.bf16 %v1077_v12, %v1076_v2 }
 0x330   :  { %v8050_v5 = vpack.c.bf16 %v1075_v3, %v1074_v16 }
 0x331   :  { %v1770_v10 = vunpack.c.l.bf16 %v1089_v4  ;;  %v1771_v13 = vunpack.c.h.bf16 %v1089_v4 }
 0x332   :  { %6371 = vmatprep.mubr.msk.bf16.mxu1 %vm261_vm0, %v8050_v5 }
 0x333   :  { %6372 = vmatmul.mubr.msk.bf16.gmra.mrb[40].mxu1 %vm261_vm0, %v1089_v4  ;;  %v8058_v7 = vmul.f32 %v8054_v30, %v1770_v10  ;;  %v8061_v9 = vmul.f32 %v8054_v30, %v1771_v13 }
 0x334   :  { %6379 = vmatprep.mubr.msk.bf16.mxu1 %vm261_vm0, %v1078_v55 }
 0x33b   :  { %6380 = vmatmul.mubr.msk.bf16.vlgmr.msra.gmra.mrb[24].mxu1 %vm261_vm0, %v1079_v60 }
 0x33c   :  { %6383 = vmatprep.mubr.msk.bf16.mxu1 %vm261_vm0, %v7987_v23 }
 0x343   :  { %6384 = vmatmul.mubr.msk.bf16.gmra.mrb[28].mxu1 %vm261_vm0, %v7985_v22 }
 0x344   :  { %6387 = vmatprep.mubr.msk.bf16.mxu1 %vm261_vm0, %v8004_v52 }
 0x34b   :  { %6388 = vmatmul.mubr.msk.bf16.gmra.mrb[32].mxu1 %vm261_vm0, %v8002_v36 }
 0x34c   :  { %6391 = vmatprep.mubr.msk.bf16.mxu1 %vm261_vm0, %v8020_v19 }
 0x353   :  { %6392 = vmatmul.mubr.msk.bf16.gmra.mrb[36].mxu1 %vm261_vm0, %v8018_v18 }
 0x354   :  { %6395 = vmatprep.mubr.msk.bf16.mxu1 %vm261_vm0, %v8036_v47 }
 0x35b   :  { %6396 = vmatmul.mubr.msk.bf16.gmra.mrb[40].mxu1 %vm261_vm0, %v8034_v46 }
 0x40e   :  { %v6381_v51 = vpop.f32.mrb[24].mxu1 }
 0x40f   :  { %v1396_v60 = vadd.f32 %v6381_v51, %v8090_v50  ;;  %v1307_v55 = vpop.f32.mrb[25].mxu1 }
 0x410   :  { %v1394_v11 = vadd.f32 %v8090_v50, %v1307_v55  ;;  %v6382_v14 = vpop.f32.mrb[26].mxu1 }
 0x411   :  { %7166 = vtanh.f32 %v1396_v60  ;;  %v1397_v33 = vadd.f32 %v6382_v14, %v8090_v50  ;;  %v1310_v40 = vpop.f32.mrb[27].mxu1 }
 0x412   :  { %7168 = vtanh.f32 %v1394_v11  ;;  %v1395_v20 = vadd.f32 %v8090_v50, %v1310_v40 }
 0x413   :  { %7170 = vtanh.f32 %v1397_v33 }
 0x414   :  { %7172 = vtanh.f32 %v1395_v20 }
 0x416   :  { %v6385_v31 = vpop.f32.mrb[28].mxu1 }
 0x417   :  { %v1400_v34 = vadd.f32 %v6385_v31, %v8090_v50  ;;  %v1323_v21 = vpop.f32.mrb[29].mxu1 }
 0x418   :  { %v1398_v61 = vadd.f32 %v8090_v50, %v1323_v21  ;;  %v6386_v1 = vpop.f32.mrb[30].mxu1 }
 0x419   :  { %7174 = vtanh.f32 %v1400_v34  ;;  %v1401_v24 = vadd.f32 %v6386_v1, %v8090_v50  ;;  %v1326_v25 = vpop.f32.mrb[31].mxu1 }
 0x41a   :  { %7176 = vtanh.f32 %v1398_v61  ;;  %v1399_v26 = vadd.f32 %v8090_v50, %v1326_v25 }
 0x41b   :  { %v8100_v56 = vpop.eup %7166  ;;  %7178 = vtanh.f32 %v1401_v24 }
 0x41c   :  { %v8102_v8 = vpop.eup %7168  ;;  %7180 = vtanh.f32 %v1399_v26  ;;  %v1436_v43 = vadd.f32 1.0, %v8100_v56 }
 0x41d   :  { %v8104_v15 = vpop.eup %7170  ;;  %v1434_v28 = vadd.f32 1.0, %v8102_v8 }
 0x41e   :  { %v8107_v29 = vpop.eup %7172  ;;  %v6389_v6 = vpop.f32.mrb[32].mxu1  ;;  %v1437_v53 = vadd.f32 1.0, %v8104_v15  ;;  %v1456_v54 = vmul.f32 0.5, %v1436_v43 }
 0x41f   :  { %v1404_v32 = vadd.f32 %v6389_v6, %v8090_v50  ;;  %v1339_v35 = vpop.f32.mrb[33].mxu1  ;;  %v1454_v38 = vmul.f32 0.5, %v1434_v28  ;;  %v1435_v42 = vadd.f32 1.0, %v8107_v29 }
 0x420   :  { %v1402_v44 = vadd.f32 %v8090_v50, %v1339_v35  ;;  %v6390_v45 = vpop.f32.mrb[34].mxu1  ;;  %v1457_v58 = vmul.f32 0.5, %v1437_v53 }
 0x421   :  { %7182 = vtanh.f32 %v1404_v32  ;;  %v1405_v39 = vadd.f32 %v6390_v45, %v8090_v50  ;;  %1494 = vrot.lane.b32.xlu0 %v1454_v38, %s7563_s24  ;;  %v1342_v48 = vpop.f32.mrb[35].mxu1  ;;  %v1455_v37 = vmul.f32 0.5, %v1435_v42 }
 0x422   :  { %7184 = vtanh.f32 %v1402_v44  ;;  %v1403_v57 = vadd.f32 %v8090_v50, %v1342_v48 }
 0x423   :  { %v8117_v27 = vpop.eup %7174  ;;  %7186 = vtanh.f32 %v1405_v39  ;;  %1496 = vrot.lane.b32.xlu1 %v1455_v37, %s7563_s24 }
 0x424   :  { %v8120_v59 = vpop.eup %7176  ;;  %7188 = vtanh.f32 %v1403_v57  ;;  %v1440_v10 = vadd.f32 1.0, %v8117_v27 }
 0x425   :  { %v8122_v63 = vpop.eup %7178  ;;  %1498 = vrot.lane.b32.xlu0 %v1456_v54, %s7563_s24  ;;  %v1438_v0 = vadd.f32 1.0, %v8120_v59 }
 0x426   :  { %v8126_v17 = vpop.eup %7180  ;;  %v6393_v2 = vpop.f32.mrb[36].mxu1  ;;  %v1441_v55 = vadd.f32 1.0, %v8122_v63  ;;  %v1460_v33 = vmul.f32 0.5, %v1440_v10 }
 0x427   :  { %v1408_v12 = vadd.f32 %v6393_v2, %v8090_v50  ;;  %1500 = vrot.lane.b32.xlu1 %v1457_v58, %s7563_s24  ;;  %v1355_v16 = vpop.f32.mrb[37].mxu1  ;;  %v1458_v3 = vmul.f32 0.5, %v1438_v0  ;;  %v1439_v4 = vadd.f32 1.0, %v8126_v17 }
 0x428   :  { %v1406_v13 = vadd.f32 %v8090_v50, %v1355_v16  ;;  %v6394_v41 = vpop.f32.mrb[38].mxu1  ;;  %v1461_v31 = vmul.f32 0.5, %v1441_v55 }
 0x429   :  { %7190 = vtanh.f32 %v1408_v12  ;;  %v1409_v49 = vadd.f32 %v6394_v41, %v8090_v50  ;;  %1502 = vrot.lane.b32.xlu0 %v1458_v3, %s7563_s24  ;;  %v1358_v51 = vpop.f32.mrb[39].mxu1  ;;  %v1459_v60 = vmul.f32 0.5, %v1439_v4 }
 0x42a   :  { %7192 = vtanh.f32 %v1406_v13  ;;  %v1407_v11 = vadd.f32 %v8090_v50, %v1358_v51  ;;  %v6896_v51 = vld [vmem:[#allocation7 + $0x20] sm:$0xff]  }
 0x42b   :  { %v8137_v14 = vpop.eup %7182  ;;  %7194 = vtanh.f32 %v1409_v49  ;;  %1504 = vrot.lane.b32.xlu1 %v1459_v60, %s7563_s24 }
 0x42c   :  { %v8140_v40 = vpop.eup %7184  ;;  %7196 = vtanh.f32 %v1407_v11  ;;  %v1444_v28 = vadd.f32 1.0, %v8137_v14 }
 0x42d   :  { %v8142_v20 = vpop.eup %7186  ;;  %1506 = vrot.lane.b32.xlu0 %v1460_v33, %s7563_s24  ;;  %v1442_v34 = vadd.f32 1.0, %v8140_v40  ;;  %v7564_v33 = vmov 0.0  }
 0x42e   :  { %v8146_v21 = vpop.eup %7188  ;;  %v6397_v61 = vpop.f32.mrb[40].mxu1  ;;  %v1445_v43 = vadd.f32 1.0, %v8142_v20  ;;  %v1464_v39 = vmul.f32 0.5, %v1444_v28  ;;  %6423 = vmatprep.subr.bf16.mxu1 %v7564_v33  ;;  %6463 = vmatprep.subr.bf16.mxu0 %v7564_v33 }
 0x42f   :  { %v1412_v1 = vadd.f32 %v6397_v61, %v8090_v50  ;;  %1508 = vrot.lane.b32.xlu1 %v1461_v31, %s7563_s24  ;;  %v1371_v24 = vpop.f32.mrb[41].mxu1  ;;  %v1462_v25 = vmul.f32 0.5, %v1442_v34  ;;  %v1443_v26 = vadd.f32 1.0, %v8146_v21  ;;  %6424 = vmatpush3.bf16.msra.mxu1 %v6896_v51  ;;  %v6898_v31 = vld [vmem:[#allocation7 + $0x28] sm:$0xff]  }
 0x430   :  { %v1410_v6 = vadd.f32 %v8090_v50, %v1371_v24  ;;  %v6398_v32 = vpop.f32.mrb[42].mxu1  ;;  %v1465_v53 = vmul.f32 0.5, %v1445_v43  ;;  %6425 = vmatprep.subr.bf16.mxu1 %v7564_v33  ;;  %6427 = vmatprep.mubr.msk.bf16.mxu1 %vm7565_vm1, %v7564_v33 }
 0x431   :  { %7198 = vtanh.f32 %v1412_v1  ;;  %v1413_v35 = vadd.f32 %v6398_v32, %v8090_v50  ;;  %1510 = vrot.lane.b32.xlu0 %v1462_v25, %s7563_s24  ;;  %v1374_v38 = vpop.f32.mrb[43].mxu1  ;;  %v1463_v42 = vmul.f32 0.5, %v1443_v26 }
 0x432   :  { %7200 = vtanh.f32 %v1410_v6  ;;  %v1411_v44 = vadd.f32 %v8090_v50, %v1374_v38 }
 0x433   :  { %v8157_v45 = vpop.eup %7190  ;;  %7202 = vtanh.f32 %v1413_v35  ;;  %1512 = vrot.lane.b32.xlu1 %v1463_v42, %s7563_s24  ;;  %6426 = vmatpush3.bf16.msra.mxu1 %v6898_v31 }
 0x434   :  { %v8160_v48 = vpop.eup %7192  ;;  %7204 = vtanh.f32 %v1411_v44  ;;  %v1448_v0 = vadd.f32 1.0, %v8157_v45  ;;  %6503 = vmatprep.subr.bf16.mxu1 %v7564_v33 }
 0x435   :  { %v8162_v37 = vpop.eup %7194  ;;  %1514 = vrot.lane.b32.xlu0 %v1464_v39, %s7563_s24  ;;  %v1446_v57 = vadd.f32 1.0, %v8160_v48  ;;  %v6897_v39 = vld [vmem:[#allocation5 + $0x20] sm:$0xff]  }
 0x436   :  { %v8166_v54 = vpop.eup %7196  ;;  %v1449_v12 = vadd.f32 1.0, %v8162_v37  ;;  %v1468_v3 = vmul.f32 0.5, %v1448_v0 }
 0x437   :  { %1516 = vrot.lane.b32.xlu1 %v1465_v53, %s7563_s24  ;;  %v1466_v50 = vmul.f32 0.5, %v1446_v57  ;;  %v1447_v58 = vadd.f32 1.0, %v8166_v54 }
 0x438   :  { %v1469_v13 = vmul.f32 0.5, %v1449_v12 }
 0x439   :  { %1518 = vrot.lane.b32.xlu0 %v1466_v50, %s7563_s24  ;;  %v1467_v2 = vmul.f32 0.5, %v1447_v58 }
 0x43b   :  { %v8173_v16 = vpop.eup %7198  ;;  %1520 = vrot.lane.b32.xlu1 %v1467_v2, %s7563_s24 }
 0x43c   :  { %v8176_v4 = vpop.eup %7200  ;;  %v1452_v11 = vadd.f32 1.0, %v8173_v16 }
 0x43d   :  { %v8178_v10 = vpop.eup %7202  ;;  %1522 = vrot.lane.b32.xlu0 %v1468_v3, %s7563_s24  ;;  %v1450_v41 = vadd.f32 1.0, %v8176_v4 }
 0x43e   :  { %v8182_v49 = vpop.eup %7204  ;;  %v1453_v61 = vadd.f32 1.0, %v8178_v10  ;;  %v1472_v1 = vmul.f32 0.5, %v1452_v11 }
 0x43f   :  { %1524 = vrot.lane.b32.xlu1 %v1469_v13, %s7563_s24  ;;  %v1470_v60 = vmul.f32 0.5, %v1450_v41  ;;  %v1451_v55 = vadd.f32 1.0, %v8182_v49 }
 0x440   :  { %v1473_v24 = vmul.f32 0.5, %v1453_v61 }
 0x441   :  { %1526 = vrot.lane.b32.xlu0 %v1470_v60, %s7563_s24  ;;  %v1471_v34 = vmul.f32 0.5, %v1451_v55 }
 0x443   :  { %1528 = vrot.lane.b32.xlu1 %v1471_v34, %s7563_s24 }
 0x445   :  { %1530 = vrot.lane.b32.xlu0 %v1472_v1, %s7563_s24 }
 0x447   :  { %1532 = vrot.lane.b32.xlu1 %v1473_v24, %s7563_s24 }
 0x493   :  { %v1495_v25 = vpop.permute.xlu0 %1494 }
 0x494   :  { %v1554_v28 = vmul.f32 %v8102_v8, %v1495_v25 }
 0x495   :  { %v1497_v26 = vpop.permute.xlu1 %1496 }
 0x496   :  { %v1555_v6 = vmul.f32 %v8107_v29, %v1497_v26  ;;  %v6899_v29 = vld [vmem:[#allocation5 + $0x28] sm:$0xff]  }
 0x497   :  { %v1499_v32 = vpop.permute.xlu0 %1498 }
 0x498   :  { %v1574_v35 = vpack.c.bf16 %v1555_v6, %v1554_v28  ;;  %v1556_v42 = vmul.f32 %v8100_v56, %v1499_v32 }
 0x499   :  { %v1501_v38 = vpop.permute.xlu1 %1500 }
 0x49a   :  { %v1557_v43 = vmul.f32 %v8104_v15, %v1501_v38  ;;  %6403 = vmatprep.mubr.msk.bf16.mxu0 %vm261_vm0, %v1574_v35 }
 0x49b   :  { %v1503_v44 = vpop.permute.xlu0 %1502 }
 0x49c   :  { %v1575_v53 = vpack.c.bf16 %v1557_v43, %v1556_v42  ;;  %v1558_v50 = vmul.f32 %v8120_v59, %v1503_v44  ;;  %v1753_v42 = vunpack.c.h.bf16 %v7987_v23 }
 0x49d   :  { %v1505_v57 = vpop.permute.xlu1 %1504 }
 0x49e   :  { %v1559_v58 = vmul.f32 %v8126_v17, %v1505_v57  ;;  %6404 = vmatmul.mubr.msk.bf16.vlgmr.msra.gmra.mrb[24].mxu0 %vm261_vm0, %v1575_v53 }
 0x49f   :  { %v1507_v8 = vpop.permute.xlu0 %1506  ;;  %6464 = vmatpush3.bf16.msra.mxu0 %v6897_v39 }
 0x4a0   :  { %v1576_v0 = vpack.c.bf16 %v1559_v58, %v1558_v50  ;;  %6465 = vmatprep.subr.bf16.mxu0 %v7564_v33  ;;  %v1560_v15 = vmul.f32 %v8117_v27, %v1507_v8 }
 0x4a1   :  { %v1509_v56 = vpop.permute.xlu1 %1508 }
 0x4a2   :  { %v1561_v2 = vmul.f32 %v8122_v63, %v1509_v56  ;;  %6407 = vmatprep.mubr.msk.bf16.mxu0 %vm261_vm0, %v1576_v0 }
 0x4a3   :  { %v1511_v12 = vpop.permute.xlu0 %1510  ;;  %6466 = vmatpush3.bf16.msra.mxu0 %v6899_v29 }
 0x4a4   :  { %v1577_v59 = vpack.c.bf16 %v1561_v2, %v1560_v15  ;;  %6543 = vmatprep.subr.bf16.mxu0 %v7564_v33  ;;  %v1562_v3 = vmul.f32 %v8140_v40, %v1511_v12  ;;  %v1758_v2 = vunpack.c.l.bf16 %v8002_v36 }
 0x4a5   :  { %v1513_v17 = vpop.permute.xlu1 %1512 }
 0x4a6   :  { %v1563_v13 = vmul.f32 %v8146_v21, %v1513_v17  ;;  %6408 = vmatmul.mubr.msk.bf16.gmra.mrb[28].mxu0 %vm261_vm0, %v1577_v59  ;;  %v1756_v59 = vunpack.c.l.bf16 %v8004_v52 }
 0x4a7   :  { %v1515_v41 = vpop.permute.xlu0 %1514 }
 0x4a8   :  { %v1578_v51 = vpack.c.bf16 %v1563_v13, %v1562_v3  ;;  %v1564_v27 = vmul.f32 %v8137_v14, %v1515_v41  ;;  %v1759_v3 = vunpack.c.h.bf16 %v8002_v36 }
 0x4a9   :  { %v1517_v60 = vpop.permute.xlu1 %1516 }
 0x4aa   :  { %v1565_v63 = vmul.f32 %v8142_v20, %v1517_v60  ;;  %6411 = vmatprep.mubr.msk.bf16.mxu0 %vm261_vm0, %v1578_v51  ;;  %v1757_v51 = vunpack.c.h.bf16 %v8004_v52 }
 0x4ab   :  { %v1519_v55 = vpop.permute.xlu0 %1518 }
 0x4ac   :  { %v1579_v11 = vpack.c.bf16 %v1565_v63, %v1564_v27  ;;  %v1566_v34 = vmul.f32 %v8160_v48, %v1519_v55  ;;  %v1786_v27 = vmul.f32 %v8054_v30, %v1758_v2 }
 0x4ad   :  { %v1521_v31 = vpop.permute.xlu1 %1520 }
 0x4ae   :  { %v1567_v40 = vmul.f32 %v8166_v54, %v1521_v31  ;;  %6412 = vmatmul.mubr.msk.bf16.gmra.mrb[32].mxu0 %vm261_vm0, %v1579_v11  ;;  %v1784_v11 = vmul.f32 %v8054_v30, %v1756_v59  ;;  %v1765_v59 = vunpack.c.h.bf16 %v8036_v47 }
 0x4af   :  { %v1523_v21 = vpop.permute.xlu0 %1522 }
 0x4b0   :  { %v1580_v61 = vpack.c.bf16 %v1567_v40, %v1566_v34  ;;  %v1568_v24 = vmul.f32 %v8157_v45, %v1523_v21  ;;  %v1787_v34 = vmul.f32 %v8054_v30, %v1759_v3 }
 0x4b1   :  { %v1525_v1 = vpop.permute.xlu1 %1524 }
 0x4b2   :  { %v1569_v14 = vmul.f32 %v8162_v37, %v1525_v1  ;;  %6415 = vmatprep.mubr.msk.bf16.mxu0 %vm261_vm0, %v1580_v61  ;;  %v1785_v1 = vmul.f32 %v8054_v30, %v1757_v51 }
 0x4b3   :  { %v1527_v20 = vpop.permute.xlu0 %1526 }
 0x4b4   :  { %v1581_v25 = vpack.c.bf16 %v1569_v14, %v1568_v24  ;;  %v1570_v28 = vmul.f32 %v8176_v4, %v1527_v20  ;;  %v1754_v4 = vunpack.c.l.bf16 %v7985_v22  ;;  %v1762_v14 = vunpack.c.l.bf16 %v8018_v18 }
 0x4b5   :  { %v1529_v26 = vpop.permute.xlu1 %1528  ;;  %v1763_v20 = vunpack.c.h.bf16 %v8018_v18 }
 0x4b6   :  { %v1571_v48 = vmul.f32 %v8182_v49, %v1529_v26  ;;  %6416 = vmatmul.mubr.msk.bf16.gmra.mrb[36].mxu0 %vm261_vm0, %v1581_v25  ;;  %v1755_v49 = vunpack.c.h.bf16 %v7985_v22  ;;  %v1782_v44 = vmul.f32 %v8054_v30, %v1754_v4  ;;  %v1760_v26 = vunpack.c.l.bf16 %v8020_v19 }
 0x4b7   :  { %v1531_v54 = vpop.permute.xlu0 %1530  ;;  %v1791_v4 = vmul.f32 %v8054_v30, %v1763_v20 }
 0x4b8   :  { %v1582_v6 = vpack.c.bf16 %v1571_v48, %v1570_v28  ;;  %v1572_v35 = vmul.f32 %v8173_v16, %v1531_v54  ;;  %v8239_v16 = vld [vmem:[%s9157_s5 + $0x1] ss:$0 sm:$0xff]  ;;  %v1783_v29 = vmul.f32 %v8054_v30, %v1755_v49  ;;  %v1761_v48 = vunpack.c.h.bf16 %v8020_v19 }
 0x4b9   :  { %v1533_v32 = vpop.permute.xlu1 %1532  ;;  %v1788_v18 = vmul.f32 %v8054_v30, %v1760_v26 }
 0x4ba   :  { %v1573_v45 = vmul.f32 %v8178_v10, %v1533_v32  ;;  %6419 = vmatprep.mubr.msk.bf16.mxu0 %vm261_vm0, %v1582_v6  ;;  %v1752_v10 = vunpack.c.l.bf16 %v7987_v23  ;;  %v1781_v23 = vmul.f32 %v8054_v30, %v1753_v42 }
 0x4bc   :  { %v8227_v37 = vpack.c.bf16 %v1573_v45, %v1572_v35  ;;  %v1780_v57 = vmul.f32 %v8054_v30, %v1752_v10  ;;  %v1790_v35 = vmul.f32 %v8054_v30, %v1762_v14 }
 0x4be   :  { %6420 = vmatmul.mubr.msk.bf16.gmra.mrb[40].mxu0 %vm261_vm0, %v8227_v37 }
 0x4bf   :  { %6467 = vmatprep.mubr.msk.bf16.mxu0 %vm7565_vm1, %v7564_v33 }
 0x571   :  { %v6405_v38 = vpop.f32.mrb[24].mxu0 }
 0x572   :  { %v1682_v43 = vadd.f32 %v6405_v38, %v8239_v16  ;;  %v1673_v39 = vpop.f32.mrb[25].mxu0 }
 0x573   :  { %v1674_v53 = vadd.f32 %v8239_v16, %v1673_v39  ;;  %v6406_v50 = vpop.f32.mrb[26].mxu0  ;;  %v1789_v39 = vmul.f32 %v8054_v30, %v1761_v48 }
 0x574   :  { %v1802_v58 = vadd.f32 %v1782_v44, %v1682_v43  ;;  %v1685_v8 = vadd.f32 %v6406_v50, %v8239_v16  ;;  %v1676_v0 = vpop.f32.mrb[27].mxu0 }
 0x575   :  { %v1800_v22 = vadd.f32 %v1780_v57, %v1674_v53  ;;  %v1677_v56 = vadd.f32 %v8239_v16, %v1676_v0  ;;  %v8293_v53 = vld [vmem:[#allocation10 + $0x2] ss:$0 sm:$0xff]  ;;  %v1766_v0 = vunpack.c.l.bf16 %v8034_v46 }
 0x576   :  { %v1803_v15 = vadd.f32 %v1783_v29, %v1685_v8 }
 0x577   :  { %v1801_v12 = vadd.f32 %v1781_v23, %v1677_v56  ;;  %v1764_v56 = vunpack.c.l.bf16 %v8036_v47 }
 0x578   :  { %v8254_v17 = vpack.c.bf16 %v1803_v15, %v1802_v58  ;;  %v1767_v15 = vunpack.c.h.bf16 %v8034_v46 }
 0x579   :  { %v1820_v13 = vpack.c.bf16 %v1801_v12, %v1800_v22  ;;  %v6409_v41 = vpop.f32.mrb[28].mxu0 }
 0x57a   :  { %v1698_v60 = vadd.f32 %v6409_v41, %v8239_v16  ;;  %v1689_v63 = vpop.f32.mrb[29].mxu0  ;;  %6428 = vmatmul.mubr.msk.bf16.vlgmr.msra.gmra.mrb[44].mxu1 %vm261_vm0, %v8254_v17  ;;  %v1795_v47 = vmul.f32 %v8054_v30, %v1767_v15 }
 0x57b   :  { %v1690_v55 = vadd.f32 %v8239_v16, %v1689_v63  ;;  %v6410_v31 = vpop.f32.mrb[30].mxu0  ;;  %6468 = vmatmul.mubr.msk.bf16.vlgmr.msra.gmra.mrb[44].mxu0 %vm261_vm0, %v1820_v13  ;;  %6431 = vmatprep.mubr.msk.bf16.mxu1 %vm7565_vm1, %v7564_v33  ;;  %v1794_v13 = vmul.f32 %v8054_v30, %v1766_v0 }
 0x57c   :  { %v1806_v36 = vadd.f32 %v1786_v27, %v1698_v60  ;;  %v1701_v52 = vadd.f32 %v6410_v31, %v8239_v16  ;;  %v1692_v40 = vpop.f32.mrb[31].mxu0  ;;  %6471 = vmatprep.mubr.msk.bf16.mxu0 %vm7565_vm1, %v7564_v33  ;;  %v1792_v60 = vmul.f32 %v8054_v30, %v1764_v56 }
 0x57d   :  { %v1804_v21 = vadd.f32 %v1784_v11, %v1690_v55  ;;  %v1693_v61 = vadd.f32 %v8239_v16, %v1692_v40  ;;  %v1768_v40 = vunpack.c.l.bf16 %v8050_v5 }
 0x57e   :  { %v1807_v24 = vadd.f32 %v1787_v34, %v1701_v52 }
 0x57f   :  { %v1805_v25 = vadd.f32 %v1785_v1, %v1693_v61  ;;  %v1796_v26 = vmul.f32 %v8054_v30, %v1768_v40 }
 0x580   :  { %v8276_v28 = vpack.c.bf16 %v1807_v24, %v1806_v36  ;;  %v1793_v36 = vmul.f32 %v8054_v30, %v1765_v59  ;;  %v1769_v24 = vunpack.c.h.bf16 %v8050_v5 }
 0x581   :  { %v1822_v54 = vpack.c.bf16 %v1805_v25, %v1804_v21  ;;  %v6413_v6 = vpop.f32.mrb[32].mxu0 }
 0x582   :  { %v1714_v32 = vadd.f32 %v6413_v6, %v8239_v16  ;;  %v1705_v45 = vpop.f32.mrb[33].mxu0 }
 0x583   :  { %v1706_v10 = vadd.f32 %v8239_v16, %v1705_v45  ;;  %v6414_v49 = vpop.f32.mrb[34].mxu0  ;;  %6432 = vmatmul.mubr.msk.bf16.gmra.mrb[48].mxu1 %vm261_vm0, %v1822_v54  ;;  %6472 = vmatmul.mubr.msk.bf16.gmra.mrb[48].mxu0 %vm261_vm0, %v8254_v17  ;;  %v2442_v19 = vunpack.c.l.bf16 %v1822_v54  ;;  %v2443_v38 = vunpack.c.h.bf16 %v1822_v54  ;;  %v1797_v45 = vmul.f32 %v8054_v30, %v1769_v24  ;;  %v6900_v30 = vld [vmem:[#allocation8 + $0x20] sm:$0xff]  }
 0x584   :  { %v1810_v42 = vadd.f32 %v1790_v35, %v1714_v32  ;;  %v1717_v43 = vadd.f32 %v6414_v49, %v8239_v16  ;;  %v1708_v44 = vpop.f32.mrb[35].mxu0  ;;  %6435 = vmatprep.mubr.msk.bf16.mxu1 %vm7565_vm1, %v7564_v33  ;;  %6475 = vmatprep.mubr.msk.bf16.mxu0 %vm7565_vm1, %v7564_v33 }
 0x585   :  { %v1808_v57 = vadd.f32 %v1788_v18, %v1706_v10  ;;  %v1709_v50 = vadd.f32 %v8239_v16, %v1708_v44  ;;  %v8297_v58 = vmul.f32 %v8293_v53, %v2442_v19  ;;  %v8300_v8 = vmul.f32 %v8293_v53, %v2443_v38  ;;  %6504 = vmatpush3.bf16.msra.mxu1 %v6900_v30  ;;  %v8396_v38 = vld [vmem:[%s9155_s3 + $0x2] ss:$0 sm:$0xff] }
 0x586   :  { %v1811_v29 = vadd.f32 %v1791_v4, %v1717_v43  ;;  %6505 = vmatprep.subr.bf16.mxu1 %v7564_v33 }
 0x587   :  { %v1809_v22 = vadd.f32 %v1789_v39, %v1709_v50 }
 0x588   :  { %v8304_v23 = vpack.c.bf16 %v1811_v29, %v1810_v42 }
 0x589   :  { %v8307_v2 = vpack.c.bf16 %v1809_v22, %v1808_v57  ;;  %v6417_v12 = vpop.f32.mrb[36].mxu0 }
 0x58a   :  { %v1730_v3 = vadd.f32 %v6417_v12, %v8239_v16  ;;  %v1721_v41 = vpop.f32.mrb[37].mxu0 }
 0x58b   :  { %v1722_v51 = vadd.f32 %v8239_v16, %v1721_v41  ;;  %v6418_v27 = vpop.f32.mrb[38].mxu0  ;;  %6436 = vmatmul.mubr.msk.bf16.gmra.mrb[52].mxu1 %vm261_vm0, %v8276_v28  ;;  %6476 = vmatmul.mubr.msk.bf16.gmra.mrb[52].mxu0 %vm261_vm0, %v1822_v54 }
 0x58c   :  { %v1814_v46 = vadd.f32 %v1794_v13, %v1730_v3  ;;  %v1733_v63 = vadd.f32 %v6418_v27, %v8239_v16  ;;  %v1724_v55 = vpop.f32.mrb[39].mxu0  ;;  %6439 = vmatprep.mubr.msk.bf16.mxu1 %vm7565_vm1, %v7564_v33  ;;  %6479 = vmatprep.mubr.msk.bf16.mxu0 %vm7565_vm1, %v7564_v33 }
 0x58d   :  { %v1812_v11 = vadd.f32 %v1792_v60, %v1722_v51  ;;  %v1725_v31 = vadd.f32 %v8239_v16, %v1724_v55 }
 0x58e   :  { %v1815_v52 = vadd.f32 %v1795_v47, %v1733_v63 }
 0x58f   :  { %v1813_v34 = vadd.f32 %v1793_v36, %v1725_v31 }
 0x590   :  { %v8326_v21 = vpack.c.bf16 %v1815_v52, %v1814_v46 }
 0x591   :  { %v8328_v61 = vpack.c.bf16 %v1813_v34, %v1812_v11  ;;  %v6421_v1 = vpop.f32.mrb[40].mxu0 }
 0x592   :  { %v1746_v14 = vadd.f32 %v6421_v1, %v8239_v16  ;;  %v1737_v20 = vpop.f32.mrb[41].mxu0 }
 0x593   :  { %v1738_v25 = vadd.f32 %v8239_v16, %v1737_v20  ;;  %v6422_v48 = vpop.f32.mrb[42].mxu0  ;;  %6440 = vmatmul.mubr.msk.bf16.gmra.mrb[56].mxu1 %vm261_vm0, %v8307_v2  ;;  %6480 = vmatmul.mubr.msk.bf16.gmra.mrb[56].mxu0 %vm261_vm0, %v8276_v28 }
 0x594   :  { %v1818_v54 = vadd.f32 %v8058_v7, %v1746_v14  ;;  %v1749_v6 = vadd.f32 %v6422_v48, %v8239_v16  ;;  %v1740_v32 = vpop.f32.mrb[43].mxu0  ;;  %6443 = vmatprep.mubr.msk.bf16.mxu1 %vm7565_vm1, %v7564_v33  ;;  %6483 = vmatprep.mubr.msk.bf16.mxu0 %vm7565_vm1, %v7564_v33 }
 0x595   :  { %v1816_v5 = vadd.f32 %v1796_v26, %v1738_v25  ;;  %v1741_v35 = vadd.f32 %v8239_v16, %v1740_v32 }
 0x596   :  { %v1819_v4 = vadd.f32 %v8061_v9, %v1749_v6  ;;  %v6901_v9 = vld [vmem:[#allocation8 + $0x28] sm:$0xff]  }
 0x597   :  { %v1817_v10 = vadd.f32 %v1797_v45, %v1741_v35  ;;  %6506 = vmatpush3.bf16.msra.mxu1 %v6901_v9 }
 0x598   :  { %v8347_v18 = vpack.c.bf16 %v1819_v4, %v1818_v54  ;;  %6607 = vmatprep.subr.bf16.mxu1 %v7564_v33 }
 0x599   :  { %v8349_v7 = vpack.c.bf16 %v1817_v10, %v1816_v5 }
 0x59b   :  { %6444 = vmatmul.mubr.msk.bf16.gmra.mrb[60].mxu1 %vm261_vm0, %v8304_v23  ;;  %6484 = vmatmul.mubr.msk.bf16.gmra.mrb[60].mxu0 %vm261_vm0, %v8307_v2 }
 0x59c   :  { %6447 = vmatprep.mubr.msk.bf16.mxu1 %vm7565_vm1, %v7564_v33  ;;  %6487 = vmatprep.mubr.msk.bf16.mxu0 %vm7565_vm1, %v7564_v33 }
 0x5a3   :  { %6448 = vmatmul.mubr.msk.bf16.gmra.mrb[64].mxu1 %vm261_vm0, %v8328_v61  ;;  %6488 = vmatmul.mubr.msk.bf16.gmra.mrb[64].mxu0 %vm261_vm0, %v8304_v23 }
 0x5a4   :  { %6451 = vmatprep.mubr.msk.bf16.mxu1 %vm7565_vm1, %v7564_v33  ;;  %6491 = vmatprep.mubr.msk.bf16.mxu0 %vm7565_vm1, %v7564_v33 }
 0x5ab   :  { %6452 = vmatmul.mubr.msk.bf16.gmra.mrb[68].mxu1 %vm261_vm0, %v8326_v21  ;;  %6492 = vmatmul.mubr.msk.bf16.gmra.mrb[68].mxu0 %vm261_vm0, %v8328_v61 }
 0x5ac   :  { %6455 = vmatprep.mubr.msk.bf16.mxu1 %vm7565_vm1, %v7564_v33  ;;  %6495 = vmatprep.mubr.msk.bf16.mxu0 %vm7565_vm1, %v7564_v33 }
 0x5b3   :  { %6456 = vmatmul.mubr.msk.bf16.gmra.mrb[72].mxu1 %vm261_vm0, %v8349_v7  ;;  %6496 = vmatmul.mubr.msk.bf16.gmra.mrb[72].mxu0 %vm261_vm0, %v8326_v21 }
 0x5b4   :  { %6459 = vmatprep.mubr.msk.bf16.mxu1 %vm7565_vm1, %v7564_v33  ;;  %6499 = vmatprep.mubr.msk.bf16.mxu0 %vm7565_vm1, %v7564_v33 }
 0x5bb   :  { %6460 = vmatmul.mubr.msk.bf16.gmra.mrb[76].mxu1 %vm261_vm0, %v8347_v18  ;;  %6500 = vmatmul.mubr.msk.bf16.gmra.mrb[76].mxu0 %vm261_vm0, %v8349_v7 }
 0x5bc   :  { %6507 = vmatprep.mubr.msk.bf16.mxu1 %vm7565_vm1, %v7564_v33  ;;  %6547 = vmatprep.mubr.msk.bf16.mxu0 %vm7565_vm1, %v7564_v33 }
 0x64d   :  { %v1913_v16 = vpop.f32.mrb[44].mxu1 }
 0x64e   :  { %v6429_v49 = vpop.f32.mrb[45].mxu1  ;;  %v2033_v19 = vpop.f32.mrb[44].mxu0 }
 0x64f   :  { %v2034_v42 = vadd.f32 %v2033_v19, %v1913_v16  ;;  %v1916_v43 = vpop.f32.mrb[46].mxu1  ;;  %v6469_v44 = vpop.f32.mrb[45].mxu0 }
 0x650   :  { %v6430_v39 = vpop.f32.mrb[47].mxu1  ;;  %v2036_v57 = vpop.f32.mrb[46].mxu0 }
 0x651   :  { %v2112_v50 = vadd.f32 %v8396_v38, %v2034_v42  ;;  %v2037_v29 = vadd.f32 %v2036_v57, %v1916_v43  ;;  %v6470_v0 = vpop.f32.mrb[47].mxu0 }
 0x653   :  { %7206 = vtanh.f32 %v2112_v50  ;;  %v2113_v22 = vadd.f32 %v8396_v38, %v2037_v29 }
 0x655   :  { %7208 = vtanh.f32 %v2113_v22 }
 0x656   :  { %v1921_v56 = vpop.f32.mrb[48].mxu1  ;;  %v2041_v15 = vpop.f32.mrb[48].mxu0 }
 0x657   :  { %v2042_v12 = vadd.f32 %v2041_v15, %v1921_v56  ;;  %v6433_v59 = vpop.f32.mrb[49].mxu1  ;;  %v6473_v3 = vpop.f32.mrb[49].mxu0 }
 0x658   :  { %v1924_v13 = vpop.f32.mrb[50].mxu1  ;;  %v2044_v41 = vpop.f32.mrb[50].mxu0 }
 0x659   :  { %v2114_v51 = vadd.f32 %v8396_v38, %v2042_v12  ;;  %v2045_v60 = vadd.f32 %v2044_v41, %v1924_v13  ;;  %v6434_v27 = vpop.f32.mrb[51].mxu1  ;;  %v6474_v46 = vpop.f32.mrb[51].mxu0 }
 0x65b   :  { %7210 = vtanh.f32 %v2114_v51  ;;  %v2115_v63 = vadd.f32 %v8396_v38, %v2045_v60 }
 0x65d   :  { %v8402_v47 = vpop.eup %7206  ;;  %7212 = vtanh.f32 %v2115_v63 }
 0x65e   :  { %v1929_v55 = vpop.f32.mrb[52].mxu1  ;;  %v2049_v11 = vpop.f32.mrb[52].mxu0  ;;  %v2148_v31 = vadd.f32 1.0, %v8402_v47 }
 0x65f   :  { %v8405_v36 = vpop.eup %7208  ;;  %v2050_v52 = vadd.f32 %v2049_v11, %v1929_v55  ;;  %v6437_v34 = vpop.f32.mrb[53].mxu1 }
 0x660   :  { %v6477_v40 = vpop.f32.mrb[53].mxu0  ;;  %v1932_v1 = vpop.f32.mrb[54].mxu1  ;;  %v2166_v14 = vmul.f32 0.5, %v2148_v31  ;;  %v2149_v20 = vadd.f32 1.0, %v8405_v36 }
 0x661   :  { %v2052_v24 = vpop.f32.mrb[54].mxu0  ;;  %v2116_v25 = vadd.f32 %v8396_v38, %v2050_v52  ;;  %v6438_v48 = vpop.f32.mrb[55].mxu1 }
 0x662   :  { %v2053_v26 = vadd.f32 %v2052_v24, %v1932_v1  ;;  %v6478_v54 = vpop.f32.mrb[55].mxu0  ;;  %2202 = vrot.lane.b32.xlu0 %v2166_v14, %s7563_s24  ;;  %v2167_v6 = vmul.f32 0.5, %v2149_v20 }
 0x663   :  { %7214 = vtanh.f32 %v2116_v25 }
 0x664   :  { %v2117_v32 = vadd.f32 %v8396_v38, %v2053_v26  ;;  %2204 = vrot.lane.b32.xlu1 %v2167_v6, %s7563_s24 }
 0x665   :  { %v8412_v5 = vpop.eup %7210 }
 0x666   :  { %7216 = vtanh.f32 %v2117_v32  ;;  %v1937_v35 = vpop.f32.mrb[56].mxu1  ;;  %v2057_v45 = vpop.f32.mrb[56].mxu0  ;;  %v2150_v4 = vadd.f32 1.0, %v8412_v5 }
 0x667   :  { %v8415_v10 = vpop.eup %7212  ;;  %v2058_v30 = vadd.f32 %v2057_v45, %v1937_v35  ;;  %v6441_v9 = vpop.f32.mrb[57].mxu1 }
 0x668   :  { %v6481_v16 = vpop.f32.mrb[57].mxu0  ;;  %v1940_v49 = vpop.f32.mrb[58].mxu1  ;;  %v2168_v42 = vmul.f32 0.5, %v2150_v4  ;;  %v2151_v43 = vadd.f32 1.0, %v8415_v10 }
 0x669   :  { %v2060_v19 = vpop.f32.mrb[58].mxu0  ;;  %v2118_v44 = vadd.f32 %v8396_v38, %v2058_v30  ;;  %v6442_v57 = vpop.f32.mrb[59].mxu1 }
 0x66a   :  { %v2061_v39 = vadd.f32 %v2060_v19, %v1940_v49  ;;  %v6482_v50 = vpop.f32.mrb[59].mxu0  ;;  %2206 = vrot.lane.b32.xlu0 %v2168_v42, %s7563_s24  ;;  %v2169_v29 = vmul.f32 0.5, %v2151_v43 }
 0x66b   :  { %7218 = vtanh.f32 %v2118_v44 }
 0x66c   :  { %v2119_v0 = vadd.f32 %v8396_v38, %v2061_v39  ;;  %2208 = vrot.lane.b32.xlu1 %v2169_v29, %s7563_s24 }
 0x66d   :  { %v8422_v22 = vpop.eup %7214 }
 0x66e   :  { %7220 = vtanh.f32 %v2119_v0  ;;  %v1945_v56 = vpop.f32.mrb[60].mxu1  ;;  %v2065_v15 = vpop.f32.mrb[60].mxu0  ;;  %v2152_v12 = vadd.f32 1.0, %v8422_v22 }
 0x66f   :  { %v2066_v3 = vadd.f32 %v2065_v15, %v1945_v56  ;;  %v6445_v13 = vpop.f32.mrb[61].mxu1  ;;  %v6485_v41 = vpop.f32.mrb[61].mxu0 }
 0x670   :  { %v8425_v59 = vpop.eup %7216  ;;  %v1948_v51 = vpop.f32.mrb[62].mxu1  ;;  %v2170_v27 = vmul.f32 0.5, %v2152_v12 }
 0x671   :  { %v2068_v60 = vpop.f32.mrb[62].mxu0  ;;  %v2153_v46 = vadd.f32 1.0, %v8425_v59  ;;  %v2120_v63 = vadd.f32 %v8396_v38, %v2066_v3  ;;  %v6446_v11 = vpop.f32.mrb[63].mxu1 }
 0x672   :  { %v2069_v55 = vadd.f32 %v2068_v60, %v1948_v51  ;;  %v6486_v31 = vpop.f32.mrb[63].mxu0  ;;  %2210 = vrot.lane.b32.xlu0 %v2170_v27, %s7563_s24 }
 0x673   :  { %v2171_v52 = vmul.f32 0.5, %v2153_v46  ;;  %7222 = vtanh.f32 %v2120_v63 }
 0x674   :  { %v2121_v34 = vadd.f32 %v8396_v38, %v2069_v55 }
 0x675   :  { %2212 = vrot.lane.b32.xlu1 %v2171_v52, %s7563_s24  ;;  %v8432_v40 = vpop.eup %7218 }
 0x676   :  { %7224 = vtanh.f32 %v2121_v34  ;;  %v1953_v1 = vpop.f32.mrb[64].mxu1  ;;  %v2073_v24 = vpop.f32.mrb[64].mxu0  ;;  %v2154_v14 = vadd.f32 1.0, %v8432_v40 }
 0x677   :  { %v2074_v25 = vadd.f32 %v2073_v24, %v1953_v1  ;;  %v6449_v26 = vpop.f32.mrb[65].mxu1  ;;  %v6489_v48 = vpop.f32.mrb[65].mxu0 }
 0x678   :  { %v8435_v20 = vpop.eup %7220  ;;  %v1956_v54 = vpop.f32.mrb[66].mxu1  ;;  %v2172_v32 = vmul.f32 0.5, %v2154_v14 }
 0x679   :  { %v2076_v6 = vpop.f32.mrb[66].mxu0  ;;  %v2155_v35 = vadd.f32 1.0, %v8435_v20  ;;  %v2122_v45 = vadd.f32 %v8396_v38, %v2074_v25  ;;  %v6450_v30 = vpop.f32.mrb[67].mxu1 }
 0x67a   :  { %v2077_v4 = vadd.f32 %v2076_v6, %v1956_v54  ;;  %v6490_v9 = vpop.f32.mrb[67].mxu0  ;;  %2214 = vrot.lane.b32.xlu0 %v2172_v32, %s7563_s24 }
 0x67b   :  { %v2173_v16 = vmul.f32 0.5, %v2155_v35  ;;  %7226 = vtanh.f32 %v2122_v45 }
 0x67c   :  { %v2123_v49 = vadd.f32 %v8396_v38, %v2077_v4 }
 0x67d   :  { %2216 = vrot.lane.b32.xlu1 %v2173_v16, %s7563_s24  ;;  %v8442_v19 = vpop.eup %7222 }
 0x67e   :  { %7228 = vtanh.f32 %v2123_v49  ;;  %v1961_v42 = vpop.f32.mrb[68].mxu1  ;;  %v2081_v43 = vpop.f32.mrb[68].mxu0  ;;  %v2156_v44 = vadd.f32 1.0, %v8442_v19 }
 0x67f   :  { %v2082_v57 = vadd.f32 %v2081_v43, %v1961_v42  ;;  %v6453_v50 = vpop.f32.mrb[69].mxu1  ;;  %v6493_v29 = vpop.f32.mrb[69].mxu0 }
 0x680   :  { %v8445_v39 = vpop.eup %7224  ;;  %v1964_v0 = vpop.f32.mrb[70].mxu1  ;;  %v2174_v15 = vmul.f32 0.5, %v2156_v44 }
 0x681   :  { %v2084_v56 = vpop.f32.mrb[70].mxu0  ;;  %v2157_v12 = vadd.f32 1.0, %v8445_v39  ;;  %v2124_v3 = vadd.f32 %v8396_v38, %v2082_v57  ;;  %v6454_v41 = vpop.f32.mrb[71].mxu1 }
 0x682   :  { %v2085_v13 = vadd.f32 %v2084_v56, %v1964_v0  ;;  %v6494_v51 = vpop.f32.mrb[71].mxu0  ;;  %2218 = vrot.lane.b32.xlu0 %v2174_v15, %s7563_s24 }
 0x683   :  { %v2175_v60 = vmul.f32 0.5, %v2157_v12  ;;  %7230 = vtanh.f32 %v2124_v3 }
 0x684   :  { %v2125_v27 = vadd.f32 %v8396_v38, %v2085_v13 }
 0x685   :  { %2220 = vrot.lane.b32.xlu1 %v2175_v60, %s7563_s24  ;;  %v8452_v46 = vpop.eup %7226 }
 0x686   :  { %7232 = vtanh.f32 %v2125_v27  ;;  %v1969_v63 = vpop.f32.mrb[72].mxu1  ;;  %v2089_v55 = vpop.f32.mrb[72].mxu0  ;;  %v2158_v11 = vadd.f32 1.0, %v8452_v46 }
 0x687   :  { %v2090_v52 = vadd.f32 %v2089_v55, %v1969_v63  ;;  %v6457_v34 = vpop.f32.mrb[73].mxu1  ;;  %v6497_v1 = vpop.f32.mrb[73].mxu0 }
 0x688   :  { %v8455_v31 = vpop.eup %7228  ;;  %v1972_v24 = vpop.f32.mrb[74].mxu1  ;;  %v2176_v25 = vmul.f32 0.5, %v2158_v11 }
 0x689   :  { %v2092_v14 = vpop.f32.mrb[74].mxu0  ;;  %v2159_v26 = vadd.f32 1.0, %v8455_v31  ;;  %v2126_v48 = vadd.f32 %v8396_v38, %v2090_v52  ;;  %v6458_v6 = vpop.f32.mrb[75].mxu1  ;;  %v6902_v52 = vld [vmem:[#allocation7 + $0x30] sm:$0xff]  }
 0x68a   :  { %v2093_v54 = vadd.f32 %v2092_v14, %v1972_v24  ;;  %v6498_v32 = vpop.f32.mrb[75].mxu0  ;;  %2222 = vrot.lane.b32.xlu0 %v2176_v25, %s7563_s24  ;;  %6544 = vmatpush3.bf16.msra.mxu0 %v6902_v52 }
 0x68b   :  { %v2177_v35 = vmul.f32 0.5, %v2159_v26  ;;  %7234 = vtanh.f32 %v2126_v48  ;;  %6545 = vmatprep.subr.bf16.mxu0 %v7564_v33 }
 0x68c   :  { %v2127_v45 = vadd.f32 %v8396_v38, %v2093_v54 }
 0x68d   :  { %2224 = vrot.lane.b32.xlu1 %v2177_v35, %s7563_s24  ;;  %v8462_v4 = vpop.eup %7230 }
 0x68e   :  { %7236 = vtanh.f32 %v2127_v45  ;;  %v1977_v30 = vpop.f32.mrb[76].mxu1  ;;  %v2097_v9 = vpop.f32.mrb[76].mxu0  ;;  %v2160_v16 = vadd.f32 1.0, %v8462_v4 }
 0x68f   :  { %v2098_v42 = vadd.f32 %v2097_v9, %v1977_v30  ;;  %v6461_v43 = vpop.f32.mrb[77].mxu1  ;;  %v6501_v44 = vpop.f32.mrb[77].mxu0 }
 0x690   :  { %v8465_v49 = vpop.eup %7232  ;;  %v1980_v57 = vpop.f32.mrb[78].mxu1  ;;  %v2178_v29 = vmul.f32 0.5, %v2160_v16 }
 0x691   :  { %v2100_v50 = vpop.f32.mrb[78].mxu0  ;;  %v2161_v0 = vadd.f32 1.0, %v8465_v49  ;;  %v2128_v56 = vadd.f32 %v8396_v38, %v2098_v42  ;;  %v6462_v12 = vpop.f32.mrb[79].mxu1 }
 0x692   :  { %v2101_v15 = vadd.f32 %v2100_v50, %v1980_v57  ;;  %v6502_v3 = vpop.f32.mrb[79].mxu0  ;;  %2226 = vrot.lane.b32.xlu0 %v2178_v29, %s7563_s24 }
 0x693   :  { %v2179_v13 = vmul.f32 0.5, %v2161_v0  ;;  %7238 = vtanh.f32 %v2128_v56 }
 0x694   :  { %v2129_v41 = vadd.f32 %v8396_v38, %v2101_v15  ;;  %v6903_v38 = vld [vmem:[#allocation7 + $0x38] sm:$0xff]  }
 0x695   :  { %2228 = vrot.lane.b32.xlu1 %v2179_v13, %s7563_s24  ;;  %v8472_v51 = vpop.eup %7234  ;;  %6546 = vmatpush3.bf16.msra.mxu0 %v6903_v38 }
 0x696   :  { %7240 = vtanh.f32 %v2129_v41  ;;  %v2162_v60 = vadd.f32 1.0, %v8472_v51  ;;  %6575 = vmatprep.subr.bf16.mxu0 %v7564_v33 }
 0x698   :  { %v8475_v27 = vpop.eup %7236  ;;  %v2180_v63 = vmul.f32 0.5, %v2162_v60 }
 0x699   :  { %v2163_v55 = vadd.f32 1.0, %v8475_v27 }
 0x69a   :  { %2230 = vrot.lane.b32.xlu0 %v2180_v63, %s7563_s24 }
 0x69b   :  { %v2181_v11 = vmul.f32 0.5, %v2163_v55 }
 0x69d   :  { %2232 = vrot.lane.b32.xlu1 %v2181_v11, %s7563_s24  ;;  %v8480_v34 = vpop.eup %7238 }
 0x69e   :  { %v2164_v1 = vadd.f32 1.0, %v8480_v34 }
 0x6a0   :  { %v8484_v24 = vpop.eup %7240  ;;  %v2182_v14 = vmul.f32 0.5, %v2164_v1 }
 0x6a1   :  { %v2165_v25 = vadd.f32 1.0, %v8484_v24 }
 0x6a2   :  { %2234 = vrot.lane.b32.xlu0 %v2182_v14, %s7563_s24 }
 0x6a3   :  { %v2183_v26 = vmul.f32 0.5, %v2165_v25 }
 0x6a5   :  { %2236 = vrot.lane.b32.xlu1 %v2183_v26, %s7563_s24  ;;  %v2441_v26 = vunpack.c.h.bf16 %v8254_v17 }
 0x6d4   :  { %v2203_v48 = vpop.permute.xlu0 %2202 }
 0x6d5   :  { %v2256_v6 = vmul.f32 %v8402_v47, %v2203_v48 }
 0x6d6   :  { %v2205_v54 = vpop.permute.xlu1 %2204 }
 0x6d7   :  { %v2257_v32 = vmul.f32 %v8405_v36, %v2205_v54 }
 0x6d9   :  { %v2274_v35 = vpack.c.bf16 %v2257_v32, %v2256_v6 }
 0x6db   :  { %6508 = vmatmul.mubr.msk.bf16.vlgmr.msra.gmra.mrb[80].mxu1 %vm261_vm0, %v2274_v35 }
 0x6dc   :  { %v2207_v45 = vpop.permute.xlu0 %2206  ;;  %6511 = vmatprep.mubr.msk.bf16.mxu1 %vm7565_vm1, %v7564_v33 }
 0x6dd   :  { %v2258_v9 = vmul.f32 %v8412_v5, %v2207_v45  ;;  %v2467_v45 = vmul.f32 %v8293_v53, %v2441_v26 }
 0x6de   :  { %v2209_v30 = vpop.permute.xlu1 %2208 }
 0x6df   :  { %v2259_v16 = vmul.f32 %v8415_v10, %v2209_v30 }
 0x6e1   :  { %v2275_v42 = vpack.c.bf16 %v2259_v16, %v2258_v9 }
 0x6e3   :  { %6512 = vmatmul.mubr.msk.bf16.gmra.mrb[84].mxu1 %vm261_vm0, %v2275_v42 }
 0x6e4   :  { %v2211_v43 = vpop.permute.xlu0 %2210  ;;  %6515 = vmatprep.mubr.msk.bf16.mxu1 %vm7565_vm1, %v7564_v33 }
 0x6e5   :  { %v2260_v36 = vmul.f32 %v8422_v22, %v2211_v43 }
 0x6e7   :  { %v2213_v47 = vpop.permute.xlu1 %2212 }
 0x6e8   :  { %v2261_v44 = vmul.f32 %v8425_v59, %v2213_v47 }
 0x6ea   :  { %v2276_v57 = vpack.c.bf16 %v2261_v44, %v2260_v36 }
 0x6ec   :  { %6516 = vmatmul.mubr.msk.bf16.gmra.mrb[88].mxu1 %vm261_vm0, %v2276_v57  ;;  %v2215_v50 = vpop.permute.xlu0 %2214 }
 0x6ed   :  { %6519 = vmatprep.mubr.msk.bf16.mxu1 %vm7565_vm1, %v7564_v33  ;;  %v2262_v10 = vmul.f32 %v8432_v40, %v2215_v50 }
 0x6ef   :  { %v2217_v5 = vpop.permute.xlu1 %2216 }
 0x6f0   :  { %v2263_v29 = vmul.f32 %v8435_v20, %v2217_v5  ;;  %v2444_v5 = vunpack.c.l.bf16 %v8276_v28 }
 0x6f2   :  { %v2277_v0 = vpack.c.bf16 %v2263_v29, %v2262_v10  ;;  %v2445_v29 = vunpack.c.h.bf16 %v8276_v28  ;;  %v2447_v28 = vunpack.c.h.bf16 %v8307_v2 }
 0x6f4   :  { %6520 = vmatmul.mubr.msk.bf16.gmra.mrb[92].mxu1 %vm261_vm0, %v2277_v0  ;;  %v2219_v56 = vpop.permute.xlu0 %2218 }
 0x6f5   :  { %6523 = vmatprep.mubr.msk.bf16.mxu1 %vm7565_vm1, %v7564_v33  ;;  %v2264_v59 = vmul.f32 %v8442_v19, %v2219_v56 }
 0x6f7   :  { %v2221_v22 = vpop.permute.xlu1 %2220 }
 0x6f8   :  { %v2265_v15 = vmul.f32 %v8445_v39, %v2221_v22  ;;  %v2470_v22 = vmul.f32 %v8293_v53, %v2444_v5 }
 0x6fa   :  { %v2278_v12 = vpack.c.bf16 %v2265_v15, %v2264_v59 }
 0x6fc   :  { %6524 = vmatmul.mubr.msk.bf16.gmra.mrb[96].mxu1 %vm261_vm0, %v2278_v12  ;;  %v2223_v3 = vpop.permute.xlu0 %2222 }
 0x6fd   :  { %6527 = vmatprep.mubr.msk.bf16.mxu1 %vm7565_vm1, %v7564_v33  ;;  %v2266_v20 = vmul.f32 %v8452_v46, %v2223_v3 }
 0x6ff   :  { %v2225_v40 = vpop.permute.xlu1 %2224 }
 0x700   :  { %v2267_v13 = vmul.f32 %v8455_v31, %v2225_v40 }
 0x702   :  { %v2279_v41 = vpack.c.bf16 %v2267_v13, %v2266_v20  ;;  %v2446_v20 = vunpack.c.l.bf16 %v8307_v2  ;;  %v6904_v13 = vld [vmem:[#allocation5 + $0x30] sm:$0xff]   ;;  %v2473_v2 = vmul.f32 %v8293_v53, %v2447_v28 }
 0x704   :  { %6528 = vmatmul.mubr.msk.bf16.gmra.mrb[100].mxu1 %vm261_vm0, %v2279_v41  ;;  %v2227_v60 = vpop.permute.xlu0 %2226 }
 0x705   :  { %6531 = vmatprep.mubr.msk.bf16.mxu1 %vm7565_vm1, %v7564_v33  ;;  %v2268_v39 = vmul.f32 %v8462_v4, %v2227_v60 }
 0x707   :  { %v2229_v19 = vpop.permute.xlu1 %2228 }
 0x708   :  { %v2269_v63 = vmul.f32 %v8465_v49, %v2229_v19 }
 0x70a   :  { %v2280_v55 = vpack.c.bf16 %v2269_v63, %v2268_v39  ;;  %v2472_v39 = vmul.f32 %v8293_v53, %v2446_v20 }
 0x70c   :  { %6532 = vmatmul.mubr.msk.bf16.gmra.mrb[104].mxu1 %vm261_vm0, %v2280_v55  ;;  %v2231_v11 = vpop.permute.xlu0 %2230 }
 0x70d   :  { %6535 = vmatprep.mubr.msk.bf16.mxu1 %vm7565_vm1, %v7564_v33  ;;  %v2270_v31 = vmul.f32 %v8472_v51, %v2231_v11  ;;  %v2440_v51 = vunpack.c.l.bf16 %v8254_v17  ;;  %v6905_v11 = vld [vmem:[#allocation5 + $0x38] sm:$0xff]  }
 0x70f   :  { %v2233_v46 = vpop.permute.xlu1 %2232  ;;  %v2466_v48 = vmul.f32 %v8293_v53, %v2440_v51 }
 0x710   :  { %v2271_v52 = vmul.f32 %v8475_v27, %v2233_v46  ;;  %v8542_v27 = vld [vmem:[%s9157_s5 + $0x2] ss:$0 sm:$0xff] }
 0x712   :  { %v2281_v38 = vpack.c.bf16 %v2271_v52, %v2270_v31 }
 0x714   :  { %6536 = vmatmul.mubr.msk.bf16.gmra.mrb[108].mxu1 %vm261_vm0, %v2281_v38  ;;  %v2235_v1 = vpop.permute.xlu0 %2234 }
 0x715   :  { %6539 = vmatprep.mubr.msk.bf16.mxu1 %vm7565_vm1, %v7564_v33  ;;  %v2272_v49 = vmul.f32 %v8480_v34, %v2235_v1  ;;  %v2448_v1 = vunpack.c.l.bf16 %v8304_v23 }
 0x717   :  { %v2237_v4 = vpop.permute.xlu1 %2236  ;;  %v2474_v26 = vmul.f32 %v8293_v53, %v2448_v1 }
 0x718   :  { %v2273_v14 = vmul.f32 %v8484_v24, %v2237_v4 }
 0x71a   :  { %v8532_v25 = vpack.c.bf16 %v2273_v14, %v2272_v49  ;;  %v2449_v49 = vunpack.c.h.bf16 %v8304_v23 }
 0x71c   :  { %6540 = vmatmul.mubr.msk.bf16.gmra.mrb[112].mxu1 %vm261_vm0, %v8532_v25 }
 0x71d   :  { %6611 = vmatprep.mubr.msk.bf16.mxu1 %vm7565_vm1, %v7564_v33 }
 0x7ae   :  { %v2369_v34 = vpop.f32.mrb[80].mxu1 }
 0x7af   :  { %v2370_v24 = vadd.f32 %v8542_v27, %v2369_v34  ;;  %v6509_v54 = vpop.f32.mrb[81].mxu1 }
 0x7b0   :  { %v2372_v6 = vpop.f32.mrb[82].mxu1 }
 0x7b1   :  { %v8547_v32 = vadd.f32 %v2466_v48, %v2370_v24  ;;  %v2373_v35 = vadd.f32 %v8542_v27, %v2372_v6  ;;  %v6510_v30 = vpop.f32.mrb[83].mxu1  ;;  %v2475_v6 = vmul.f32 %v8293_v53, %v2449_v49 }
 0x7b3   :  { %v8551_v9 = vadd.f32 %v2467_v45, %v2373_v35  ;;  %v2450_v45 = vunpack.c.l.bf16 %v8328_v61 }
 0x7b5   :  { %v2502_v16 = vpack.c.bf16 %v8551_v9, %v8547_v32 }
 0x7b6   :  { %v2377_v17 = vpop.f32.mrb[84].mxu1 }
 0x7b7   :  { %v2378_v42 = vadd.f32 %v8542_v27, %v2377_v17  ;;  %v6513_v43 = vpop.f32.mrb[85].mxu1  ;;  %v2451_v17 = vunpack.c.h.bf16 %v8328_v61 }
 0x7b8   :  { %v2380_v47 = vpop.f32.mrb[86].mxu1 }
 0x7b9   :  { %v8557_v36 = vadd.f32 %v8297_v58, %v2378_v42  ;;  %v2381_v44 = vadd.f32 %v8542_v27, %v2380_v47  ;;  %v6514_v57 = vpop.f32.mrb[87].mxu1  ;;  %v2476_v47 = vmul.f32 %v8293_v53, %v2450_v45 }
 0x7bb   :  { %v8561_v50 = vadd.f32 %v8300_v8, %v2381_v44  ;;  %v2471_v8 = vmul.f32 %v8293_v53, %v2445_v29 }
 0x7bd   :  { %v2503_v10 = vpack.c.bf16 %v8561_v50, %v8557_v36 }
 0x7bf   :  { %v2385_v0 = vpop.f32.mrb[88].mxu1 }
 0x7c0   :  { %v2386_v56 = vadd.f32 %v8542_v27, %v2385_v0  ;;  %v6517_v58 = vpop.f32.mrb[89].mxu1  ;;  %v2477_v0 = vmul.f32 %v8293_v53, %v2451_v17 }
 0x7c1   :  { %v2388_v59 = vpop.f32.mrb[90].mxu1 }
 0x7c2   :  { %v2488_v15 = vadd.f32 %v2470_v22, %v2386_v56  ;;  %v2389_v12 = vadd.f32 %v8542_v27, %v2388_v59  ;;  %v6518_v3 = vpop.f32.mrb[91].mxu1  ;;  %v2452_v22 = vunpack.c.l.bf16 %v8326_v21  ;;  %v2453_v59 = vunpack.c.h.bf16 %v8326_v21 }
 0x7c4   :  { %v2489_v40 = vadd.f32 %v2471_v8, %v2389_v12  ;;  %v2478_v8 = vmul.f32 %v8293_v53, %v2452_v22  ;;  %v2479_v28 = vmul.f32 %v8293_v53, %v2453_v59 }
 0x7c6   :  { %v8572_v41 = vpack.c.bf16 %v2489_v40, %v2488_v15 }
 0x7c7   :  { %v2393_v60 = vpop.f32.mrb[92].mxu1 }
 0x7c8   :  { %v2394_v19 = vadd.f32 %v8542_v27, %v2393_v60  ;;  %v6521_v63 = vpop.f32.mrb[93].mxu1  ;;  %6548 = vmatmul.mubr.msk.bf16.vlgmr.msra.gmra.mrb[80].mxu0 %vm261_vm0, %v8572_v41 }
 0x7c9   :  { %v2396_v55 = vpop.f32.mrb[94].mxu1  ;;  %6576 = vmatpush3.bf16.msra.mxu0 %v6904_v13  ;;  %6551 = vmatprep.mubr.msk.bf16.mxu0 %vm7565_vm1, %v7564_v33  ;;  %v2455_v63 = vunpack.c.h.bf16 %v8349_v7 }
 0x7ca   :  { %v2490_v46 = vadd.f32 %v2472_v39, %v2394_v19  ;;  %v2397_v31 = vadd.f32 %v8542_v27, %v2396_v55  ;;  %v6522_v52 = vpop.f32.mrb[95].mxu1  ;;  %6577 = vmatprep.subr.bf16.mxu0 %v7564_v33  ;;  %v2454_v19 = vunpack.c.l.bf16 %v8349_v7 }
 0x7cb   :  { %v2481_v1 = vmul.f32 %v8293_v53, %v2455_v63 }
 0x7cc   :  { %v2491_v38 = vadd.f32 %v2473_v2, %v2397_v31 }
 0x7cd   :  { %6578 = vmatpush3.bf16.msra.mxu0 %v6905_v11 }
 0x7ce   :  { %v8585_v4 = vpack.c.bf16 %v2491_v38, %v2490_v46  ;;  %v2480_v46 = vmul.f32 %v8293_v53, %v2454_v19 }
 0x7cf   :  { %v2401_v14 = vpop.f32.mrb[96].mxu1 }
 0x7d0   :  { %v2402_v51 = vadd.f32 %v8542_v27, %v2401_v14  ;;  %v6525_v34 = vpop.f32.mrb[97].mxu1  ;;  %6552 = vmatmul.mubr.msk.bf16.gmra.mrb[84].mxu0 %vm261_vm0, %v8585_v4  ;;  %v2456_v14 = vunpack.c.l.bf16 %v8347_v18 }
 0x7d1   :  { %v2404_v24 = vpop.f32.mrb[98].mxu1  ;;  %6555 = vmatprep.mubr.msk.bf16.mxu0 %vm7565_vm1, %v7564_v33 }
 0x7d2   :  { %v2492_v48 = vadd.f32 %v2474_v26, %v2402_v51  ;;  %v2405_v54 = vadd.f32 %v8542_v27, %v2404_v24  ;;  %v6526_v35 = vpop.f32.mrb[99].mxu1  ;;  %v2457_v26 = vunpack.c.h.bf16 %v8347_v18 }
 0x7d4   :  { %v2493_v23 = vadd.f32 %v2475_v6, %v2405_v54  ;;  %v2483_v45 = vmul.f32 %v8293_v53, %v2457_v26 }
 0x7d6   :  { %v8597_v30 = vpack.c.bf16 %v2493_v23, %v2492_v48  ;;  %v2482_v48 = vmul.f32 %v8293_v53, %v2456_v14  ;;  %v6906_v53 = vld [vmem:[#allocation8 + $0x30] sm:$0xff]  }
 0x7d7   :  { %v2409_v42 = vpop.f32.mrb[100].mxu1  ;;  %6608 = vmatpush3.bf16.msra.mxu1 %v6906_v53 }
 0x7d8   :  { %v2410_v43 = vadd.f32 %v8542_v27, %v2409_v42  ;;  %v6529_v44 = vpop.f32.mrb[101].mxu1  ;;  %6556 = vmatmul.mubr.msk.bf16.gmra.mrb[88].mxu0 %vm261_vm0, %v8597_v30  ;;  %6609 = vmatprep.subr.bf16.mxu1 %v7564_v33 }
 0x7d9   :  { %v2412_v57 = vpop.f32.mrb[102].mxu1  ;;  %6559 = vmatprep.mubr.msk.bf16.mxu0 %vm7565_vm1, %v7564_v33 }
 0x7da   :  { %v2494_v5 = vadd.f32 %v2476_v47, %v2410_v43  ;;  %v2413_v29 = vadd.f32 %v8542_v27, %v2412_v57  ;;  %v6530_v56 = vpop.f32.mrb[103].mxu1 }
 0x7dc   :  { %v2495_v61 = vadd.f32 %v2477_v0, %v2413_v29 }
 0x7de   :  { %v8609_v58 = vpack.c.bf16 %v2495_v61, %v2494_v5 }
 0x7df   :  { %v2417_v15 = vpop.f32.mrb[104].mxu1 }
 0x7e0   :  { %v2418_v12 = vadd.f32 %v8542_v27, %v2417_v15  ;;  %v6533_v3 = vpop.f32.mrb[105].mxu1  ;;  %6560 = vmatmul.mubr.msk.bf16.gmra.mrb[92].mxu0 %vm261_vm0, %v8609_v58 }
 0x7e1   :  { %v2420_v40 = vpop.f32.mrb[106].mxu1  ;;  %6563 = vmatprep.mubr.msk.bf16.mxu0 %vm7565_vm1, %v7564_v33 }
 0x7e2   :  { %v2496_v20 = vadd.f32 %v2478_v8, %v2418_v12  ;;  %v2421_v13 = vadd.f32 %v8542_v27, %v2420_v40  ;;  %v6534_v60 = vpop.f32.mrb[107].mxu1 }
 0x7e4   :  { %v2497_v21 = vadd.f32 %v2479_v28, %v2421_v13 }
 0x7e6   :  { %v8621_v39 = vpack.c.bf16 %v2497_v21, %v2496_v20 }
 0x7e7   :  { %v2425_v55 = vpop.f32.mrb[108].mxu1 }
 0x7e8   :  { %v2426_v11 = vadd.f32 %v8542_v27, %v2425_v55  ;;  %v6537_v31 = vpop.f32.mrb[109].mxu1  ;;  %6564 = vmatmul.mubr.msk.bf16.gmra.mrb[96].mxu0 %vm261_vm0, %v8621_v39  ;;  %v8698_v55 = vld [vmem:[%s9155_s3 + $0x3] ss:$0 sm:$0xff] }
 0x7e9   :  { %v2428_v2 = vpop.f32.mrb[110].mxu1  ;;  %6567 = vmatprep.mubr.msk.bf16.mxu0 %vm7565_vm1, %v7564_v33 }
 0x7ea   :  { %v2498_v52 = vadd.f32 %v2480_v46, %v2426_v11  ;;  %v2429_v38 = vadd.f32 %v8542_v27, %v2428_v2  ;;  %v6538_v49 = vpop.f32.mrb[111].mxu1 }
 0x7ec   :  { %v2499_v7 = vadd.f32 %v2481_v1, %v2429_v38 }
 0x7ee   :  { %v8633_v51 = vpack.c.bf16 %v2499_v7, %v2498_v52 }
 0x7ef   :  { %v2433_v34 = vpop.f32.mrb[112].mxu1 }
 0x7f0   :  { %v2434_v24 = vadd.f32 %v8542_v27, %v2433_v34  ;;  %v6541_v54 = vpop.f32.mrb[113].mxu1  ;;  %6568 = vmatmul.mubr.msk.bf16.gmra.mrb[100].mxu0 %vm261_vm0, %v8633_v51 }
 0x7f1   :  { %v2436_v6 = vpop.f32.mrb[114].mxu1  ;;  %6571 = vmatprep.mubr.msk.bf16.mxu0 %vm7565_vm1, %v7564_v33 }
 0x7f2   :  { %v2500_v35 = vadd.f32 %v2482_v48, %v2434_v24  ;;  %v2437_v23 = vadd.f32 %v8542_v27, %v2436_v6  ;;  %v6542_v17 = vpop.f32.mrb[115].mxu1  ;;  %v6907_v27 = vld [vmem:[#allocation8 + $0x38] sm:$0xff]  }
 0x7f3   :  { %6610 = vmatpush3.bf16.msra.mxu1 %v6907_v27 }
 0x7f4   :  { %v2501_v18 = vadd.f32 %v2483_v45, %v2437_v23 }
 0x7f6   :  { %v8644_v42 = vpack.c.bf16 %v2501_v18, %v2500_v35 }
 0x7f8   :  { %6572 = vmatmul.mubr.msk.bf16.gmra.mrb[104].mxu0 %vm261_vm0, %v8644_v42 }
 0x7f9   :  { %6579 = vmatprep.mubr.msk.bf16.mxu0 %vm7565_vm1, %v7564_v33 }
 0x800   :  { %6580 = vmatmul.mubr.msk.bf16.vlgmr.msra.gmra.mrb[108].mxu0 %vm261_vm0, %v2502_v16 }
 0x801   :  { %6583 = vmatprep.mubr.msk.bf16.mxu0 %vm7565_vm1, %v7564_v33 }
 0x808   :  { %6584 = vmatmul.mubr.msk.bf16.gmra.mrb[112].mxu0 %vm261_vm0, %v2503_v10 }
 0x809   :  { %6587 = vmatprep.mubr.msk.bf16.mxu0 %vm7565_vm1, %v7564_v33 }
 0x810   :  { %6588 = vmatmul.mubr.msk.bf16.gmra.mrb[116].mxu0 %vm261_vm0, %v8572_v41 }
 0x811   :  { %6591 = vmatprep.mubr.msk.bf16.mxu0 %vm7565_vm1, %v7564_v33 }
 0x818   :  { %6592 = vmatmul.mubr.msk.bf16.gmra.mrb[120].mxu0 %vm261_vm0, %v8585_v4 }
 0x819   :  { %6595 = vmatprep.mubr.msk.bf16.mxu0 %vm7565_vm1, %v7564_v33 }
 0x820   :  { %6596 = vmatmul.mubr.msk.bf16.gmra.mrb[124].mxu0 %vm261_vm0, %v8597_v30 }
 0x821   :  { %6599 = vmatprep.mubr.msk.bf16.mxu0 %vm7565_vm1, %v7564_v33 }
 0x828   :  { %6600 = vmatmul.mubr.msk.bf16.gmra.mrb[128].mxu0 %vm261_vm0, %v8609_v58 }
 0x829   :  { %6603 = vmatprep.mubr.msk.bf16.mxu0 %vm7565_vm1, %v7564_v33 }
 0x830   :  { %6604 = vmatmul.mubr.msk.bf16.gmra.mrb[132].mxu0 %vm261_vm0, %v8621_v39 }
 0x89b   :  { %v2588_v32 = vpop.f32.mrb[80].mxu0 }
 0x89c   :  { %v6549_v9 = vpop.f32.mrb[81].mxu0 }
 0x89d   :  { %v2591_v16 = vpop.f32.mrb[82].mxu0 }
 0x89e   :  { %v6550_v36 = vpop.f32.mrb[83].mxu0 }
 0x8a3   :  { %v2596_v50 = vpop.f32.mrb[84].mxu0 }
 0x8a4   :  { %v6553_v10 = vpop.f32.mrb[85].mxu0 }
 0x8a5   :  { %v2599_v43 = vpop.f32.mrb[86].mxu0 }
 0x8a6   :  { %v6554_v47 = vpop.f32.mrb[87].mxu0 }
 0x8ab   :  { %v2604_v44 = vpop.f32.mrb[88].mxu0 }
 0x8ac   :  { %v6557_v57 = vpop.f32.mrb[89].mxu0 }
 0x8ad   :  { %v2607_v5 = vpop.f32.mrb[90].mxu0 }
 0x8ae   :  { %v6558_v29 = vpop.f32.mrb[91].mxu0 }
 0x8b3   :  { %v2612_v0 = vpop.f32.mrb[92].mxu0 }
 0x8b4   :  { %v6561_v56 = vpop.f32.mrb[93].mxu0 }
 0x8b5   :  { %v8681_v61 = vpop.f32.mrb[94].mxu0 }
 0x8b6   :  { %v6562_v22 = vpop.f32.mrb[95].mxu0 }
 0x8bb   :  { %v8683_v59 = vpop.f32.mrb[96].mxu0 }
 0x8bc   :  { %v6565_v15 = vpop.f32.mrb[97].mxu0 }
 0x8bd   :  { %v8685_v12 = vpop.f32.mrb[98].mxu0 }
 0x8be   :  { %v6566_v8 = vpop.f32.mrb[99].mxu0 }
 0x8c3   :  { %v8687_v3 = vpop.f32.mrb[100].mxu0 }
 0x8c4   :  { %v6569_v40 = vpop.f32.mrb[101].mxu0 }
 0x8c5   :  { %v8689_v20 = vpop.f32.mrb[102].mxu0 }
 0x8c6   :  { %v6570_v13 = vpop.f32.mrb[103].mxu0 }
 0x8cb   :  { %v8691_v28 = vpop.f32.mrb[104].mxu0 }
 0x8cc   :  { %v6573_v60 = vpop.f32.mrb[105].mxu0 }
 0x8cd   :  { %v8693_v21 = vpop.f32.mrb[106].mxu0 }
 0x8ce   :  { %v6574_v19 = vpop.f32.mrb[107].mxu0 }
 0x8d3   :  { %v2695_v63 = vpop.f32.mrb[108].mxu0 }
 0x8d4   :  { %v2696_v11 = vadd.f32 %v2695_v63, %v2588_v32  ;;  %v6581_v46 = vpop.f32.mrb[109].mxu0 }
 0x8d5   :  { %v2698_v31 = vpop.f32.mrb[110].mxu0 }
 0x8d6   :  { %v2758_v2 = vadd.f32 %v8698_v55, %v2696_v11  ;;  %v2699_v52 = vadd.f32 %v2698_v31, %v2591_v16  ;;  %v6582_v38 = vpop.f32.mrb[111].mxu0 }
 0x8d8   :  { %7242 = vtanh.f32 %v2758_v2  ;;  %v2759_v1 = vadd.f32 %v8698_v55, %v2699_v52 }
 0x8da   :  { %7244 = vtanh.f32 %v2759_v1 }
 0x8db   :  { %v2703_v49 = vpop.f32.mrb[112].mxu0 }
 0x8dc   :  { %v2704_v7 = vadd.f32 %v2703_v49, %v2596_v50  ;;  %v6585_v14 = vpop.f32.mrb[113].mxu0 }
 0x8dd   :  { %v2706_v26 = vpop.f32.mrb[114].mxu0 }
 0x8de   :  { %v2760_v34 = vadd.f32 %v8698_v55, %v2704_v7  ;;  %v2707_v24 = vadd.f32 %v2706_v26, %v2599_v43  ;;  %v6586_v48 = vpop.f32.mrb[115].mxu0 }
 0x8e0   :  { %7246 = vtanh.f32 %v2760_v34  ;;  %v2761_v54 = vadd.f32 %v8698_v55, %v2707_v24 }
 0x8e2   :  { %v8704_v6 = vpop.eup %7242  ;;  %7248 = vtanh.f32 %v2761_v54 }
 0x8e3   :  { %v2711_v35 = vpop.f32.mrb[116].mxu0  ;;  %v2786_v23 = vadd.f32 1.0, %v8704_v6 }
 0x8e4   :  { %v8707_v45 = vpop.eup %7244  ;;  %v2712_v17 = vadd.f32 %v2711_v35, %v2604_v44  ;;  %v6589_v18 = vpop.f32.mrb[117].mxu0 }
 0x8e5   :  { %v2714_v53 = vpop.f32.mrb[118].mxu0  ;;  %v2800_v27 = vmul.f32 0.5, %v2786_v23  ;;  %v2787_v32 = vadd.f32 1.0, %v8707_v45 }
 0x8e6   :  { %v2762_v9 = vadd.f32 %v8698_v55, %v2712_v17  ;;  %v2715_v16 = vadd.f32 %v2714_v53, %v2607_v5  ;;  %v6590_v36 = vpop.f32.mrb[119].mxu0 }
 0x8e7   :  { %2828 = vrot.lane.b32.xlu0 %v2800_v27, %s7563_s24  ;;  %v2801_v50 = vmul.f32 0.5, %v2787_v32 }
 0x8e8   :  { %7250 = vtanh.f32 %v2762_v9  ;;  %v2763_v10 = vadd.f32 %v8698_v55, %v2715_v16 }
 0x8e9   :  { %2830 = vrot.lane.b32.xlu1 %v2801_v50, %s7563_s24 }
 0x8ea   :  { %v8714_v43 = vpop.eup %7246  ;;  %7252 = vtanh.f32 %v2763_v10 }
 0x8eb   :  { %v2719_v47 = vpop.f32.mrb[120].mxu0  ;;  %v2788_v44 = vadd.f32 1.0, %v8714_v43 }
 0x8ec   :  { %v8717_v57 = vpop.eup %7248  ;;  %v2720_v29 = vadd.f32 %v2719_v47, %v2612_v0  ;;  %v6593_v56 = vpop.f32.mrb[121].mxu0 }
 0x8ed   :  { %v2722_v5 = vpop.f32.mrb[122].mxu0  ;;  %v2802_v22 = vmul.f32 0.5, %v2788_v44  ;;  %v2789_v15 = vadd.f32 1.0, %v8717_v57 }
 0x8ee   :  { %v2764_v8 = vadd.f32 %v8698_v55, %v2720_v29  ;;  %v2723_v40 = vadd.f32 %v2722_v5, %v8681_v61  ;;  %v6594_v13 = vpop.f32.mrb[123].mxu0 }
 0x8ef   :  { %2832 = vrot.lane.b32.xlu0 %v2802_v22, %s7563_s24  ;;  %v2803_v60 = vmul.f32 0.5, %v2789_v15 }
 0x8f0   :  { %7254 = vtanh.f32 %v2764_v8  ;;  %v2765_v19 = vadd.f32 %v8698_v55, %v2723_v40 }
 0x8f1   :  { %2834 = vrot.lane.b32.xlu1 %v2803_v60, %s7563_s24 }
 0x8f2   :  { %v8725_v63 = vpop.eup %7250  ;;  %7256 = vtanh.f32 %v2765_v19 }
 0x8f3   :  { %v2727_v0 = vpop.f32.mrb[124].mxu0  ;;  %v2790_v11 = vadd.f32 1.0, %v8725_v63 }
 0x8f4   :  { %v8728_v46 = vpop.eup %7252  ;;  %v2728_v31 = vadd.f32 %v2727_v0, %v8683_v59  ;;  %v6597_v61 = vpop.f32.mrb[125].mxu0 }
 0x8f5   :  { %v2730_v2 = vpop.f32.mrb[126].mxu0  ;;  %v2804_v52 = vmul.f32 0.5, %v2790_v11  ;;  %v2791_v38 = vadd.f32 1.0, %v8728_v46  ;;  %v6908_v11 = vld [vmem:[#allocation7 + $0x40] sm:$0xff]  }
 0x8f6   :  { %v2766_v1 = vadd.f32 %v8698_v55, %v2728_v31  ;;  %v2731_v49 = vadd.f32 %v2730_v2, %v8685_v12  ;;  %v6598_v7 = vpop.f32.mrb[127].mxu0  ;;  %6639 = vmatprep.subr.bf16.mxu0 %v6908_v11 }
 0x8f7   :  { %2836 = vrot.lane.b32.xlu0 %v2804_v52, %s7563_s24  ;;  %v2805_v14 = vmul.f32 0.5, %v2791_v38  ;;  %6640 = vmatpush3.bf16.msra.mxu0 %v6908_v11 }
 0x8f8   :  { %7258 = vtanh.f32 %v2766_v1  ;;  %v2767_v26 = vadd.f32 %v8698_v55, %v2731_v49 }
 0x8f9   :  { %2838 = vrot.lane.b32.xlu1 %v2805_v14, %s7563_s24 }
 0x8fa   :  { %v8737_v34 = vpop.eup %7254  ;;  %7260 = vtanh.f32 %v2767_v26 }
 0x8fb   :  { %v2735_v59 = vpop.f32.mrb[128].mxu0  ;;  %v2792_v24 = vadd.f32 1.0, %v8737_v34 }
 0x8fc   :  { %v8740_v48 = vpop.eup %7256  ;;  %v2736_v54 = vadd.f32 %v2735_v59, %v8687_v3  ;;  %v6601_v12 = vpop.f32.mrb[129].mxu0 }
 0x8fd   :  { %v2738_v35 = vpop.f32.mrb[130].mxu0  ;;  %v2806_v23 = vmul.f32 0.5, %v2792_v24  ;;  %v2793_v17 = vadd.f32 1.0, %v8740_v48 }
 0x8fe   :  { %v2768_v18 = vadd.f32 %v8698_v55, %v2736_v54  ;;  %v2739_v53 = vadd.f32 %v2738_v35, %v8689_v20  ;;  %v6602_v27 = vpop.f32.mrb[131].mxu0 }
 0x8ff   :  { %2840 = vrot.lane.b32.xlu0 %v2806_v23, %s7563_s24  ;;  %v2807_v32 = vmul.f32 0.5, %v2793_v17 }
 0x900   :  { %7262 = vtanh.f32 %v2768_v18  ;;  %v2769_v9 = vadd.f32 %v8698_v55, %v2739_v53 }
 0x901   :  { %2842 = vrot.lane.b32.xlu1 %v2807_v32, %s7563_s24 }
 0x902   :  { %v8749_v16 = vpop.eup %7258  ;;  %7264 = vtanh.f32 %v2769_v9 }
 0x903   :  { %v2743_v3 = vpop.f32.mrb[132].mxu0  ;;  %v2794_v36 = vadd.f32 1.0, %v8749_v16 }
 0x904   :  { %v8752_v50 = vpop.eup %7260  ;;  %v2744_v10 = vadd.f32 %v2743_v3, %v8691_v28  ;;  %v6605_v20 = vpop.f32.mrb[133].mxu0 }
 0x905   :  { %v2746_v47 = vpop.f32.mrb[134].mxu0  ;;  %v2808_v44 = vmul.f32 0.5, %v2794_v36  ;;  %v2795_v29 = vadd.f32 1.0, %v8752_v50 }
 0x906   :  { %v2770_v56 = vadd.f32 %v8698_v55, %v2744_v10  ;;  %v2747_v5 = vadd.f32 %v2746_v47, %v8693_v21  ;;  %v6606_v22 = vpop.f32.mrb[135].mxu0 }
 0x907   :  { %2844 = vrot.lane.b32.xlu0 %v2808_v44, %s7563_s24  ;;  %v2809_v15 = vmul.f32 0.5, %v2795_v29  ;;  %v8800_v22 = vld [vmem:[%s9157_s5 + $0x3] ss:$0 sm:$0xff] }
 0x908   :  { %7266 = vtanh.f32 %v2770_v56  ;;  %v2771_v8 = vadd.f32 %v8698_v55, %v2747_v5  ;;  %v6909_v56 = vld [vmem:[#allocation7 + $0x48] sm:$0xff]   ;;  %v6910_v5 = vld [vmem:[#allocation5 + $0x40] sm:$0xff]  }
 0x909   :  { %2846 = vrot.lane.b32.xlu1 %v2809_v15, %s7563_s24  ;;  %6641 = vmatprep.subr.bf16.mxu0 %v6909_v56  ;;  %v3026_v15 = vunpack.c.l.bf16 %v8572_v41 }
 0x90a   :  { %v7263_v40 = vpop.eup %7262  ;;  %7268 = vtanh.f32 %v2771_v8  ;;  %6642 = vmatpush3.bf16.msra.mxu0 %v6909_v56  ;;  %v3027_v8 = vunpack.c.h.bf16 %v8572_v41 }
 0x90b   :  { %v2796_v28 = vadd.f32 1.0, %v7263_v40  ;;  %6655 = vmatprep.subr.bf16.mxu0 %v6910_v5 }
 0x90c   :  { %v7265_v13 = vpop.eup %7264 }
 0x90d   :  { %v2810_v60 = vmul.f32 0.5, %v2796_v28  ;;  %v2797_v19 = vadd.f32 1.0, %v7265_v13  ;;  %v8804_v28 = vld [vmem:[#allocation10 + $0x3] ss:$0 sm:$0xff] }
 0x90f   :  { %2848 = vrot.lane.b32.xlu0 %v2810_v60, %s7563_s24  ;;  %v2811_v0 = vmul.f32 0.5, %v2797_v19 }
 0x911   :  { %2850 = vrot.lane.b32.xlu1 %v2811_v0, %s7563_s24  ;;  %v3048_v0 = vmul.f32 %v8804_v28, %v3026_v15  ;;  %v3034_v15 = vunpack.c.l.bf16 %v8621_v39 }
 0x912   :  { %v7267_v21 = vpop.eup %7266 }
 0x913   :  { %v2798_v31 = vadd.f32 1.0, %v7267_v21 }
 0x914   :  { %v7269_v61 = vpop.eup %7268 }
 0x915   :  { %v2812_v55 = vmul.f32 0.5, %v2798_v31  ;;  %v2799_v2 = vadd.f32 1.0, %v7269_v61 }
 0x917   :  { %2852 = vrot.lane.b32.xlu0 %v2812_v55, %s7563_s24  ;;  %v2813_v52 = vmul.f32 0.5, %v2799_v2  ;;  %v3028_v2 = vunpack.c.l.bf16 %v8585_v4 }
 0x919   :  { %2854 = vrot.lane.b32.xlu1 %v2813_v52, %s7563_s24  ;;  %v3029_v52 = vunpack.c.h.bf16 %v8585_v4  ;;  %v3031_v4 = vunpack.c.h.bf16 %v8597_v30 }
 0x959   :  { %v2829_v38 = vpop.permute.xlu0 %2828 }
 0x95a   :  { %v2870_v49 = vmul.f32 %v8704_v6, %v2829_v38 }
 0x95b   :  { %v2831_v1 = vpop.permute.xlu1 %2830 }
 0x95c   :  { %v2871_v7 = vmul.f32 %v8707_v45, %v2831_v1 }
 0x95e   :  { %v2884_v14 = vpack.c.bf16 %v2871_v7, %v2870_v49 }
 0x960   :  { %6612 = vmatmul.mubr.msk.bf16.vlgmr.msra.gmra.mrb[116].mxu1 %vm261_vm0, %v2884_v14  ;;  %v3050_v14 = vmul.f32 %v8804_v28, %v3028_v2 }
 0x961   :  { %v2833_v26 = vpop.permute.xlu0 %2832  ;;  %6615 = vmatprep.mubr.msk.bf16.mxu1 %vm7565_vm1, %v7564_v33 }
 0x962   :  { %v2872_v24 = vmul.f32 %v8714_v43, %v2833_v26 }
 0x963   :  { %v2835_v59 = vpop.permute.xlu1 %2834 }
 0x964   :  { %v2873_v54 = vmul.f32 %v8717_v57, %v2835_v59  ;;  %v3051_v59 = vmul.f32 %v8804_v28, %v3029_v52  ;;  %v3036_v52 = vunpack.c.l.bf16 %v8633_v51 }
 0x966   :  { %v2885_v12 = vpack.c.bf16 %v2873_v54, %v2872_v24 }
 0x968   :  { %6616 = vmatmul.mubr.msk.bf16.gmra.mrb[120].mxu1 %vm261_vm0, %v2885_v12 }
 0x969   :  { %v2837_v35 = vpop.permute.xlu0 %2836  ;;  %6619 = vmatprep.mubr.msk.bf16.mxu1 %vm7565_vm1, %v7564_v33 }
 0x96a   :  { %v2874_v45 = vmul.f32 %v8725_v63, %v2837_v35 }
 0x96b   :  { %v2839_v6 = vpop.permute.xlu1 %2838 }
 0x96c   :  { %v2875_v23 = vmul.f32 %v8728_v46, %v2839_v6  ;;  %v3030_v6 = vunpack.c.l.bf16 %v8597_v30  ;;  %v3032_v30 = vunpack.c.l.bf16 %v8609_v58 }
 0x96e   :  { %v2886_v17 = vpack.c.bf16 %v2875_v23, %v2874_v45 }
 0x970   :  { %6620 = vmatmul.mubr.msk.bf16.gmra.mrb[124].mxu1 %vm261_vm0, %v2886_v17 }
 0x971   :  { %v2841_v18 = vpop.permute.xlu0 %2840  ;;  %6623 = vmatprep.mubr.msk.bf16.mxu1 %vm7565_vm1, %v7564_v33 }
 0x972   :  { %v2876_v57 = vmul.f32 %v8737_v34, %v2841_v18 }
 0x973   :  { %v2843_v43 = vpop.permute.xlu1 %2842 }
 0x974   :  { %v2877_v53 = vmul.f32 %v8740_v48, %v2843_v43  ;;  %v3052_v43 = vmul.f32 %v8804_v28, %v3030_v6 }
 0x976   :  { %v2887_v27 = vpack.c.bf16 %v2877_v53, %v2876_v57  ;;  %v3053_v53 = vmul.f32 %v8804_v28, %v3031_v4  ;;  %v3038_v4 = vunpack.c.l.bf16 %v8644_v42 }
 0x978   :  { %6624 = vmatmul.mubr.msk.bf16.gmra.mrb[128].mxu1 %vm261_vm0, %v2887_v27 }
 0x979   :  { %v2845_v32 = vpop.permute.xlu0 %2844  ;;  %6627 = vmatprep.mubr.msk.bf16.mxu1 %vm7565_vm1, %v7564_v33 }
 0x97a   :  { %v2878_v46 = vmul.f32 %v8749_v16, %v2845_v32 }
 0x97b   :  { %v2847_v63 = vpop.permute.xlu1 %2846 }
 0x97c   :  { %v2879_v9 = vmul.f32 %v8752_v50, %v2847_v63 }
 0x97e   :  { %v2888_v3 = vpack.c.bf16 %v2879_v9, %v2878_v46  ;;  %v3033_v9 = vunpack.c.h.bf16 %v8609_v58 }
 0x980   :  { %6628 = vmatmul.mubr.msk.bf16.gmra.mrb[132].mxu1 %vm261_vm0, %v2888_v3  ;;  %v6911_v3 = vld [vmem:[#allocation5 + $0x48] sm:$0xff]  }
 0x981   :  { %v2849_v36 = vpop.permute.xlu0 %2848  ;;  %6631 = vmatprep.mubr.msk.bf16.mxu1 %vm7565_vm1, %v7564_v33 }
 0x982   :  { %v2880_v48 = vmul.f32 %v7263_v40, %v2849_v36 }
 0x983   :  { %v2851_v34 = vpop.permute.xlu1 %2850 }
 0x984   :  { %v2881_v10 = vmul.f32 %v7265_v13, %v2851_v34 }
 0x986   :  { %v2889_v20 = vpack.c.bf16 %v2881_v10, %v2880_v48 }
 0x988   :  { %6632 = vmatmul.mubr.msk.bf16.gmra.mrb[136].mxu1 %vm261_vm0, %v2889_v20  ;;  %v3054_v20 = vmul.f32 %v8804_v28, %v3032_v30 }
 0x989   :  { %v2853_v47 = vpop.permute.xlu0 %2852  ;;  %6635 = vmatprep.mubr.msk.bf16.mxu1 %vm7565_vm1, %v7564_v33 }
 0x98a   :  { %v2882_v44 = vmul.f32 %v7267_v21, %v2853_v47  ;;  %v3049_v21 = vmul.f32 %v8804_v28, %v3027_v8  ;;  %v3035_v8 = vunpack.c.h.bf16 %v8621_v39 }
 0x98b   :  { %v2855_v16 = vpop.permute.xlu1 %2854 }
 0x98c   :  { %v2883_v50 = vmul.f32 %v7269_v61, %v2855_v16  ;;  %v3055_v16 = vmul.f32 %v8804_v28, %v3033_v9 }
 0x98e   :  { %v8793_v29 = vpack.c.bf16 %v2883_v50, %v2882_v44 }
 0x990   :  { %6636 = vmatmul.mubr.msk.bf16.gmra.mrb[140].mxu1 %vm261_vm0, %v8793_v29 }
 0xa33   :  { %v2971_v40 = vpop.f32.mrb[116].mxu1 }
 0xa34   :  { %v2972_v13 = vadd.f32 %v8800_v22, %v2971_v40  ;;  %v6613_v60 = vpop.f32.mrb[117].mxu1 }
 0xa35   :  { %v2974_v19 = vpop.f32.mrb[118].mxu1 }
 0xa36   :  { %v2975_v11 = vadd.f32 %v8800_v22, %v2974_v19  ;;  %v6614_v31 = vpop.f32.mrb[119].mxu1  ;;  %v8810_v61 = vadd.f32 %v3048_v0, %v2972_v13  ;;  %v3056_v19 = vmul.f32 %v8804_v28, %v3034_v15 }
 0xa38   :  { %v8812_v55 = vadd.f32 %v3049_v21, %v2975_v11  ;;  %v3057_v11 = vmul.f32 %v8804_v28, %v3035_v8 }
 0xa3a   :  { %v3076_v41 = vpack.c.bf16 %v8812_v55, %v8810_v61 }
 0xa3b   :  { %v2979_v38 = vpop.f32.mrb[120].mxu1 }
 0xa3c   :  { %v2980_v1 = vadd.f32 %v8800_v22, %v2979_v38  ;;  %v6617_v49 = vpop.f32.mrb[121].mxu1  ;;  %v3037_v38 = vunpack.c.h.bf16 %v8633_v51 }
 0xa3d   :  { %v2982_v7 = vpop.f32.mrb[122].mxu1 }
 0xa3e   :  { %v2983_v26 = vadd.f32 %v8800_v22, %v2982_v7  ;;  %v6618_v24 = vpop.f32.mrb[123].mxu1  ;;  %v3064_v54 = vadd.f32 %v3050_v14, %v2980_v1  ;;  %v3058_v7 = vmul.f32 %v8804_v28, %v3036_v52 }
 0xa40   :  { %v3065_v12 = vadd.f32 %v3051_v59, %v2983_v26 }
 0xa42   :  { %v8822_v35 = vpack.c.bf16 %v3065_v12, %v3064_v54  ;;  %v3059_v54 = vmul.f32 %v8804_v28, %v3037_v38 }
 0xa43   :  { %v2987_v45 = vpop.f32.mrb[124].mxu1 }
 0xa44   :  { %v2988_v23 = vadd.f32 %v8800_v22, %v2987_v45  ;;  %v6621_v17 = vpop.f32.mrb[125].mxu1  ;;  %6643 = vmatprep.mubr.msk.bf16.mxu0 %vm261_vm0, %v8822_v35  ;;  %v3039_v45 = vunpack.c.h.bf16 %v8644_v42  ;;  %v6912_v42 = vld [vmem:[#allocation8 + $0x40] sm:$0xff]  }
 0xa45   :  { %v2990_v18 = vpop.f32.mrb[126].mxu1  ;;  %6671 = vmatprep.subr.bf16.mxu1 %v6912_v42 }
 0xa46   :  { %v2991_v57 = vadd.f32 %v8800_v22, %v2990_v18  ;;  %v6622_v27 = vpop.f32.mrb[127].mxu1  ;;  %v3066_v32 = vadd.f32 %v3052_v43, %v2988_v23  ;;  %v3060_v18 = vmul.f32 %v8804_v28, %v3038_v4  ;;  %6672 = vmatpush3.bf16.msra.mxu1 %v6912_v42 }
 0xa48   :  { %v3067_v63 = vadd.f32 %v3053_v53, %v2991_v57 }
 0xa4a   :  { %v8832_v46 = vpack.c.bf16 %v3067_v63, %v3066_v32  ;;  %v3061_v32 = vmul.f32 %v8804_v28, %v3039_v45  ;;  %v5830_v28 = vld [vmem:[%s9155_s3 + $0x4] ss:$0 sm:$0xff] }
 0xa4b   :  { %v2995_v36 = vpop.f32.mrb[128].mxu1 }
 0xa4c   :  { %v2996_v34 = vadd.f32 %v8800_v22, %v2995_v36  ;;  %v6625_v48 = vpop.f32.mrb[129].mxu1  ;;  %6644 = vmatmul.mubr.msk.bf16.vlgmr.msra.gmra.mrb[136].mxu0 %vm261_vm0, %v8832_v46 }
 0xa4d   :  { %v2998_v10 = vpop.f32.mrb[130].mxu1  ;;  %6656 = vmatpush3.bf16.msra.mxu0 %v6910_v5 }
 0xa4e   :  { %v2999_v47 = vadd.f32 %v8800_v22, %v2998_v10  ;;  %v6626_v44 = vpop.f32.mrb[131].mxu1  ;;  %6657 = vmatprep.subr.bf16.mxu0 %v6911_v3  ;;  %v3068_v50 = vadd.f32 %v3054_v20, %v2996_v34 }
 0xa50   :  { %v3069_v58 = vadd.f32 %v3055_v16, %v2999_v47 }
 0xa51   :  { %6658 = vmatpush3.bf16.msra.mxu0 %v6911_v3 }
 0xa52   :  { %v8842_v56 = vpack.c.bf16 %v3069_v58, %v3068_v50 }
 0xa53   :  { %v3003_v40 = vpop.f32.mrb[132].mxu1 }
 0xa54   :  { %v3004_v5 = vadd.f32 %v8800_v22, %v3003_v40  ;;  %v6629_v13 = vpop.f32.mrb[133].mxu1  ;;  %6647 = vmatprep.mubr.msk.bf16.mxu0 %vm261_vm0, %v8842_v56 }
 0xa55   :  { %v3006_v60 = vpop.f32.mrb[134].mxu1 }
 0xa56   :  { %v3007_v0 = vadd.f32 %v8800_v22, %v3006_v60  ;;  %v6630_v21 = vpop.f32.mrb[135].mxu1  ;;  %v3070_v31 = vadd.f32 %v3056_v19, %v3004_v5 }
 0xa58   :  { %v3071_v2 = vadd.f32 %v3057_v11, %v3007_v0 }
 0xa5a   :  { %v8853_v39 = vpack.c.bf16 %v3071_v2, %v3070_v31 }
 0xa5b   :  { %v3011_v1 = vpop.f32.mrb[136].mxu1 }
 0xa5c   :  { %v3012_v49 = vadd.f32 %v8800_v22, %v3011_v1  ;;  %v6633_v14 = vpop.f32.mrb[137].mxu1  ;;  %6648 = vmatmul.mubr.msk.bf16.gmra.mrb[140].mxu0 %vm261_vm0, %v8853_v39 }
 0xa5d   :  { %v3014_v26 = vpop.f32.mrb[138].mxu1 }
 0xa5e   :  { %v3072_v59 = vadd.f32 %v3058_v7, %v3012_v49  ;;  %v3015_v24 = vadd.f32 %v8800_v22, %v3014_v26  ;;  %v6634_v12 = vpop.f32.mrb[139].mxu1 }
 0xa60   :  { %v3073_v6 = vadd.f32 %v3059_v54, %v3015_v24 }
 0xa62   :  { %v8863_v51 = vpack.c.bf16 %v3073_v6, %v3072_v59 }
 0xa63   :  { %v3019_v23 = vpop.f32.mrb[140].mxu1 }
 0xa64   :  { %v3020_v17 = vadd.f32 %v8800_v22, %v3019_v23  ;;  %v6637_v43 = vpop.f32.mrb[141].mxu1  ;;  %6651 = vmatprep.mubr.msk.bf16.mxu0 %vm261_vm0, %v8863_v51 }
 0xa65   :  { %v3022_v57 = vpop.f32.mrb[142].mxu1 }
 0xa66   :  { %v3074_v53 = vadd.f32 %v3060_v18, %v3020_v17  ;;  %v3023_v27 = vadd.f32 %v8800_v22, %v3022_v57  ;;  %v6638_v63 = vpop.f32.mrb[143].mxu1  ;;  %v6913_v22 = vld [vmem:[#allocation8 + $0x48] sm:$0xff]  }
 0xa67   :  { %6673 = vmatprep.subr.bf16.mxu1 %v6913_v22 }
 0xa68   :  { %v3075_v30 = vadd.f32 %v3061_v32, %v3023_v27  ;;  %6674 = vmatpush3.bf16.msra.mxu1 %v6913_v22 }
 0xa6a   :  { %v8872_v9 = vpack.c.bf16 %v3075_v30, %v3074_v53 }
 0xa6c   :  { %6652 = vmatmul.mubr.msk.bf16.gmra.mrb[144].mxu0 %vm261_vm0, %v8872_v9 }
 0xa6d   :  { %6659 = vmatprep.mubr.msk.bf16.mxu0 %vm261_vm0, %v3076_v41 }
 0xa74   :  { %6660 = vmatmul.mubr.msk.bf16.vlgmr.msra.gmra.mrb[136].mxu0 %vm261_vm0, %v8822_v35 }
 0xa75   :  { %6663 = vmatprep.mubr.msk.bf16.mxu0 %vm261_vm0, %v8832_v46 }
 0xa7c   :  { %6664 = vmatmul.mubr.msk.bf16.gmra.mrb[140].mxu0 %vm261_vm0, %v8842_v56 }
 0xa7d   :  { %6667 = vmatprep.mubr.msk.bf16.mxu0 %vm261_vm0, %v8853_v39 }
 0xa84   :  { %6668 = vmatmul.mubr.msk.bf16.gmra.mrb[144].mxu0 %vm261_vm0, %v8863_v51 }
 0xb47   :  { %v6661_v61 = vpop.f32.mrb[136].mxu0 }
 0xb48   :  { %v3310_v55 = vadd.f32 %v6661_v61, %v5830_v28  ;;  %v3253_v41 = vpop.f32.mrb[137].mxu0  ;;  %v6914_v61 = vld [vmem:[#allocation7 + $0x50] sm:$0xff]  }
 0xb49   :  { %v3308_v3 = vadd.f32 %v5830_v28, %v3253_v41  ;;  %v6662_v36 = vpop.f32.mrb[138].mxu0  ;;  %6687 = vmatprep.subr.bf16.mxu1 %v6914_v61 }
 0xb4a   :  { %7270 = vtanh.f32 %v3310_v55  ;;  %v3311_v34 = vadd.f32 %v6662_v36, %v5830_v28  ;;  %v3256_v48 = vpop.f32.mrb[139].mxu0 }
 0xb4b   :  { %7272 = vtanh.f32 %v3308_v3  ;;  %v3309_v10 = vadd.f32 %v5830_v28, %v3256_v48 }
 0xb4c   :  { %7274 = vtanh.f32 %v3311_v34 }
 0xb4d   :  { %7276 = vtanh.f32 %v3309_v10 }
 0xb4f   :  { %v6665_v20 = vpop.f32.mrb[140].mxu0 }
 0xb50   :  { %v3314_v47 = vadd.f32 %v6665_v20, %v5830_v28  ;;  %v3269_v16 = vpop.f32.mrb[141].mxu0 }
 0xb51   :  { %v3312_v44 = vadd.f32 %v5830_v28, %v3269_v16  ;;  %v6666_v50 = vpop.f32.mrb[142].mxu0 }
 0xb52   :  { %7278 = vtanh.f32 %v3314_v47  ;;  %v3315_v58 = vadd.f32 %v6666_v50, %v5830_v28  ;;  %v3272_v15 = vpop.f32.mrb[143].mxu0 }
 0xb53   :  { %7280 = vtanh.f32 %v3312_v44  ;;  %v3313_v8 = vadd.f32 %v5830_v28, %v3272_v15 }
 0xb54   :  { %v8893_v40 = vpop.eup %7270  ;;  %7282 = vtanh.f32 %v3315_v58 }
 0xb55   :  { %v8895_v5 = vpop.eup %7272  ;;  %7284 = vtanh.f32 %v3313_v8  ;;  %v3334_v52 = vadd.f32 1.0, %v8893_v40 }
 0xb56   :  { %v8897_v13 = vpop.eup %7274  ;;  %v3332_v60 = vadd.f32 1.0, %v8895_v5 }
 0xb57   :  { %v7277_v19 = vpop.eup %7276  ;;  %v6669_v0 = vpop.f32.mrb[144].mxu0  ;;  %v3335_v26 = vadd.f32 1.0, %v8897_v13  ;;  %v3346_v54 = vmul.f32 0.5, %v3334_v52 }
 0xb58   :  { %v3318_v11 = vadd.f32 %v6669_v0, %v5830_v28  ;;  %v3285_v21 = vpop.f32.mrb[145].mxu0  ;;  %v3344_v31 = vmul.f32 0.5, %v3332_v60  ;;  %v3333_v2 = vadd.f32 1.0, %v7277_v19 }
 0xb59   :  { %v3316_v38 = vadd.f32 %v5830_v28, %v3285_v21  ;;  %v6670_v1 = vpop.f32.mrb[146].mxu0  ;;  %v3347_v4 = vmul.f32 0.5, %v3335_v26 }
 0xb5a   :  { %7286 = vtanh.f32 %v3318_v11  ;;  %v3319_v49 = vadd.f32 %v6670_v1, %v5830_v28  ;;  %3368 = vrot.lane.b32.xlu0 %v3344_v31, %s7563_s24  ;;  %v3288_v7 = vpop.f32.mrb[147].mxu0  ;;  %v3345_v14 = vmul.f32 0.5, %v3333_v2 }
 0xb5b   :  { %7288 = vtanh.f32 %v3316_v38  ;;  %v3317_v59 = vadd.f32 %v5830_v28, %v3288_v7 }
 0xb5c   :  { %v7279_v24 = vpop.eup %7278  ;;  %7290 = vtanh.f32 %v3319_v49  ;;  %3370 = vrot.lane.b32.xlu1 %v3345_v14, %s7563_s24 }
 0xb5d   :  { %v7281_v12 = vpop.eup %7280  ;;  %7292 = vtanh.f32 %v3317_v59  ;;  %v3338_v43 = vadd.f32 1.0, %v7279_v24 }
 0xb5e   :  { %v7283_v6 = vpop.eup %7282  ;;  %3372 = vrot.lane.b32.xlu0 %v3346_v54, %s7563_s24  ;;  %v3336_v45 = vadd.f32 1.0, %v7281_v12 }
 0xb5f   :  { %v7285_v23 = vpop.eup %7284  ;;  %v3339_v53 = vadd.f32 1.0, %v7283_v6  ;;  %v3350_v32 = vmul.f32 0.5, %v3338_v43  ;;  %v8936_v43 = vld [vmem:[#allocation10 + $0x4] ss:$0 sm:$0xff] }
 0xb60   :  { %3374 = vrot.lane.b32.xlu1 %v3347_v4, %s7563_s24  ;;  %v3348_v17 = vmul.f32 0.5, %v3336_v45  ;;  %v3337_v18 = vadd.f32 1.0, %v7285_v23 }
 0xb61   :  { %v3351_v42 = vmul.f32 0.5, %v3339_v53 }
 0xb62   :  { %3376 = vrot.lane.b32.xlu0 %v3348_v17, %s7563_s24  ;;  %v3349_v57 = vmul.f32 0.5, %v3337_v18  ;;  %v8933_v17 = vld [vmem:[%s9157_s5 + $0x4] ss:$0 sm:$0xff]  ;;  %v3546_v18 = vunpack.c.l.bf16 %v8822_v35 }
 0xb64   :  { %v7287_v27 = vpop.eup %7286  ;;  %3378 = vrot.lane.b32.xlu1 %v3349_v57, %s7563_s24  ;;  %v3549_v57 = vunpack.c.h.bf16 %v8832_v46 }
 0xb65   :  { %v7289_v63 = vpop.eup %7288  ;;  %v3342_v3 = vadd.f32 1.0, %v7287_v27 }
 0xb66   :  { %v7291_v30 = vpop.eup %7290  ;;  %3380 = vrot.lane.b32.xlu0 %v3350_v32, %s7563_s24  ;;  %v3340_v22 = vadd.f32 1.0, %v7289_v63 }
 0xb67   :  { %v7293_v28 = vpop.eup %7292  ;;  %v3343_v34 = vadd.f32 1.0, %v7291_v30  ;;  %v3354_v48 = vmul.f32 0.5, %v3342_v3 }
 0xb68   :  { %3382 = vrot.lane.b32.xlu1 %v3351_v42, %s7563_s24  ;;  %v3352_v55 = vmul.f32 0.5, %v3340_v22  ;;  %v3341_v41 = vadd.f32 1.0, %v7293_v28  ;;  %v3566_v22 = vmul.f32 %v8936_v43, %v3546_v18 }
 0xb69   :  { %v3355_v10 = vmul.f32 0.5, %v3343_v34 }
 0xb6a   :  { %3384 = vrot.lane.b32.xlu0 %v3352_v55, %s7563_s24  ;;  %v3353_v36 = vmul.f32 0.5, %v3341_v41  ;;  %v3569_v41 = vmul.f32 %v8936_v43, %v3549_v57 }
 0xb6c   :  { %3386 = vrot.lane.b32.xlu1 %v3353_v36, %s7563_s24 }
 0xb6e   :  { %3388 = vrot.lane.b32.xlu0 %v3354_v48, %s7563_s24  ;;  %v3552_v48 = vunpack.c.l.bf16 %v8853_v39 }
 0xb70   :  { %3390 = vrot.lane.b32.xlu1 %v3355_v10, %s7563_s24 }
 0xbcc   :  { %v3369_v20 = vpop.permute.xlu0 %3368 }
 0xbcd   :  { %v3404_v16 = vmul.f32 %v8895_v5, %v3369_v20  ;;  %v3550_v20 = vunpack.c.l.bf16 %v8842_v56 }
 0xbce   :  { %v3371_v47 = vpop.permute.xlu1 %3370 }
 0xbcf   :  { %v3405_v44 = vmul.f32 %v7277_v19, %v3371_v47 }
 0xbd0   :  { %v3373_v50 = vpop.permute.xlu0 %3372 }
 0xbd1   :  { %v3416_v58 = vpack.c.bf16 %v3405_v44, %v3404_v16  ;;  %v3406_v8 = vmul.f32 %v8893_v40, %v3373_v50  ;;  %v3553_v16 = vunpack.c.h.bf16 %v8853_v39 }
 0xbd2   :  { %v3375_v15 = vpop.permute.xlu1 %3374 }
 0xbd3   :  { %v3407_v60 = vmul.f32 %v8897_v13, %v3375_v15  ;;  %6675 = vmatprep.mubr.msk.bf16.mxu1 %vm261_vm0, %v3416_v58  ;;  %v3551_v58 = vunpack.c.h.bf16 %v8842_v56 }
 0xbd4   :  { %v3377_v0 = vpop.permute.xlu0 %3376 }
 0xbd5   :  { %v3417_v11 = vpack.c.bf16 %v3407_v60, %v3406_v8  ;;  %v3408_v31 = vmul.f32 %v7281_v12, %v3377_v0  ;;  %v3572_v8 = vmul.f32 %v8936_v43, %v3552_v48  ;;  %v3571_v56 = vmul.f32 %v8936_v43, %v3551_v58 }
 0xbd6   :  { %v3379_v21 = vpop.permute.xlu1 %3378 }
 0xbd7   :  { %v3409_v2 = vmul.f32 %v7285_v23, %v3379_v21  ;;  %6676 = vmatmul.mubr.msk.bf16.vlgmr.msra.gmra.mrb[144].mxu1 %vm261_vm0, %v3417_v11  ;;  %v3548_v23 = vunpack.c.l.bf16 %v8832_v46  ;;  %v3570_v11 = vmul.f32 %v8936_v43, %v3550_v20 }
 0xbd8   :  { %v3381_v52 = vpop.permute.xlu0 %3380  ;;  %6688 = vmatpush3.bf16.msra.mxu1 %v6914_v61 }
 0xbd9   :  { %v3418_v5 = vpack.c.bf16 %v3409_v2, %v3408_v31  ;;  %v3410_v38 = vmul.f32 %v7279_v24, %v3381_v52  ;;  %v6915_v24 = vld [vmem:[#allocation7 + $0x58] sm:$0xff]   ;;  %v3573_v52 = vmul.f32 %v8936_v43, %v3553_v16 }
 0xbda   :  { %v3383_v19 = vpop.permute.xlu1 %3382  ;;  %6689 = vmatprep.subr.bf16.mxu1 %v6915_v24 }
 0xbdb   :  { %v3411_v1 = vmul.f32 %v7283_v6, %v3383_v19  ;;  %6679 = vmatprep.mubr.msk.bf16.mxu1 %vm261_vm0, %v3418_v5  ;;  %v8926_v6 = vld [vmem:[#allocation5 + $0x50] sm:$0xff]  }
 0xbdc   :  { %v3385_v40 = vpop.permute.xlu0 %3384  ;;  %6690 = vmatpush3.bf16.msra.mxu1 %v6915_v24  ;;  %v6917_v24 = vld [vmem:[#allocation5 + $0x58] sm:$0xff]  }
 0xbdd   :  { %v3419_v49 = vpack.c.bf16 %v3411_v1, %v3410_v38  ;;  %v3412_v7 = vmul.f32 %v7289_v63, %v3385_v40  ;;  %6699 = vmatprep.subr.bf16.mxu1 %v8926_v6  ;;  %v3568_v63 = vmul.f32 %v8936_v43, %v3548_v23  ;;  %v3556_v1 = vunpack.c.l.bf16 %v8872_v9 }
 0xbde   :  { %v3387_v13 = vpop.permute.xlu1 %3386 }
 0xbdf   :  { %v3413_v14 = vmul.f32 %v7293_v28, %v3387_v13  ;;  %6680 = vmatmul.mubr.msk.bf16.gmra.mrb[148].mxu1 %vm261_vm0, %v3419_v49  ;;  %v3554_v49 = vunpack.c.l.bf16 %v8863_v51 }
 0xbe0   :  { %v3389_v26 = vpop.permute.xlu0 %3388 }
 0xbe1   :  { %v3420_v59 = vpack.c.bf16 %v3413_v14, %v3412_v7  ;;  %v3414_v12 = vmul.f32 %v7287_v27, %v3389_v26  ;;  %v3547_v27 = vunpack.c.h.bf16 %v8822_v35  ;;  %v3557_v7 = vunpack.c.h.bf16 %v8872_v9 }
 0xbe2   :  { %v3391_v54 = vpop.permute.xlu1 %3390  ;;  %v3574_v18 = vmul.f32 %v8936_v43, %v3554_v49 }
 0xbe3   :  { %v3415_v4 = vmul.f32 %v7291_v30, %v3391_v54  ;;  %6683 = vmatprep.mubr.msk.bf16.mxu1 %vm261_vm0, %v3420_v59  ;;  %v3567_v36 = vmul.f32 %v8936_v43, %v3547_v27  ;;  %v3555_v59 = vunpack.c.h.bf16 %v8863_v51  ;;  %v3577_v27 = vmul.f32 %v8936_v43, %v3557_v7 }
 0xbe5   :  { %v8922_v45 = vpack.c.bf16 %v3415_v4, %v3414_v12  ;;  %v3576_v12 = vmul.f32 %v8936_v43, %v3556_v1 }
 0xbe7   :  { %6684 = vmatmul.mubr.msk.bf16.gmra.mrb[152].mxu1 %vm261_vm0, %v8922_v45 }
 0xcaa   :  { %v6677_v53 = vpop.f32.mrb[144].mxu1 }
 0xcab   :  { %v3508_v32 = vadd.f32 %v6677_v53, %v8933_v17  ;;  %v3499_v30 = vpop.f32.mrb[145].mxu1 }
 0xcac   :  { %v3500_v42 = vadd.f32 %v8933_v17, %v3499_v30  ;;  %v6678_v28 = vpop.f32.mrb[146].mxu1  ;;  %v3575_v30 = vmul.f32 %v8936_v43, %v3555_v59  ;;  %v5855_v43 = vld [vmem:[%s9155_s3 + $0x5] ss:$0 sm:$0xff] }
 0xcad   :  { %v8944_v61 = vadd.f32 %v3568_v63, %v3508_v32  ;;  %v3511_v55 = vadd.f32 %v6678_v28, %v8933_v17  ;;  %v3502_v46 = vpop.f32.mrb[147].mxu1 }
 0xcae   :  { %v3578_v3 = vadd.f32 %v3566_v22, %v3500_v42  ;;  %v3503_v35 = vadd.f32 %v8933_v17, %v3502_v46 }
 0xcaf   :  { %v3581_v34 = vadd.f32 %v3569_v41, %v3511_v55 }
 0xcb0   :  { %v3579_v10 = vadd.f32 %v3567_v36, %v3503_v35 }
 0xcb1   :  { %v3591_v47 = vpack.c.bf16 %v3581_v34, %v8944_v61 }
 0xcb2   :  { %v3590_v44 = vpack.c.bf16 %v3579_v10, %v3578_v3  ;;  %v6681_v50 = vpop.f32.mrb[148].mxu1 }
 0xcb3   :  { %v3524_v15 = vadd.f32 %v6681_v50, %v8933_v17  ;;  %v3515_v60 = vpop.f32.mrb[149].mxu1 }
 0xcb4   :  { %v3516_v0 = vadd.f32 %v8933_v17, %v3515_v60  ;;  %v6682_v21 = vpop.f32.mrb[150].mxu1 }
 0xcb5   :  { %v3584_v31 = vadd.f32 %v3572_v8, %v3524_v15  ;;  %v3527_v2 = vadd.f32 %v6682_v21, %v8933_v17  ;;  %v3518_v39 = vpop.f32.mrb[151].mxu1 }
 0xcb6   :  { %v3582_v5 = vadd.f32 %v3570_v11, %v3516_v0  ;;  %v3519_v19 = vadd.f32 %v8933_v17, %v3518_v39 }
 0xcb7   :  { %v3585_v38 = vadd.f32 %v3573_v52, %v3527_v2 }
 0xcb8   :  { %v3583_v40 = vadd.f32 %v3571_v56, %v3519_v19 }
 0xcb9   :  { %v8965_v13 = vpack.c.bf16 %v3585_v38, %v3584_v31 }
 0xcba   :  { %v8968_v14 = vpack.c.bf16 %v3583_v40, %v3582_v5  ;;  %v6685_v26 = vpop.f32.mrb[152].mxu1 }
 0xcbb   :  { %v3540_v54 = vadd.f32 %v6685_v26, %v8933_v17  ;;  %v3531_v4 = vpop.f32.mrb[153].mxu1  ;;  %v6921_v26 = vld [vmem:[#allocation5 + $0x60] sm:$0xff]  }
 0xcbc   :  { %v3532_v23 = vadd.f32 %v8933_v17, %v3531_v4  ;;  %v6686_v57 = vpop.f32.mrb[154].mxu1  ;;  %6691 = vmatprep.mubr.msk.bf16.mxu1 %vm261_vm0, %v8968_v14 }
 0xcbd   :  { %v3588_v9 = vadd.f32 %v3576_v12, %v3540_v54  ;;  %v3543_v53 = vadd.f32 %v6686_v57, %v8933_v17  ;;  %v3534_v51 = vpop.f32.mrb[155].mxu1  ;;  %6692 = vmatmul.mubr.msk.bf16.vlgmr.msra.gmra.mrb[156].mxu1 %vm261_vm0, %v8965_v13 }
 0xcbe   :  { %v3586_v32 = vadd.f32 %v3574_v18, %v3532_v23  ;;  %v3535_v63 = vadd.f32 %v8933_v17, %v3534_v51  ;;  %6700 = vmatpush3.bf16.msra.mxu1 %v8926_v6  ;;  %v6918_v6 = vld [vmem:[#allocation8 + $0x50] sm:$0xff]   ;;  %v6919_v17 = vld [vmem:[#allocation8 + $0x58] sm:$0xff]  }
 0xcbf   :  { %v3589_v42 = vadd.f32 %v3577_v27, %v3543_v53  ;;  %6701 = vmatprep.subr.bf16.mxu1 %v6917_v24  ;;  %6711 = vmatprep.subr.bf16.mxu0 %v6918_v6 }
 0xcc0   :  { %v3587_v22 = vadd.f32 %v3575_v30, %v3535_v63  ;;  %6712 = vmatpush3.bf16.msra.mxu0 %v6918_v6  ;;  %v6920_v6 = vld [vmem:[#allocation7 + $0x60] sm:$0xff]  }
 0xcc1   :  { %v8984_v28 = vpack.c.bf16 %v3589_v42, %v3588_v9  ;;  %6713 = vmatprep.subr.bf16.mxu0 %v6919_v17 }
 0xcc2   :  { %v8986_v61 = vpack.c.bf16 %v3587_v22, %v3586_v32  ;;  %6702 = vmatpush3.bf16.msra.mxu1 %v6917_v24 }
 0xcc3   :  { %6739 = vmatprep.subr.bf16.mxu1 %v7564_v33 }
 0xcc4   :  { %6695 = vmatprep.mubr.msk.bf16.mxu1 %vm261_vm0, %v8986_v61  ;;  %6714 = vmatpush3.bf16.msra.mxu0 %v6919_v17 }
 0xcc5   :  { %6696 = vmatmul.mubr.msk.bf16.gmra.mrb[160].mxu1 %vm261_vm0, %v8984_v28  ;;  %6723 = vmatprep.subr.bf16.mxu0 %v7564_v33 }
 0xcc6   :  { %6703 = vmatprep.mubr.msk.bf16.mxu1 %vm261_vm0, %v3590_v44 }
 0xccd   :  { %6704 = vmatmul.mubr.msk.bf16.vlgmr.msra.gmra.mrb[156].mxu1 %vm261_vm0, %v3591_v47 }
 0xcce   :  { %6707 = vmatprep.mubr.msk.bf16.mxu1 %vm261_vm0, %v8968_v14  ;;  %6740 = vmatpush3.bf16.msra.mxu1 %v6921_v26  ;;  %v3971_v26 = vunpack.c.h.bf16 %v8984_v28 }
 0xccf   :  { %6741 = vmatprep.subr.bf16.mxu1 %v7564_v33 }
 0xcd5   :  { %6708 = vmatmul.mubr.msk.bf16.gmra.mrb[160].mxu1 %vm261_vm0, %v8965_v13 }
 0xcd6   :  { %6743 = vmatprep.mubr.msk.bf16.mxu1 %vm7565_vm1, %v7564_v33 }
 0xda0   :  { %v6705_v55 = vpop.f32.mrb[156].mxu1 }
 0xda1   :  { %v3788_v41 = vadd.f32 %v6705_v55, %v5855_v43  ;;  %v3747_v46 = vpop.f32.mrb[157].mxu1 }
 0xda2   :  { %v3786_v3 = vadd.f32 %v5855_v43, %v3747_v46  ;;  %v6706_v35 = vpop.f32.mrb[158].mxu1 }
 0xda3   :  { %7294 = vtanh.f32 %v3788_v41  ;;  %v3789_v36 = vadd.f32 %v6706_v35, %v5855_v43  ;;  %v3750_v34 = vpop.f32.mrb[159].mxu1 }
 0xda4   :  { %7296 = vtanh.f32 %v3786_v3  ;;  %v3787_v48 = vadd.f32 %v5855_v43, %v3750_v34 }
 0xda5   :  { %7298 = vtanh.f32 %v3789_v36 }
 0xda6   :  { %7300 = vtanh.f32 %v3787_v48 }
 0xda8   :  { %v6709_v10 = vpop.f32.mrb[160].mxu1 }
 0xda9   :  { %v3792_v20 = vadd.f32 %v6709_v10, %v5855_v43  ;;  %v3763_v47 = vpop.f32.mrb[161].mxu1  ;;  %v6922_v10 = vld [vmem:[#allocation7 + $0x68] sm:$0xff]  }
 0xdaa   :  { %v3790_v16 = vadd.f32 %v5855_v43, %v3763_v47  ;;  %v6710_v44 = vpop.f32.mrb[162].mxu1  ;;  %v3966_v47 = vunpack.c.l.bf16 %v8965_v13 }
 0xdab   :  { %7302 = vtanh.f32 %v3792_v20  ;;  %v3793_v50 = vadd.f32 %v6710_v44, %v5855_v43  ;;  %v3766_v58 = vpop.f32.mrb[163].mxu1  ;;  %v6923_v20 = vld [vmem:[#allocation5 + $0x68] sm:$0xff]   ;;  %v5864_v44 = vld [vmem:[#allocation10 + $0x5] ss:$0 sm:$0xff] }
 0xdac   :  { %7304 = vtanh.f32 %v3790_v16  ;;  %v3791_v15 = vadd.f32 %v5855_v43, %v3766_v58  ;;  %6742 = vmatpush3.bf16.msra.mxu1 %v6923_v20  ;;  %v5857_v16 = vld [vmem:[%s9157_s5 + $0x5] ss:$0 sm:$0xff]  ;;  %v3967_v58 = vunpack.c.h.bf16 %v8965_v13 }
 0xdad   :  { %v7295_v8 = vpop.eup %7294  ;;  %7306 = vtanh.f32 %v3793_v50  ;;  %6771 = vmatprep.subr.bf16.mxu1 %v7564_v33  ;;  %v3964_v50 = vunpack.c.l.bf16 %v8968_v14 }
 0xdae   :  { %v7297_v60 = vpop.eup %7296  ;;  %7308 = vtanh.f32 %v3791_v15  ;;  %v3804_v52 = vadd.f32 1.0, %v7295_v8 }
 0xdaf   :  { %v7299_v0 = vpop.eup %7298  ;;  %v3802_v11 = vadd.f32 1.0, %v7297_v60 }
 0xdb0   :  { %v7301_v21 = vpop.eup %7300  ;;  %v3805_v5 = vadd.f32 1.0, %v7299_v0  ;;  %v3812_v56 = vmul.f32 0.5, %v3804_v52 }
 0xdb1   :  { %v3810_v31 = vmul.f32 0.5, %v3802_v11  ;;  %v3803_v2 = vadd.f32 1.0, %v7301_v21 }
 0xdb2   :  { %v3813_v40 = vmul.f32 0.5, %v3805_v5  ;;  %v3983_v5 = vmul.f32 %v5864_v44, %v3967_v58 }
 0xdb3   :  { %3826 = vrot.lane.b32.xlu0 %v3810_v31, %s7563_s24  ;;  %v3811_v39 = vmul.f32 0.5, %v3803_v2  ;;  %v3980_v31 = vmul.f32 %v5864_v44, %v3964_v50 }
 0xdb5   :  { %v7303_v19 = vpop.eup %7302  ;;  %3828 = vrot.lane.b32.xlu1 %v3811_v39, %s7563_s24 }
 0xdb6   :  { %v7305_v38 = vpop.eup %7304  ;;  %v3808_v12 = vadd.f32 1.0, %v7303_v19 }
 0xdb7   :  { %v7307_v1 = vpop.eup %7306  ;;  %3830 = vrot.lane.b32.xlu0 %v3812_v56, %s7563_s24  ;;  %v3806_v49 = vadd.f32 1.0, %v7305_v38 }
 0xdb8   :  { %v7309_v7 = vpop.eup %7308  ;;  %v3809_v24 = vadd.f32 1.0, %v7307_v1  ;;  %v3816_v23 = vmul.f32 0.5, %v3808_v12  ;;  %v3969_v12 = vunpack.c.h.bf16 %v8986_v61 }
 0xdb9   :  { %3832 = vrot.lane.b32.xlu1 %v3813_v40, %s7563_s24  ;;  %v3814_v59 = vmul.f32 0.5, %v3806_v49  ;;  %v3807_v54 = vadd.f32 1.0, %v7309_v7  ;;  %v3970_v49 = vunpack.c.l.bf16 %v8984_v28 }
 0xdba   :  { %v3817_v18 = vmul.f32 0.5, %v3809_v24 }
 0xdbb   :  { %3834 = vrot.lane.b32.xlu0 %v3814_v59, %s7563_s24  ;;  %v3815_v4 = vmul.f32 0.5, %v3807_v54  ;;  %v3986_v24 = vmul.f32 %v5864_v44, %v3970_v49 }
 0xdbd   :  { %3836 = vrot.lane.b32.xlu1 %v3815_v4, %s7563_s24 }
 0xdbf   :  { %3838 = vrot.lane.b32.xlu0 %v3816_v23, %s7563_s24 }
 0xdc1   :  { %3840 = vrot.lane.b32.xlu1 %v3817_v18, %s7563_s24 }
 0xe25   :  { %v3827_v57 = vpop.permute.xlu0 %3826 }
 0xe26   :  { %v3850_v53 = vmul.f32 %v7297_v60, %v3827_v57 }
 0xe27   :  { %v3829_v9 = vpop.permute.xlu1 %3828 }
 0xe28   :  { %v3851_v27 = vmul.f32 %v7301_v21, %v3829_v9 }
 0xe29   :  { %v3831_v51 = vpop.permute.xlu0 %3830 }
 0xe2a   :  { %v3858_v32 = vpack.c.bf16 %v3851_v27, %v3850_v53  ;;  %v3852_v30 = vmul.f32 %v7295_v8, %v3831_v51  ;;  %v3965_v8 = vunpack.c.h.bf16 %v8968_v14  ;;  %v3987_v27 = vmul.f32 %v5864_v44, %v3971_v26 }
 0xe2b   :  { %v3833_v63 = vpop.permute.xlu1 %3832 }
 0xe2c   :  { %v3853_v42 = vmul.f32 %v7299_v0, %v3833_v63  ;;  %6715 = vmatprep.mubr.msk.bf16.mxu0 %vm261_vm0, %v3858_v32  ;;  %v3982_v0 = vmul.f32 %v5864_v44, %v3966_v47  ;;  %v3985_v63 = vmul.f32 %v5864_v44, %v3969_v12 }
 0xe2d   :  { %v3835_v22 = vpop.permute.xlu0 %3834 }
 0xe2e   :  { %v3859_v17 = vpack.c.bf16 %v3853_v42, %v3852_v30  ;;  %v3854_v55 = vmul.f32 %v7305_v38, %v3835_v22 }
 0xe2f   :  { %v3837_v43 = vpop.permute.xlu1 %3836 }
 0xe30   :  { %v3855_v41 = vmul.f32 %v7309_v7, %v3837_v43  ;;  %6716 = vmatmul.mubr.msk.bf16.vlgmr.msra.gmra.mrb[148].mxu0 %vm261_vm0, %v3859_v17  ;;  %v3968_v7 = vunpack.c.l.bf16 %v8986_v61  ;;  %v6924_v17 = vld [vmem:[#allocation8 + $0x60] sm:$0xff]   ;;  %v6925_v43 = vld [vmem:[#allocation8 + $0x68] sm:$0xff]  }
 0xe31   :  { %v3839_v46 = vpop.permute.xlu0 %3838  ;;  %6724 = vmatpush3.bf16.msra.mxu0 %v6920_v6 }
 0xe32   :  { %v3860_v3 = vpack.c.bf16 %v3855_v41, %v3854_v55  ;;  %6725 = vmatprep.subr.bf16.mxu0 %v7564_v33  ;;  %v3856_v36 = vmul.f32 %v7303_v19, %v3839_v46  ;;  %v3984_v57 = vmul.f32 %v5864_v44, %v3968_v7 }
 0xe33   :  { %v3841_v35 = vpop.permute.xlu1 %3840 }
 0xe34   :  { %v3857_v34 = vmul.f32 %v7307_v1, %v3841_v35  ;;  %6719 = vmatprep.mubr.msk.bf16.mxu0 %vm261_vm0, %v3860_v3  ;;  %v3981_v1 = vmul.f32 %v5864_v44, %v3965_v8  ;;  %v5876_v3 = vld [vmem:[%s9155_s3 + $0x6] ss:$0 sm:$0xff] }
 0xe35   :  { %6726 = vmatpush3.bf16.msra.mxu0 %v6922_v10 }
 0xe36   :  { %v9018_v48 = vpack.c.bf16 %v3857_v34, %v3856_v36  ;;  %6755 = vmatprep.subr.bf16.mxu0 %v7564_v33 }
 0xe38   :  { %6720 = vmatmul.mubr.msk.bf16.gmra.mrb[152].mxu0 %vm261_vm0, %v9018_v48 }
 0xe39   :  { %6727 = vmatprep.mubr.msk.bf16.mxu0 %vm7565_vm1, %v7564_v33 }
 0xf03   :  { %v6717_v15 = vpop.f32.mrb[148].mxu0 }
 0xf04   :  { %v3942_v60 = vadd.f32 %v6717_v15, %v5857_v16  ;;  %v3933_v11 = vpop.f32.mrb[149].mxu0 }
 0xf05   :  { %v3934_v21 = vadd.f32 %v5857_v16, %v3933_v11  ;;  %v6718_v2 = vpop.f32.mrb[150].mxu0 }
 0xf06   :  { %v3990_v52 = vadd.f32 %v3982_v0, %v3942_v60  ;;  %v3945_v39 = vadd.f32 %v6718_v2, %v5857_v16  ;;  %v3936_v19 = vpop.f32.mrb[151].mxu0 }
 0xf07   :  { %v3988_v56 = vadd.f32 %v3980_v31, %v3934_v21  ;;  %v3937_v38 = vadd.f32 %v5857_v16, %v3936_v19 }
 0xf08   :  { %v3991_v40 = vadd.f32 %v3983_v5, %v3945_v39 }
 0xf09   :  { %v3989_v13 = vadd.f32 %v3981_v1, %v3937_v38 }
 0xf0a   :  { %v9035_v14 = vpack.c.bf16 %v3991_v40, %v3990_v52 }
 0xf0b   :  { %v3996_v59 = vpack.c.bf16 %v3989_v13, %v3988_v56  ;;  %v6721_v54 = vpop.f32.mrb[152].mxu0 }
 0xf0c   :  { %v3958_v4 = vadd.f32 %v6721_v54, %v5857_v16  ;;  %v3949_v23 = vpop.f32.mrb[153].mxu0  ;;  %6728 = vmatmul.mubr.msk.bf16.vlgmr.msra.gmra.mrb[156].mxu0 %vm261_vm0, %v9035_v14 }
 0xf0d   :  { %v3950_v18 = vadd.f32 %v5857_v16, %v3949_v23  ;;  %v6722_v9 = vpop.f32.mrb[154].mxu0  ;;  %6744 = vmatmul.mubr.msk.bf16.vlgmr.msra.gmra.mrb[164].mxu1 %vm261_vm0, %v3996_v59  ;;  %6731 = vmatprep.mubr.msk.bf16.mxu0 %vm7565_vm1, %v7564_v33 }
 0xf0e   :  { %v3994_v53 = vadd.f32 %v3986_v24, %v3958_v4  ;;  %v3961_v28 = vadd.f32 %v6722_v9, %v5857_v16  ;;  %v3952_v51 = vpop.f32.mrb[155].mxu0  ;;  %6747 = vmatprep.mubr.msk.bf16.mxu1 %vm7565_vm1, %v7564_v33  ;;  %6756 = vmatpush3.bf16.msra.mxu0 %v6924_v17 }
 0xf0f   :  { %v3992_v61 = vadd.f32 %v3984_v57, %v3950_v18  ;;  %v3953_v32 = vadd.f32 %v5857_v16, %v3952_v51  ;;  %6757 = vmatprep.subr.bf16.mxu0 %v7564_v33 }
 0xf10   :  { %v3995_v30 = vadd.f32 %v3987_v27, %v3961_v28 }
 0xf11   :  { %v3993_v42 = vadd.f32 %v3985_v63, %v3953_v32 }
 0xf12   :  { %v9046_v22 = vpack.c.bf16 %v3995_v30, %v3994_v53  ;;  %6758 = vmatpush3.bf16.msra.mxu0 %v6925_v43 }
 0xf13   :  { %v3998_v6 = vpack.c.bf16 %v3993_v42, %v3992_v61 }
 0xf15   :  { %6732 = vmatmul.mubr.msk.bf16.gmra.mrb[160].mxu0 %vm261_vm0, %v3998_v6  ;;  %6748 = vmatmul.mubr.msk.bf16.gmra.mrb[168].mxu1 %vm261_vm0, %v9035_v14 }
 0xf16   :  { %6735 = vmatprep.mubr.msk.bf16.mxu0 %vm7565_vm1, %v7564_v33  ;;  %6751 = vmatprep.mubr.msk.bf16.mxu1 %vm7565_vm1, %v7564_v33 }
 0xf1d   :  { %6736 = vmatmul.mubr.msk.bf16.gmra.mrb[164].mxu0 %vm261_vm0, %v9046_v22  ;;  %6752 = vmatmul.mubr.msk.bf16.gmra.mrb[172].mxu1 %vm261_vm0, %v3998_v6 }
 0xf1e   :  { %6759 = vmatprep.mubr.msk.bf16.mxu0 %vm7565_vm1, %v7564_v33  ;;  %6775 = vmatprep.mubr.msk.bf16.mxu1 %vm7565_vm1, %v7564_v33 }
 0xfdf   :  { %v4065_v55 = vpop.f32.mrb[156].mxu0 }
 0xfe0   :  { %v6729_v41 = vpop.f32.mrb[157].mxu0  ;;  %v4137_v46 = vpop.f32.mrb[164].mxu1 }
 0xfe1   :  { %v4138_v35 = vadd.f32 %v4137_v46, %v4065_v55  ;;  %v4068_v36 = vpop.f32.mrb[158].mxu0  ;;  %v6745_v34 = vpop.f32.mrb[165].mxu1 }
 0xfe2   :  { %v6730_v10 = vpop.f32.mrb[159].mxu0  ;;  %v4140_v20 = vpop.f32.mrb[166].mxu1 }
 0xfe3   :  { %v4168_v47 = vadd.f32 %v5876_v3, %v4138_v35  ;;  %v4141_v16 = vadd.f32 %v4140_v20, %v4068_v36  ;;  %v6746_v44 = vpop.f32.mrb[167].mxu1 }
 0xfe5   :  { %7310 = vtanh.f32 %v4168_v47  ;;  %v4169_v50 = vadd.f32 %v5876_v3, %v4141_v16 }
 0xfe7   :  { %7312 = vtanh.f32 %v4169_v50 }
 0xfe8   :  { %v4073_v58 = vpop.f32.mrb[160].mxu0  ;;  %v4145_v15 = vpop.f32.mrb[168].mxu1 }
 0xfe9   :  { %v4146_v8 = vadd.f32 %v4145_v15, %v4073_v58  ;;  %v6733_v60 = vpop.f32.mrb[161].mxu0  ;;  %v6749_v0 = vpop.f32.mrb[169].mxu1 }
 0xfea   :  { %v4076_v11 = vpop.f32.mrb[162].mxu0  ;;  %v4148_v21 = vpop.f32.mrb[170].mxu1  ;;  %v6927_v60 = vld [vmem:[#allocation7 + $0x78] sm:$0xff]   ;;  %v4314_v0 = vunpack.c.l.bf16 %v9035_v14 }
 0xfeb   :  { %v4170_v31 = vadd.f32 %v5876_v3, %v4146_v8  ;;  %v4149_v2 = vadd.f32 %v4148_v21, %v4076_v11  ;;  %v6734_v52 = vpop.f32.mrb[163].mxu0  ;;  %v6750_v39 = vpop.f32.mrb[171].mxu1  ;;  %v6926_v8 = vld [vmem:[#allocation7 + $0x70] sm:$0xff]   ;;  %v5878_v11 = vld [vmem:[%s9157_s5 + $0x6] ss:$0 sm:$0xff] }
 0xfec   :  { %6772 = vmatpush3.bf16.msra.mxu1 %v6926_v8  ;;  %v5884_v21 = vld [vmem:[#allocation10 + $0x6] ss:$0 sm:$0xff] }
 0xfed   :  { %7314 = vtanh.f32 %v4170_v31  ;;  %v4171_v5 = vadd.f32 %v5876_v3, %v4149_v2  ;;  %6773 = vmatprep.subr.bf16.mxu1 %v7564_v33  ;;  %v4315_v31 = vunpack.c.h.bf16 %v9035_v14  ;;  %v4326_v39 = vmul.f32 %v5884_v21, %v4314_v0  ;;  %v6935_v8 = vld [vmem:[#allocation11 + $0x14] ss:$8 sps:$4 sm:$0xff]   ;;  %v6938_v0 = vld [vmem:[#allocation11 + $0x24] ss:$8 sps:$4 sm:$0xff]  }
 0xfef   :  { %v7311_v19 = vpop.eup %7310  ;;  %7316 = vtanh.f32 %v4171_v5 }
 0xff0   :  { %v4081_v56 = vpop.f32.mrb[164].mxu0  ;;  %v4153_v38 = vpop.f32.mrb[172].mxu1  ;;  %v4180_v1 = vadd.f32 1.0, %v7311_v19  ;;  %6774 = vmatpush3.bf16.msra.mxu1 %v6927_v60  ;;  %v6933_v60 = vld [vmem:[#allocation11 + $0x10] ss:$8 sps:$4 sm:$0xff]  }
 0xff1   :  { %v7313_v40 = vpop.eup %7312  ;;  %v4154_v49 = vadd.f32 %v4153_v38, %v4081_v56  ;;  %v6737_v13 = vpop.f32.mrb[165].mxu0  ;;  %6779 = vmatprep.subr.bf16.mxu1 %v7564_v33 }
 0xff2   :  { %v6753_v7 = vpop.f32.mrb[173].mxu1  ;;  %v4084_v26 = vpop.f32.mrb[166].mxu0  ;;  %v4186_v54 = vmul.f32 0.5, %v4180_v1  ;;  %v4181_v12 = vadd.f32 1.0, %v7313_v40  ;;  %v4327_v1 = vmul.f32 %v5884_v21, %v4315_v31  ;;  %v6939_v31 = vld [vmem:[#allocation11 + $0x30] ss:$8 sps:$4 sm:$0xff]  }
 0xff3   :  { %v4156_v59 = vpop.f32.mrb[174].mxu1  ;;  %v4172_v4 = vadd.f32 %v5876_v3, %v4154_v49  ;;  %v6738_v23 = vpop.f32.mrb[167].mxu0 }
 0xff4   :  { %v4157_v24 = vadd.f32 %v4156_v59, %v4084_v26  ;;  %v6754_v18 = vpop.f32.mrb[175].mxu1  ;;  %4198 = vrot.lane.b32.xlu0 %v4186_v54, %s7563_s24  ;;  %v4187_v57 = vmul.f32 0.5, %v4181_v12  ;;  %v4316_v12 = vunpack.c.l.bf16 %v9046_v22 }
 0xff5   :  { %7318 = vtanh.f32 %v4172_v4  ;;  %v4317_v4 = vunpack.c.h.bf16 %v9046_v22 }
 0xff6   :  { %v4173_v9 = vadd.f32 %v5876_v3, %v4157_v24  ;;  %4200 = vrot.lane.b32.xlu1 %v4187_v57, %s7563_s24  ;;  %v4328_v23 = vmul.f32 %v5884_v21, %v4316_v12  ;;  %v6974_v12 = vld [vmem:[#allocation11 + $0xe4] ss:$8 sps:$4 sm:$0xff]  }
 0xff7   :  { %v7315_v53 = vpop.eup %7314 }
 0xff8   :  { %7320 = vtanh.f32 %v4173_v9  ;;  %v4182_v28 = vadd.f32 1.0, %v7315_v53 }
 0xff9   :  { %v7317_v27 = vpop.eup %7316 }
 0xffa   :  { %v4188_v51 = vmul.f32 0.5, %v4182_v28  ;;  %v4183_v61 = vadd.f32 1.0, %v7317_v27  ;;  %v4329_v28 = vmul.f32 %v5884_v21, %v4317_v4  ;;  %v6941_v21 = vld [vmem:[#allocation11 + $0x34] ss:$8 sps:$4 sm:$0xff]   ;;  %v6972_v4 = vld [vmem:[#allocation11 + $0xe0] ss:$8 sps:$4 sm:$0xff]  }
 0xffc   :  { %4202 = vrot.lane.b32.xlu0 %v4188_v51, %s7563_s24  ;;  %v4189_v32 = vmul.f32 0.5, %v4183_v61  ;;  %v6928_v61 = vld [vmem:[#allocation5 + $0x70] sm:$0xff]  }
 0xffe   :  { %4204 = vrot.lane.b32.xlu1 %v4189_v32, %s7563_s24 }
 0xfff   :  { %v7319_v63 = vpop.eup %7318 }
0x1000   :  { %v4184_v30 = vadd.f32 1.0, %v7319_v63 }
0x1002   :  { %v7321_v42 = vpop.eup %7320  ;;  %v4190_v6 = vmul.f32 0.5, %v4184_v30 }
0x1003   :  { %v4185_v17 = vadd.f32 1.0, %v7321_v42 }
0x1004   :  { %4206 = vrot.lane.b32.xlu0 %v4190_v6, %s7563_s24 }
0x1005   :  { %v4191_v43 = vmul.f32 0.5, %v4185_v17 }
0x1007   :  { %4208 = vrot.lane.b32.xlu1 %v4191_v43, %s7563_s24  ;;  %v5892_v43 = vld [vmem:[%s9155_s3 + $0x7] ss:$0 sm:$0xff]  ;;  %s7566_s3 = smov 32  }
0x1066   :  { %v4199_v55 = vpop.permute.xlu0 %4198 }
0x1067   :  { %v4216_v46 = vmul.f32 %v7311_v19, %v4199_v55 }
0x1068   :  { %v4201_v41 = vpop.permute.xlu1 %4200 }
0x1069   :  { %v4217_v3 = vmul.f32 %v7313_v40, %v4201_v41 }
0x106b   :  { %v4222_v35 = vpack.c.bf16 %v4217_v3, %v4216_v46 }
0x106d   :  { %6760 = vmatmul.mubr.msk.bf16.vlgmr.msra.gmra.mrb[168].mxu0 %vm261_vm0, %v4222_v35 }
0x106e   :  { %v4203_v36 = vpop.permute.xlu0 %4202  ;;  %6763 = vmatprep.mubr.msk.bf16.mxu0 %vm7565_vm1, %v7564_v33 }
0x106f   :  { %v4218_v10 = vmul.f32 %v7315_v53, %v4203_v36 }
0x1070   :  { %v4205_v34 = vpop.permute.xlu1 %4204 }
0x1071   :  { %v4219_v20 = vmul.f32 %v7317_v27, %v4205_v34 }
0x1073   :  { %v4223_v47 = vpack.c.bf16 %v4219_v20, %v4218_v10 }
0x1075   :  { %6764 = vmatmul.mubr.msk.bf16.gmra.mrb[172].mxu0 %vm261_vm0, %v4223_v47 }
0x1076   :  { %v4207_v16 = vpop.permute.xlu0 %4206  ;;  %6767 = vmatprep.mubr.msk.bf16.mxu0 %vm7565_vm1, %v7564_v33 }
0x1077   :  { %v4220_v50 = vmul.f32 %v7319_v63, %v4207_v16  ;;  %v6929_v63 = vld [vmem:[#allocation5 + $0x78] sm:$0xff]  }
0x1079   :  { %v4209_v44 = vpop.permute.xlu1 %4208 }
0x107a   :  { %v4221_v58 = vmul.f32 %v7321_v42, %v4209_v44 }
0x107c   :  { %v9078_v15 = vpack.c.bf16 %v4221_v58, %v4220_v50  ;;  %v6930_v50 = vld [vmem:[#allocation11] ss:$8 sps:$4 sm:$0xff]   ;;  %v6932_v58 = vld [vmem:[#allocation11 + $0x4] ss:$8 sps:$4 sm:$0xff]  }
0x107d   :  { %4723 = vmatprep.subr.bf16.mxu0 %v6932_v58  ;;  %v7050_v58 = vld [vmem:[#allocation13 + $0x180] ss:$16 sps:$4 sm:$0xff]  }
0x107e   :  { %6768 = vmatmul.mubr.msk.bf16.gmra.mrb[176].mxu0 %vm261_vm0, %v9078_v15 }
0x107f   :  { %4724 = vmatpush1.bf16.msra.mxu0 %v6930_v50  ;;  %v7052_v50 = vld [vmem:[#allocation13 + $0x184] ss:$16 sps:$4 sm:$0xff]  }
0x1080   :  { %4725 = vmatprep.subr.bf16.mxu0 %v6935_v8  ;;  %v7058_v8 = vld [vmem:[#allocation13 + $0x1a4] ss:$16 sps:$4 sm:$0xff]  }
0x1083   :  { %4726 = vmatpush1.bf16.msra.mxu0 %v6933_v60  ;;  %v7056_v60 = vld [vmem:[#allocation13 + $0x1a0] ss:$16 sps:$4 sm:$0xff]  }
0x1084   :  { %4727 = vmatprep.subr.bf16.mxu0 %v6938_v0 }
0x1140   :  { %v4293_v2 = vpop.f32.mrb[168].mxu0 }
0x1141   :  { %v4294_v52 = vadd.f32 %v5878_v11, %v4293_v2  ;;  %v6761_v5 = vpop.f32.mrb[169].mxu0  ;;  %v6942_v2 = vld [vmem:[#allocation11 + $0x40] ss:$8 sps:$4 sm:$0xff]  }
0x1142   :  { %v4296_v19 = vpop.f32.mrb[170].mxu0  ;;  %v6953_v5 = vld [vmem:[#allocation11 + $0x74] ss:$8 sps:$4 sm:$0xff]  }
0x1143   :  { %v4330_v56 = vadd.f32 %v4326_v39, %v4294_v52  ;;  %v4297_v38 = vadd.f32 %v5878_v11, %v4296_v19  ;;  %v6762_v40 = vpop.f32.mrb[171].mxu0  ;;  %v6950_v52 = vld [vmem:[#allocation11 + $0x64] ss:$8 sps:$4 sm:$0xff]   ;;  %v6948_v39 = vld [vmem:[#allocation11 + $0x60] ss:$8 sps:$4 sm:$0xff]  }
0x1144   :  { %v6956_v19 = vld [vmem:[#allocation11 + $0x84] ss:$8 sps:$4 sm:$0xff]   ;;  %v6960_v40 = vld [vmem:[#allocation11 + $0xa0] ss:$8 sps:$4 sm:$0xff]  }
0x1145   :  { %v4331_v49 = vadd.f32 %v4327_v1, %v4297_v38  ;;  %v6957_v38 = vld [vmem:[#allocation11 + $0x90] ss:$8 sps:$4 sm:$0xff]   ;;  %v6962_v1 = vld [vmem:[#allocation11 + $0xa4] ss:$8 sps:$4 sm:$0xff]  }
0x1147   :  { %v4334_v13 = vpack.c.bf16 %v4331_v49, %v4330_v56  ;;  %v6954_v56 = vld [vmem:[#allocation11 + $0x80] ss:$8 sps:$4 sm:$0xff]   ;;  %v6965_v49 = vld [vmem:[#allocation11 + $0xb4] ss:$8 sps:$4 sm:$0xff]  }
0x1148   :  { %v4301_v7 = vpop.f32.mrb[172].mxu0 }
0x1149   :  { %v6765_v26 = vpop.f32.mrb[173].mxu0  ;;  %v6968_v7 = vld [vmem:[#allocation11 + $0xc4] ss:$8 sps:$4 sm:$0xff]  }
0x114a   :  { %v4303_v59 = vpop.f32.mrb[174].mxu0  ;;  %v6966_v26 = vld [vmem:[#allocation11 + $0xc0] ss:$8 sps:$4 sm:$0xff]  }
0x114b   :  { %v6766_v54 = vpop.f32.mrb[175].mxu0  ;;  %v6971_v59 = vld [vmem:[#allocation11 + $0xd4] ss:$8 sps:$4 sm:$0xff]  }
0x114c   :  { %v6969_v54 = vld [vmem:[#allocation11 + $0xd0] ss:$8 sps:$4 sm:$0xff]  }
0x1151   :  { %v4307_v14 = vpop.f32.mrb[176].mxu0 }
0x1152   :  { %v4308_v24 = vadd.f32 %v5878_v11, %v4307_v14  ;;  %v6769_v18 = vpop.f32.mrb[177].mxu0  ;;  %v6977_v14 = vld [vmem:[#allocation11 + $0xf4] ss:$8 sps:$4 sm:$0xff]  }
0x1153   :  { %v4310_v57 = vpop.f32.mrb[178].mxu0  ;;  %v6980_v18 = vld [vmem:[#allocation13 + $0x4] ss:$16 sps:$4 sm:$0xff]  }
0x1154   :  { %v4332_v9 = vadd.f32 %v4328_v23, %v4308_v24  ;;  %v4311_v53 = vadd.f32 %v5878_v11, %v4310_v57  ;;  %v6770_v27 = vpop.f32.mrb[179].mxu0  ;;  %v6936_v11 = vld [vmem:[#allocation11 + $0x20] ss:$8 sps:$4 sm:$0xff]   ;;  %v6975_v24 = vld [vmem:[#allocation11 + $0xf0] ss:$8 sps:$4 sm:$0xff]  }
0x1155   :  { %4728 = vmatpush1.bf16.msra.mxu0 %v6936_v11  ;;  %v6978_v23 = vld [vmem:[#allocation13] ss:$16 sps:$4 sm:$0xff]   ;;  %v6983_v57 = vld [vmem:[#allocation13 + $0xc] ss:$16 sps:$4 sm:$0xff]   ;;  %v6992_v27 = vld [vmem:[#allocation13 + $0x44] ss:$16 sps:$4 sm:$0xff]  }
0x1156   :  { %v4333_v51 = vadd.f32 %v4329_v28, %v4311_v53  ;;  %4729 = vmatprep.subr.bf16.mxu0 %v6941_v21  ;;  %v6984_v53 = vld [vmem:[#allocation13 + $0x20] ss:$16 sps:$4 sm:$0xff]  }
0x1158   :  { %v4335_v32 = vpack.c.bf16 %v4333_v51, %v4332_v9  ;;  %v6986_v9 = vld [vmem:[#allocation13 + $0x24] ss:$16 sps:$4 sm:$0xff]  }
0x1159   :  { %4730 = vmatpush1.bf16.msra.mxu0 %v6939_v31 }
0x115a   :  { %6776 = vmatmul.mubr.msk.bf16.vlgmr.msra.gmra.mrb[176].mxu1 %vm261_vm0, %v4335_v32 }
0x115b   :  { %6780 = vmatpush3.bf16.msra.mxu1 %v6928_v61  ;;  %6783 = vmatprep.mubr.msk.bf16.mxu1 %vm7565_vm1, %v7564_v33 }
0x115c   :  { %6781 = vmatprep.subr.bf16.mxu1 %v7564_v33 }
0x115f   :  { %6782 = vmatpush3.bf16.msra.mxu1 %v6929_v63  ;;  %v6990_v63 = vld [vmem:[#allocation13 + $0x40] ss:$16 sps:$4 sm:$0xff]  }
0x1160   :  { %5178 = vmatprep.subr.bf16.mxu1 %v6980_v18  ;;  %v7043_v18 = vld [vmem:[#allocation13 + $0x14c] ss:$16 sps:$4 sm:$0xff]  }
0x1162   :  { %6784 = vmatmul.mubr.msk.bf16.vlgmr.msra.gmra.mrb[180].mxu1 %vm261_vm0, %v4334_v13  ;;  %v6963_v13 = vld [vmem:[#allocation11 + $0xb0] ss:$8 sps:$4 sm:$0xff]  }
0x1163   :  { %5179 = vmatpush1.bf16.msra.mxu1 %v6978_v23  ;;  %v7035_v23 = vld [vmem:[#allocation13 + $0x128] ss:$16 sps:$4 sm:$0xff]  }
0x1164   :  { %5180 = vmatprep.subr.bf16.mxu1 %v6986_v9  ;;  %v7049_v9 = vld [vmem:[#allocation13 + $0x16c] ss:$16 sps:$4 sm:$0xff]  }
0x1167   :  { %5181 = vmatpush1.bf16.msra.mxu1 %v6984_v53  ;;  %v7047_v53 = vld [vmem:[#allocation13 + $0x168] ss:$16 sps:$4 sm:$0xff]  }
0x1168   :  { %5182 = vmatprep.subr.bf16.mxu1 %v6992_v27  ;;  %v7053_v27 = vld [vmem:[#allocation13 + $0x188] ss:$16 sps:$4 sm:$0xff]  }
0x116b   :  { %5183 = vmatpush1.bf16.msra.mxu1 %v6990_v63  ;;  %v7067_v63 = vld [vmem:[#allocation13 + $0x1cc] ss:$16 sps:$4 sm:$0xff]  }
0x122d   :  { %v4395_v22 = vpop.f32.mrb[176].mxu1 }
0x122e   :  { %v6777_v30 = vpop.f32.mrb[177].mxu1 }
0x122f   :  { %v4398_v42 = vpop.f32.mrb[178].mxu1  ;;  %v6998_v30 = vld [vmem:[#allocation13 + $0x64] ss:$16 sps:$4 sm:$0xff]  }
0x1230   :  { %v6778_v6 = vpop.f32.mrb[179].mxu1  ;;  %5184 = vmatprep.subr.bf16.mxu1 %v6998_v30  ;;  %v7065_v30 = vld [vmem:[#allocation13 + $0x1c8] ss:$16 sps:$4 sm:$0xff]  }
0x1231   :  { %v7004_v6 = vld [vmem:[#allocation13 + $0x84] ss:$16 sps:$4 sm:$0xff]  }
0x1235   :  { %v4451_v17 = vpop.f32.mrb[180].mxu1 }
0x1236   :  { %v4452_v55 = vadd.f32 %v4451_v17, %v4395_v22  ;;  %v6785_v41 = vpop.f32.mrb[181].mxu1  ;;  %v7002_v17 = vld [vmem:[#allocation13 + $0x80] ss:$16 sps:$4 sm:$0xff]  }
0x1237   :  { %v4454_v46 = vpop.f32.mrb[182].mxu1  ;;  %v7016_v41 = vld [vmem:[#allocation13 + $0xc4] ss:$16 sps:$4 sm:$0xff]  }
0x1238   :  { %v4466_v3 = vadd.f32 %v5892_v43, %v4452_v55  ;;  %v4455_v35 = vadd.f32 %v4454_v46, %v4398_v42  ;;  %v6786_v36 = vpop.f32.mrb[183].mxu1  ;;  %v6996_v42 = vld [vmem:[#allocation13 + $0x60] ss:$16 sps:$4 sm:$0xff]  }
0x1239   :  { %5185 = vmatpush1.bf16.msra.mxu1 %v6996_v42  ;;  %v7008_v55 = vld [vmem:[#allocation13 + $0xa0] ss:$16 sps:$4 sm:$0xff]   ;;  %v7028_v36 = vld [vmem:[#allocation13 + $0x104] ss:$16 sps:$4 sm:$0xff]  }
0x123a   :  { %7322 = vtanh.f32 %v4466_v3  ;;  %v4467_v33 = vadd.f32 %v5892_v43, %v4455_v35  ;;  %5186 = vmatprep.subr.bf16.mxu1 %v7004_v6  ;;  %v7010_v43 = vld [vmem:[#allocation13 + $0xa4] ss:$16 sps:$4 sm:$0xff]   ;;  %v7014_v46 = vld [vmem:[#allocation13 + $0xc0] ss:$16 sps:$4 sm:$0xff]   ;;  %v7073_v6 = vld [vmem:[#allocation13 + $0x1ec] ss:$16 sps:$4 sm:$0xff]  }
0x123b   :  { %v7022_v3 = vld [vmem:[#allocation13 + $0xe4] ss:$16 sps:$4 sm:$0xff]   ;;  %v7020_v35 = vld [vmem:[#allocation13 + $0xe0] ss:$16 sps:$4 sm:$0xff]  }
0x123c   :  { %7324 = vtanh.f32 %v4467_v33  ;;  %v7026_v33 = vld [vmem:[#allocation13 + $0x100] ss:$16 sps:$4 sm:$0xff]   ;;  %v7070_v42 = vld [vmem:[#allocation13 + $0x1e4] ss:$16 sps:$4 sm:$0xff]  }
0x123d   :  { %5187 = vmatpush1.bf16.msra.mxu1 %v7002_v17  ;;  %v7068_v17 = vld [vmem:[#allocation13 + $0x1e0] ss:$16 sps:$4 sm:$0xff]  }
0x123e   :  { %5188 = vmatprep.subr.bf16.mxu1 %v7010_v43  ;;  %v7071_v43 = vld [vmem:[#allocation13 + $0x1e8] ss:$16 sps:$4 sm:$0xff]  }
0x1241   :  { %5189 = vmatpush1.bf16.msra.mxu1 %v7008_v55  ;;  %v7074_v55 = vld [vmem:[#allocation14 + $0x40] sm:$0xff]  }
0x1242   :  { %5190 = vmatprep.subr.bf16.mxu1 %v7016_v41  ;;  %v4553_v41 = vlaneseq }
0x1244   :  { %v9099_v34 = vpop.eup %7322 }
0x1245   :  { %v4470_v10 = vadd.f32 1.0, %v9099_v34  ;;  %5191 = vmatpush1.bf16.msra.mxu1 %v7014_v46  ;;  %v9122_v46 = vshrl.u32 %v4553_v41, 7 }
0x1246   :  { %v9102_v20 = vpop.eup %7324  ;;  %5192 = vmatprep.subr.bf16.mxu1 %v7022_v3 }
0x1247   :  { %v4472_v47 = vmul.f32 0.5, %v4470_v10  ;;  %v4471_v16 = vadd.f32 1.0, %v9102_v20  ;;  %v7032_v10 = vld [vmem:[#allocation13 + $0x120] ss:$16 sps:$4 sm:$0xff]   ;;  %v4555_v3 = vsub.s32 0, %v9122_v46 }
0x1249   :  { %4476 = vrot.lane.b32.xlu0 %v4472_v47, %s7563_s24  ;;  %v4473_v44 = vmul.f32 0.5, %v4471_v16  ;;  %5193 = vmatpush1.bf16.msra.mxu1 %v7020_v35  ;;  %v7038_v47 = vld [vmem:[#allocation13 + $0x140] ss:$16 sps:$4 sm:$0xff]   ;;  %v7046_v16 = vld [vmem:[#allocation13 + $0x164] ss:$16 sps:$4 sm:$0xff]  }
0x124a   :  { %5194 = vmatprep.subr.bf16.mxu1 %v7028_v36  ;;  %v4551_v35 = vld [vmem:[%s9160_s8] sm:$0x3]  ;;  %v4559_v36 = vsub.s32 1, %v9122_v46 }
0x124b   :  { %4478 = vrot.lane.b32.xlu1 %v4473_v44, %s7563_s24  ;;  %v7044_v44 = vld [vmem:[#allocation13 + $0x160] ss:$16 sps:$4 sm:$0xff]  }
0x124d   :  { %4495 = vrot.lane.b32.xlu0 %v9018_v48, %s7566_s3  ;;  %v6944_v48 = vld [vmem:[#allocation11 + $0x44] ss:$8 sps:$4 sm:$0xff]   ;;  %5195 = vmatpush1.bf16.msra.mxu1 %v7026_v33  ;;  %v4556_v33 = vrot.slane %v4551_v35, %v4555_v3 }
0x124e   :  { %4731 = vmatprep.subr.bf16.mxu0 %v6944_v48 }
0x124f   :  { %4486 = vrot.lane.b32.xlu1 %v8227_v37, %s7566_s3  ;;  %v6947_v37 = vld [vmem:[#allocation11 + $0x54] ss:$8 sps:$4 sm:$0xff]   ;;  %4732 = vmatpush1.bf16.msra.mxu0 %v6942_v2 }
0x1250   :  { %4733 = vmatprep.subr.bf16.mxu0 %v6947_v37 }
0x1251   :  { %4498 = vrot.lane.b32.xlu0 %v9078_v15, %s7550_s20  ;;  %v6945_v15 = vld [vmem:[#allocation11 + $0x50] ss:$8 sps:$4 sm:$0xff]  }
0x1253   :  { %4489 = vrot.lane.b32.xlu1 %v8532_v25, %s7550_s20  ;;  %4734 = vmatpush1.bf16.msra.mxu0 %v6945_v15  ;;  %v6951_v25 = vld [vmem:[#allocation11 + $0x70] ss:$8 sps:$4 sm:$0xff]  }
0x1254   :  { %4735 = vmatprep.subr.bf16.mxu0 %v6950_v52 }
0x1257   :  { %4492 = vrot.lane.b32.xlu1 %v8793_v29, %s7563_s24  ;;  %4736 = vmatpush1.bf16.msra.mxu0 %v6948_v39  ;;  %v6959_v29 = vld [vmem:[#allocation11 + $0x94] ss:$8 sps:$4 sm:$0xff]   ;;  %v6981_v39 = vld [vmem:[#allocation13 + $0x8] ss:$16 sps:$4 sm:$0xff]  }
0x1258   :  { %4737 = vmatprep.subr.bf16.mxu0 %v6953_v5 }
0x125b   :  { %4738 = vmatpush1.bf16.msra.mxu0 %v6951_v25 }
0x125c   :  { %4739 = vmatprep.subr.bf16.mxu0 %v6956_v19  ;;  %v6989_v19 = vld [vmem:[#allocation13 + $0x2c] ss:$16 sps:$4 sm:$0xff]  }
0x125f   :  { %4740 = vmatpush1.bf16.msra.mxu0 %v6954_v56 }
0x1260   :  { %4741 = vmatprep.subr.bf16.mxu0 %v6959_v29  ;;  %v6987_v29 = vld [vmem:[#allocation13 + $0x28] ss:$16 sps:$4 sm:$0xff]  }
0x1263   :  { %4742 = vmatpush1.bf16.msra.mxu0 %v6957_v38  ;;  %v6995_v38 = vld [vmem:[#allocation13 + $0x4c] ss:$16 sps:$4 sm:$0xff]  }
0x1264   :  { %4743 = vmatprep.subr.bf16.mxu0 %v6962_v1  ;;  %v7001_v1 = vld [vmem:[#allocation13 + $0x6c] ss:$16 sps:$4 sm:$0xff]  }
0x1267   :  { %4744 = vmatpush1.bf16.msra.mxu0 %v6960_v40  ;;  %v6999_v40 = vld [vmem:[#allocation13 + $0x68] ss:$16 sps:$4 sm:$0xff]  }
0x1268   :  { %4745 = vmatprep.subr.bf16.mxu0 %v6965_v49  ;;  %v7005_v49 = vld [vmem:[#allocation13 + $0x88] ss:$16 sps:$4 sm:$0xff]  }
0x126b   :  { %4746 = vmatpush1.bf16.msra.mxu0 %v6963_v13  ;;  %v7013_v13 = vld [vmem:[#allocation13 + $0xac] ss:$16 sps:$4 sm:$0xff]  }
0x126c   :  { %4747 = vmatprep.subr.bf16.mxu0 %v6968_v7  ;;  %v7011_v7 = vld [vmem:[#allocation13 + $0xa8] ss:$16 sps:$4 sm:$0xff]  }
0x126f   :  { %4748 = vmatpush1.bf16.msra.mxu0 %v6966_v26  ;;  %v7019_v26 = vld [vmem:[#allocation13 + $0xcc] ss:$16 sps:$4 sm:$0xff]  }
0x1270   :  { %4749 = vmatprep.subr.bf16.mxu0 %v6971_v59  ;;  %v7017_v59 = vld [vmem:[#allocation13 + $0xc8] ss:$16 sps:$4 sm:$0xff]  }
0x1273   :  { %4750 = vmatpush1.bf16.msra.mxu0 %v6969_v54  ;;  %v7025_v54 = vld [vmem:[#allocation13 + $0xec] ss:$16 sps:$4 sm:$0xff]  }
0x1274   :  { %4751 = vmatprep.subr.bf16.mxu0 %v6974_v12  ;;  %v7023_v12 = vld [vmem:[#allocation13 + $0xe8] ss:$16 sps:$4 sm:$0xff]  }
0x1277   :  { %4752 = vmatpush1.bf16.msra.mxu0 %v6972_v4  ;;  %v7031_v4 = vld [vmem:[#allocation13 + $0x10c] ss:$16 sps:$4 sm:$0xff]  }
0x1278   :  { %4753 = vmatprep.subr.bf16.mxu0 %v6977_v14  ;;  %v7029_v14 = vld [vmem:[#allocation13 + $0x108] ss:$16 sps:$4 sm:$0xff]  }
0x127b   :  { %4754 = vmatpush1.bf16.msra.mxu0 %v6975_v24  ;;  %v7037_v24 = vld [vmem:[#allocation13 + $0x12c] ss:$16 sps:$4 sm:$0xff]  }
0x127c   :  { %5221 = vmatprep.subr.bf16.mxu0 %v6983_v57  ;;  %v7041_v57 = vld [vmem:[#allocation13 + $0x148] ss:$16 sps:$4 sm:$0xff]  }
0x12bb   :  { %v4477_v28 = vpop.permute.xlu0 %4476 }
0x12bc   :  { %v4482_v61 = vmul.f32 %v9099_v34, %v4477_v28  ;;  %v7034_v34 = vld [vmem:[#allocation13 + $0x124] ss:$16 sps:$4 sm:$0xff]   ;;  %v7055_v28 = vld [vmem:[#allocation13 + $0x18c] ss:$16 sps:$4 sm:$0xff]  }
0x12bd   :  { %v4479_v51 = vpop.permute.xlu1 %4478  ;;  %5196 = vmatprep.subr.bf16.mxu1 %v7034_v34  ;;  %v4560_v34 = vrot.slane %v4551_v35, %v4559_v36 }
0x12be   :  { %v4483_v32 = vmul.f32 %v9102_v20, %v4479_v51  ;;  %v7040_v20 = vld [vmem:[#allocation13 + $0x144] ss:$16 sps:$4 sm:$0xff]   ;;  %5197 = vmatpush1.bf16.msra.mxu1 %v7032_v10  ;;  %v7061_v51 = vld [vmem:[#allocation13 + $0x1ac] ss:$16 sps:$4 sm:$0xff]  }
0x12bf   :  { %5198 = vmatprep.subr.bf16.mxu1 %v7040_v20  ;;  %v4496_v11 = vpop.permute.xlu0 %4495 }
0x12c0   :  { %v4484_v22 = vpack.c.bf16 %v4483_v32, %v4482_v61  ;;  %v4513_v48 = vsel %vm261_vm0, %v8922_v45, %v4496_v11  ;;  %v6993_v45 = vld [vmem:[#allocation13 + $0x48] ss:$16 sps:$4 sm:$0xff]   ;;  %v7064_v32 = vld [vmem:[#allocation13 + $0x1c4] ss:$16 sps:$4 sm:$0xff]  }
0x12c1   :  { %v4487_v0 = vpop.permute.xlu1 %4486  ;;  %v7059_v61 = vld [vmem:[#allocation13 + $0x1a8] ss:$16 sps:$4 sm:$0xff]  }
0x12c2   :  { %4501 = vrot.lane.b32.xlu0 %v4484_v22, %s7563_s24  ;;  %5199 = vmatpush1.bf16.msra.mxu1 %v7038_v47  ;;  %v4504_v37 = vsel %vm261_vm0, %v7943_v62, %v4487_v0  ;;  %v7007_v62 = vld [vmem:[#allocation13 + $0x8c] ss:$16 sps:$4 sm:$0xff]   ;;  %v7062_v22 = vld [vmem:[#allocation13 + $0x1c0] ss:$16 sps:$4 sm:$0xff]  }
0x12c3   :  { %5200 = vmatprep.subr.bf16.mxu1 %v7046_v16  ;;  %v4499_v31 = vpop.permute.xlu0 %4498 }
0x12c4   :  { %v4515_v15 = vsel %vm4505_vm2, %v4513_v48, %v4499_v31 }
0x12c5   :  { %v4490_v21 = vpop.permute.xlu1 %4489 }
0x12c6   :  { %5201 = vmatpush1.bf16.msra.mxu1 %v7044_v44  ;;  %v4507_v5 = vsel %vm4505_vm2, %v4504_v37, %v4490_v21  ;;  %v7076_v37 = vld [vmem:[#allocation14 + $0x48] sm:$0xff]  }
0x12c7   :  { %5202 = vmatprep.subr.bf16.mxu1 %v7052_v50 }
0x12c9   :  { %v4493_v2 = vpop.permute.xlu1 %4492 }
0x12ca   :  { %5203 = vmatpush1.bf16.msra.mxu1 %v7050_v58  ;;  %v4510_v56 = vsel %vm4508_vm3, %v4507_v5, %v4493_v2  ;;  %v7075_v2 = vld [vmem:[#allocation14] sm:$0xff]   ;;  %v7080_v5 = vld [vmem:[#allocation14 + $0x58] sm:$0xff]  }
0x12cb   :  { %5204 = vmatprep.subr.bf16.mxu1 %v7058_v8 }
0x12ce   :  { %5205 = vmatpush1.bf16.msra.mxu1 %v7056_v60 }
0x12cf   :  { %5206 = vmatprep.subr.bf16.mxu1 %v7064_v32 }
0x12d2   :  { %5207 = vmatpush1.bf16.msra.mxu1 %v7062_v22 }
0x12d3   :  { %5208 = vmatprep.subr.bf16.mxu1 %v7070_v42 }
0x12d6   :  { %5209 = vmatpush1.bf16.msra.mxu1 %v7068_v17 }
0x12d7   :  { %6223 = vmatprep.subr.bf16.mxu1 %v7074_v55 }
0x1334   :  { %v4502_v52 = vpop.permute.xlu0 %4501 }
0x1335   :  { %v4517_v25 = vsel %vm4508_vm3, %v4515_v15, %v4502_v52  ;;  %v7077_v15 = vld [vmem:[#allocation14 + $0x8] sm:$0xff]   ;;  %v7078_v52 = vld [vmem:[#allocation14 + $0x50] sm:$0xff]  }
0x1336   :  { %4755 = vmatprep.mubr.bf16.mxu0 %v4517_v25  ;;  %v7081_v25 = vld [vmem:[#allocation14 + $0x18] sm:$0xff]  }
0x1337   :  { %4756 = vmatmul.mubr.bf16.vlgmr.msra.gmra.mrb[180].mxu0 %v4510_v56  ;;  %v7083_v56 = vld [vmem:[#allocation14 + $0x20] sm:$0xff]  }
0x1338   :  { %5222 = vmatpush1.bf16.msra.mxu0 %v6981_v39  ;;  %v7079_v39 = vld [vmem:[#allocation14 + $0x10] sm:$0xff]  }
0x1339   :  { %5223 = vmatprep.subr.bf16.mxu0 %v6989_v19  ;;  %v7082_v19 = vld [vmem:[#allocation14 + $0x60] sm:$0xff]  }
0x133c   :  { %5224 = vmatpush1.bf16.msra.mxu0 %v6987_v29  ;;  %v7084_v29 = vld [vmem:[#allocation14 + $0x68] sm:$0xff]  }
0x133d   :  { %5225 = vmatprep.subr.bf16.mxu0 %v6995_v38  ;;  %v7085_v38 = vld [vmem:[#allocation14 + $0x28] sm:$0xff]  }
0x1340   :  { %5226 = vmatpush1.bf16.msra.mxu0 %v6993_v45  ;;  %v7086_v45 = vld [vmem:[#allocation14 + $0x70] sm:$0xff]  }
0x1341   :  { %5227 = vmatprep.subr.bf16.mxu0 %v7001_v1  ;;  %v7087_v1 = vld [vmem:[#allocation14 + $0x30] sm:$0xff]  }
0x1344   :  { %5228 = vmatpush1.bf16.msra.mxu0 %v6999_v40  ;;  %v7088_v40 = vld [vmem:[#allocation14 + $0x78] sm:$0xff]  }
0x1345   :  { %5229 = vmatprep.subr.bf16.mxu0 %v7007_v62  ;;  %v7089_v62 = vld [vmem:[#allocation14 + $0x38] sm:$0xff]  }
0x1348   :  { %5230 = vmatpush1.bf16.msra.mxu0 %v7005_v49  ;;  %v7090_v49 = vld [vmem:[#allocation14 + $0xc0] sm:$0xff]  }
0x1349   :  { %5231 = vmatprep.subr.bf16.mxu0 %v7013_v13  ;;  %v4848_v13 = vsub.s32 2, %v9122_v46 }
0x134c   :  { %5232 = vmatpush1.bf16.msra.mxu0 %v7011_v7  ;;  %v4836_v7 = vld [vmem:[%s9162_s10] sm:$0xf] }
0x134d   :  { %5233 = vmatprep.subr.bf16.mxu0 %v7019_v26  ;;  %v4852_v26 = vsub.s32 3, %v9122_v46 }
0x1350   :  { %5234 = vmatpush1.bf16.msra.mxu0 %v7017_v59  ;;  %v4841_v59 = vrot.slane %v4836_v7, %v4555_v3 }
0x1351   :  { %5235 = vmatprep.subr.bf16.mxu0 %v7025_v54  ;;  %v4849_v54 = vrot.slane %v4836_v7, %v4848_v13 }
0x1354   :  { %5236 = vmatpush1.bf16.msra.mxu0 %v7023_v12  ;;  %v4845_v12 = vrot.slane %v4836_v7, %v4559_v36 }
0x1355   :  { %5237 = vmatprep.subr.bf16.mxu0 %v7031_v4  ;;  %v4853_v4 = vrot.slane %v4836_v7, %v4852_v26 }
0x1358   :  { %5238 = vmatpush1.bf16.msra.mxu0 %v7029_v14 }
0x1359   :  { %5239 = vmatprep.subr.bf16.mxu0 %v7037_v24 }
0x135c   :  { %5240 = vmatpush1.bf16.msra.mxu0 %v7035_v23 }
0x135d   :  { %5241 = vmatprep.subr.bf16.mxu0 %v7043_v18 }
0x1360   :  { %5242 = vmatpush1.bf16.msra.mxu0 %v7041_v57 }
0x1361   :  { %5243 = vmatprep.subr.bf16.mxu0 %v7049_v9 }
0x1364   :  { %5244 = vmatpush1.bf16.msra.mxu0 %v7047_v53 }
0x1365   :  { %5245 = vmatprep.subr.bf16.mxu0 %v7055_v28 }
0x1368   :  { %5246 = vmatpush1.bf16.msra.mxu0 %v7053_v27 }
0x1369   :  { %5247 = vmatprep.subr.bf16.mxu0 %v7061_v51 }
0x136c   :  { %5248 = vmatpush1.bf16.msra.mxu0 %v7059_v61 }
0x136d   :  { %5249 = vmatprep.subr.bf16.mxu0 %v7067_v63 }
0x1370   :  { %5250 = vmatpush1.bf16.msra.mxu0 %v7065_v30 }
0x1371   :  { %5251 = vmatprep.subr.bf16.mxu0 %v7073_v6 }
0x1374   :  { %5252 = vmatpush1.bf16.msra.mxu0 %v7071_v43 }
0x140a   :  { %v4757_v10 = vpop.f32.mrb[180].mxu0 }
0x140b   :  { %v4758_v20 = vadd.f32 %v4757_v10, %v4556_v33  ;;  %v4759_v47 = vpop.f32.mrb[181].mxu0 }
0x140c   :  { %v4760_v16 = vadd.f32 %v4759_v47, %v4560_v34  ;;  %v4761_v44 = vpop.f32.mrb[182].mxu0  ;;  %v7092_v47 = vld [vmem:[#allocation14 + $0xc8] sm:$0xff]  }
0x140d   :  { %v4762_v50 = vadd.f32 %v4761_v44, %v4556_v33  ;;  %v4763_v58 = vpop.f32.mrb[183].mxu0  ;;  %v4766_v60 = vmax.f32 %v4758_v20, 0.0  ;;  %v7091_v20 = vld [vmem:[#allocation14 + $0x80] sm:$0xff]   ;;  %v7094_v44 = vld [vmem:[#allocation14 + $0xd0] sm:$0xff]  }
0x140e   :  { %v4764_v8 = vadd.f32 %v4763_v58, %v4560_v34  ;;  %v4767_v11 = vmax.f32 %v4760_v16, 0.0  ;;  %v7093_v16 = vld [vmem:[#allocation14 + $0x88] sm:$0xff]   ;;  %v7096_v58 = vld [vmem:[#allocation14 + $0xd8] sm:$0xff]  }
0x140f   :  { %v4768_v0 = vmax.f32 %v4762_v50, 0.0  ;;  %v7095_v50 = vld [vmem:[#allocation14 + $0x90] sm:$0xff]  }
0x1410   :  { %v4769_v21 = vmax.f32 %v4764_v8, 0.0  ;;  %v7097_v8 = vld [vmem:[#allocation14 + $0x98] sm:$0xff]  }
0x1411   :  { %v4770_v31 = vpack.c.bf16 %v4768_v0, %v4766_v60  ;;  %v7098_v60 = vld [vmem:[#allocation14 + $0xe0] sm:$0xff]  }
0x1412   :  { %v4771_v48 = vpack.c.bf16 %v4769_v21, %v4767_v11  ;;  %v7099_v0 = vld [vmem:[#allocation14 + $0xa0] sm:$0xff]   ;;  %v7100_v11 = vld [vmem:[#allocation14 + $0xe8] sm:$0xff]  }
0x1413   :  { %v7101_v21 = vld [vmem:[#allocation14 + $0xa8] sm:$0xff]  }
0x1414   :  { %5210 = vmatprep.mubr.bf16.mxu1 %v4771_v48  ;;  %5253 = vmatprep.mubr.bf16.mxu0 %v4771_v48  ;;  %v7103_v48 = vld [vmem:[#allocation14 + $0xb0] sm:$0xff]  }
0x1415   :  { %5211 = vmatmul.mubr.bf16.vlgmr.msra.gmra.mrb[184].mxu1 %v4770_v31  ;;  %5254 = vmatmul.mubr.bf16.vlgmr.msra.gmra.mrb[184].mxu0 %v4770_v31  ;;  %v7102_v31 = vld [vmem:[#allocation14 + $0xf0] sm:$0xff]  }
0x1416   :  { %6224 = vmatpush3.bf16.msra.mxu1 %v7075_v2  ;;  %v7104_v2 = vld [vmem:[#allocation14 + $0xf8] sm:$0xff]  }
0x1417   :  { %6225 = vmatprep.subr.bf16.mxu1 %v7076_v37  ;;  %v7105_v37 = vld [vmem:[#allocation14 + $0xb8] sm:$0xff]  }
0x141a   :  { %6226 = vmatpush3.bf16.msra.mxu1 %v7077_v15 }
0x141b   :  { %6227 = vmatprep.subr.bf16.mxu1 %v7078_v52 }
0x141e   :  { %6228 = vmatpush3.bf16.msra.mxu1 %v7079_v39 }
0x141f   :  { %6229 = vmatprep.subr.bf16.mxu1 %v7080_v5 }
0x1422   :  { %6230 = vmatpush3.bf16.msra.mxu1 %v7081_v25 }
0x1423   :  { %6231 = vmatprep.subr.bf16.mxu1 %v7082_v19 }
0x1426   :  { %6232 = vmatpush3.bf16.msra.mxu1 %v7083_v56  ;;  %v5989_v56 = vld [vmem:[%s9164_s12] ss:$0 sm:$0xff] }
0x1427   :  { %6233 = vmatprep.subr.bf16.mxu1 %v7084_v29 }
0x142a   :  { %6234 = vmatpush3.bf16.msra.mxu1 %v7085_v38 }
0x142b   :  { %6235 = vmatprep.subr.bf16.mxu1 %v7086_v45 }
0x142e   :  { %6236 = vmatpush3.bf16.msra.mxu1 %v7087_v1 }
0x142f   :  { %6237 = vmatprep.subr.bf16.mxu1 %v7088_v40 }
0x1432   :  { %6238 = vmatpush3.bf16.msra.mxu1 %v7089_v62 }
0x1433   :  { %6245 = vmatprep.subr.bf16.mxu1 %v7090_v49 }
0x14e8   :  { %v5212_v14 = vpop.f32.mrb[184].mxu1  ;;  %v5255_v24 = vpop.f32.mrb[184].mxu0 }
0x14e9   :  { %v5213_v23 = vadd.f32 %v5212_v14, %v4841_v59  ;;  %v5256_v18 = vadd.f32 %v5255_v24, %v4849_v54  ;;  %v5214_v57 = vpop.f32.mrb[185].mxu1  ;;  %v5257_v9 = vpop.f32.mrb[185].mxu0 }
0x14ea   :  { %v5215_v53 = vadd.f32 %v5214_v57, %v4845_v12  ;;  %v5258_v28 = vadd.f32 %v5257_v9, %v4853_v4  ;;  %v5216_v27 = vpop.f32.mrb[186].mxu1  ;;  %v5259_v51 = vpop.f32.mrb[186].mxu0 }
0x14eb   :  { %v5217_v61 = vadd.f32 %v5216_v27, %v4841_v59  ;;  %v5260_v32 = vadd.f32 %v5259_v51, %v4849_v54  ;;  %v5218_v63 = vpop.f32.mrb[187].mxu1  ;;  %v5261_v22 = vpop.f32.mrb[187].mxu0  ;;  %v5264_v6 = vmax.f32 %v5213_v23, 0.0  ;;  %v5266_v17 = vmax.f32 %v5256_v18, 0.0 }
0x14ec   :  { %v5219_v30 = vadd.f32 %v5218_v63, %v4845_v12  ;;  %v5262_v42 = vadd.f32 %v5261_v22, %v4853_v4  ;;  %v5265_v41 = vmax.f32 %v5215_v53, 0.0  ;;  %v5267_v46 = vmax.f32 %v5258_v28, 0.0 }
0x14ed   :  { %v5268_v43 = vmax.f32 %v5217_v61, 0.0  ;;  %v5270_v55 = vmax.f32 %v5260_v32, 0.0 }
0x14ee   :  { %v5269_v3 = vmax.f32 %v5219_v30, 0.0  ;;  %v5271_v35 = vmax.f32 %v5262_v42, 0.0 }
0x14ef   :  { %v5272_v36 = vpack.c.bf16 %v5268_v43, %v5264_v6  ;;  %v5274_v33 = vpack.c.bf16 %v5270_v55, %v5266_v17 }
0x14f0   :  { %v5273_v34 = vpack.c.bf16 %v5269_v3, %v5265_v41  ;;  %v5275_v10 = vpack.c.bf16 %v5271_v35, %v5267_v46 }
0x14f2   :  { %5571 = vmatprep.mubr.bf16.mxu1 %v5273_v34 }
0x14f3   :  { %5572 = vmatmul.mubr.bf16.vlgmr.msra.gmra.mrb[188].mxu1 %v5272_v36 }
0x14f4   :  { %6246 = vmatpush3.bf16.msra.mxu1 %v7091_v20  ;;  %5612 = vmatprep.mubr.bf16.mxu1 %v5275_v10 }
0x14f5   :  { %6247 = vmatprep.subr.bf16.mxu1 %v7092_v47 }
0x14f8   :  { %6248 = vmatpush3.bf16.msra.mxu1 %v7093_v16 }
0x14f9   :  { %6249 = vmatprep.subr.bf16.mxu1 %v7094_v44 }
0x14fc   :  { %6250 = vmatpush3.bf16.msra.mxu1 %v7095_v50 }
0x14fd   :  { %6251 = vmatprep.subr.bf16.mxu1 %v7096_v58 }
0x1500   :  { %6252 = vmatpush3.bf16.msra.mxu1 %v7097_v8 }
0x1501   :  { %6253 = vmatprep.subr.bf16.mxu1 %v7098_v60 }
0x1504   :  { %6254 = vmatpush3.bf16.msra.mxu1 %v7099_v0 }
0x1505   :  { %6255 = vmatprep.subr.bf16.mxu1 %v7100_v11 }
0x1508   :  { %6256 = vmatpush3.bf16.msra.mxu1 %v7101_v21 }
0x1509   :  { %6257 = vmatprep.subr.bf16.mxu1 %v7102_v31 }
0x150c   :  { %6258 = vmatpush3.bf16.msra.mxu1 %v7103_v48 }
0x150d   :  { %6259 = vmatprep.subr.bf16.mxu1 %v7104_v2 }
0x1510   :  { %6260 = vmatpush3.bf16.msra.mxu1 %v7105_v37 }
0x1513   :  { %5613 = vmatmul.mubr.bf16.vlgmr.msra.gmra.mrb[192].mxu1 %v5274_v33 }
0x15c6   :  { %v6239_v15 = vpop.f32.mrb[188].mxu1 }
0x15c7   :  { %v6240_v52 = vpop.f32.mrb[189].mxu1 }
0x15c8   :  { %v6241_v39 = vadd.f32 %v6240_v52, %v6239_v15  ;;  %v6242_v5 = vpop.f32.mrb[190].mxu1 }
0x15c9   :  { %v6243_v25 = vpop.f32.mrb[191].mxu1 }
0x15ca   :  { %v6244_v19 = vadd.f32 %v6243_v25, %v6242_v5  ;;  %v5574_v45 = vadd.f32 %v6241_v39, %v5989_v56 }
0x15cc   :  { %v5577_v49 = vadd.f32 %v6244_v19, %v5989_v56 }
0x15e6   :  { %v6261_v29 = vpop.f32.mrb[192].mxu1 }
0x15e7   :  { %v6262_v38 = vpop.f32.mrb[193].mxu1 }
0x15e8   :  { %v6263_v1 = vadd.f32 %v6262_v38, %v6261_v29  ;;  %v6264_v40 = vpop.f32.mrb[194].mxu1 }
0x15e9   :  { %v6265_v62 = vpop.f32.mrb[195].mxu1 }
0x15ea   :  { %v5615_v13 = vadd.f32 %v6263_v1, %v5574_v45  ;;  %v6266_v7 = vadd.f32 %v6265_v62, %v6264_v40 }
0x15ec   :  { %5621 = vst [vmem:[#allocation16] sm:$0xff] %v5615_v13  ;;  %v5618_v26 = vadd.f32 %v6266_v7, %v5577_v49 }
0x15ee   :  { %5622 = vst [vmem:[#allocation16 + $0x8] sm:$0xff] %v5618_v26 }
0x15ef   :  { %7525 = shalt.err (!%p7522_p12)
}
0x15f0   :  { %s7526_s23 = scalar_lea.hbm %s9165_s13, 256 }
0x15f1   :  { %p7527_p13 = scmp.ne.s32.totalorder %s9165_s13, %s7526_s23  ;;  %p7530_p0 = scmp.lt.u32.totalorder %s7526_s23, %s9165_s13 }
0x15f3   :  { %p7532_p1 = pnand %p7530_p0, %p7527_p13 }
0x15f5   :  { %7535 = shalt.err (!%p7532_p1)
}
0x15f6   :  { %5634 = dma.vmem_to_hbm [thread:$0]  %s5629_s17, 256, %s9165_s13, [#allocation4], %s7553_s4, %s7553_s4, %s7554_s28  }
0x15f7   :  { %7546 = dma.done.wait [#allocation4], 256  }
0x15f8   :  { %7547 = vsyncadd [#allocation4], 4294967040 }
0x15f9   :  { %5638 = vsyncpa [#allocation3], 1 }
0x15fa   :  { %5639 = vsyncpa [#allocation6], 1 }
0x15fb   :  { %5640 = vsyncpa [#allocation9], 1 }
0x15fc   :  { %5641 = vsyncpa [#allocation12], 1 }
0x15fd   :  { %5642 = vsyncpa [#allocation15], 1 }
0x15fe   :  { %5643 = vsyncpa [#allocation4], 1 }

</bundles_post_ra>
